<compile_context>
chip_gen: v6e
topology: v6e:2x2x1
jax: 0.10.0
libtpu: 0.0.40
codegen_flags: <defaults>
</compile_context>

<pallas_src>
import math
import functools

import jax
import jax.numpy as jnp
from jax import lax
from jax.experimental import pallas as pl
from jax.experimental.pallas import tpu as pltpu


def _residual_downconv_kernel(x_ref, xres_ref, w1_ref, s1_ref, t1_ref,
                              w2_ref, s2_ref, t2_ref, o_ref, *, K: int):
    """Fused Residual_DownConv forward for NB batch elements (NHWC inside).

    x_ref   : (NB, H, W, C)     f32  input, used for im2col window extraction
    xres_ref: (NB, RW, LW)      f32  same data, lane-packed NHWC flattening
                                      (RW*LW == H*W*C) -> residual add path
    w1_ref  : (K*K*C, C)        f32  conv1 weights as im2col matrix (kh, kw, ci)
    s1_ref  : (1, C)            f32  BN1 scale = gamma / sqrt(var + eps)
    t1_ref  : (1, C)            f32  BN1 shift = (conv_bias - mean) * scale + beta
    w2_ref, s2_ref, t2_ref           same for the second DownConv block
    o_ref   : (NB, RW, LW)      f32  output in the packed NHWC layout
    """
    NB, H, W, C = x_ref.shape
    _, RW, LW = o_ref.shape

    def maxpool2(v):
        # MaxPool2d(2) (stride 2, floor mode) on (nb, h, w, c) built from
        # unit-stride slices + elementwise max + concatenate only.
        nb, h, w, c = v.shape
        h2, w2 = h // 2, w // 2
        v = jnp.concatenate(
            [jnp.maximum(v[:, 2 * i:2 * i + 1], v[:, 2 * i + 1:2 * i + 2])
             for i in range(h2)], axis=1)                       # pool along H
        v = jnp.concatenate(
            [jnp.maximum(v[:, :, 2 * j:2 * j + 1], v[:, :, 2 * j + 1:2 * j + 2])
             for j in range(w2)], axis=2)                       # pool along W
        return v                                                # (nb, h2, w2, c)

    def im2col(v, Ho, Wo):
        # Patch matrix built in registers: rows = (n, oh, ow), cols = (kh, kw, ci).
        nb, _, _, c = v.shape
        cols = [v[:, kh:kh + Ho, kw:kw + Wo, :].reshape(nb * Ho * Wo, c)
                for kh in range(K) for kw in range(K)]
        return jnp.concatenate(cols, axis=-1)                   # (nb*Ho*Wo, K*K*C)

    x = x_ref[...]                                              # (NB, H, W, C)

    # ---------------- block 1: conv(VALID) -> maxpool(2) -> BN -> ReLU -----------
    Ho, Wo = H - K + 1, W - K + 1
    y = jnp.dot(im2col(x, Ho, Wo), w1_ref[...],
                preferred_element_type=jnp.float32)             # (NB*Ho*Wo, C)
    y = y.reshape(NB, Ho, Wo, C)
    y = maxpool2(y)                                             # (NB, H1, W1, C)
    y = jnp.maximum(y * s1_ref[...] + t1_ref[...], 0.0)         # folded bias+BN, ReLU

    # ---------------- block 2: conv(VALID) -> maxpool(2) -> BN --------------------
    H1, W1 = y.shape[1], y.shape[2]
    H2, W2 = H1 - K + 1, W1 - K + 1
    z = jnp.dot(im2col(y, H2, W2), w2_ref[...],
                preferred_element_type=jnp.float32)             # (NB*H2*W2, C)
    z = z.reshape(NB, H2, W2, C)
    z = maxpool2(z)                                             # (NB, 1, 1, C)
    z = z.reshape(NB, C) * s2_ref[...] + t2_ref[...]            # (NB, C)

    # ------------- residual add (broadcast over H*W) + final ReLU -----------------
    # packed NHWC flattening has c fastest-varying and LW % C == 0, so one row
    # of the packed layout is z tiled LW // C times (hoisted, built once).
    z_row = jnp.concatenate([z] * (LW // C), axis=-1)           # (NB, LW)
    z_full = jnp.broadcast_to(z_row[:, None, :], (NB, RW, LW))  # (NB, RW, LW)
    o_ref[...] = jnp.maximum(xres_ref[...] + z_full, 0.0)       # lane-dense store


def _fold_bn(conv_bias, gamma, beta, mean, var, eps=1e-5):
    # inference-mode BN + conv bias folded into one per-channel affine applied
    # after the max-pool (max(a + b) == max(a) + b for per-channel constant b).
    scale = gamma / jnp.sqrt(var + eps)
    shift = (conv_bias - mean) * scale + beta
    return (scale.reshape(1, -1).astype(jnp.float32),
            shift.reshape(1, -1).astype(jnp.float32))


def _im2col_weights(w_oihw):
    # OIHW -> (K*K*Cin, Cout), rows ordered (kh, kw, ci) to match the kernel.
    Cout, Cin, K, _ = w_oihw.shape
    return jnp.transpose(w_oihw, (2, 3, 1, 0)).reshape(K * K * Cin, Cout).astype(jnp.float32)


def _num_grid_steps(n):
    # v7x has 2 TensorCores per chip: keep an even, >=2-step parallel grid.
    # v5e/v6e are single-TC: one step = fewer fixed per-step overheads.
    try:
        kind = jax.devices()[0].device_kind.lower()
    except Exception:
        kind = ""
    if ("v7" in kind or "tpu7" in kind) and n >= 2 and n % 2 == 0:
        return 2
    return 1


@jax.jit
def residual_downconv(x_nchw, w1, b1, g1, be1, m1, v1, w2, b2, g2, be2, m2, v2):
    """Forward of Residual_DownConv (NCHW in / NCHW out, inference-mode BN)."""
    N, C, H, W = x_nchw.shape
    Cout, Cin, K, _ = w1.shape
    assert Cin == C and Cout == C and w2.shape == w1.shape, \
        "module requires in_channels == out_channels == NF"

    # shape flow: VALID conv then stride-2 floor max-pool, twice
    Ho, Wo = H - K + 1, W - K + 1
    H1, W1 = Ho // 2, Wo // 2
    H2, W2 = H1 - K + 1, W1 - K + 1
    Hf, Wf = H2 // 2, W2 // 2
    # the module's residual add only broadcasts when the downsampled map is 1x1
    assert Hf == 1 and Wf == 1, (Hf, Wf)

    # layout glue (a few KB here): NCHW -> NHWC, plus a free reshape to a
    # lane-packed (N, RW, LW) view of the same contiguous NHWC buffer.
    x_nhwc = jnp.transpose(x_nchw, (0, 2, 3, 1)).astype(jnp.float32)
    HWC = H * W * C
    LW = 128 if HWC % 128 == 0 else HWC
    RW = HWC // LW
    x_flat = x_nhwc.reshape(N, RW, LW)

    w1_mat = _im2col_weights(w1)
    w2_mat = _im2col_weights(w2)
    s1, t1 = _fold_bn(b1, g1, be1, m1, v1)
    s2, t2 = _fold_bn(b2, g2, be2, m2, v2)

    steps = _num_grid_steps(N)
    NB = N // steps
    kkc = K * K * C
    kernel = functools.partial(_residual_downconv_kernel, K=K)

    out_flat = pl.pallas_call(
        kernel,
        out_shape=jax.ShapeDtypeStruct((N, RW, LW), jnp.float32),
        grid=(steps,),
        in_specs=[
            pl.BlockSpec((NB, H, W, C), lambda n: (n, 0, 0, 0)),   # x for conv windows
            pl.BlockSpec((NB, RW, LW), lambda n: (n, 0, 0)),       # x, lane-packed residual
            pl.BlockSpec((kkc, C), lambda n: (0, 0)),              # conv1 weights
            pl.BlockSpec((1, C), lambda n: (0, 0)),                # BN1 scale
            pl.BlockSpec((1, C), lambda n: (0, 0)),                # BN1 shift (+conv1 bias)
            pl.BlockSpec((kkc, C), lambda n: (0, 0)),              # conv2 weights
            pl.BlockSpec((1, C), lambda n: (0, 0)),                # BN2 scale
            pl.BlockSpec((1, C), lambda n: (0, 0)),                # BN2 shift (+conv2 bias)
        ],
        out_specs=pl.BlockSpec((NB, RW, LW), lambda n: (n, 0, 0)), # lane-dense output
        compiler_params=pltpu.CompilerParams(
            dimension_semantics=("parallel",),   # batch tiles pipeline / split across TCs
            vmem_limit_bytes=32 * 1024 * 1024,
        ),
    )(x_nhwc, x_flat, w1_mat, s1, t1, w2_mat, s2, t2)

    out_nhwc = out_flat.reshape(N, H, W, C)
    return jnp.transpose(out_nhwc, (0, 3, 1, 2))   # back to the PyTorch NCHW contract


def _reference(x_nchw, w1, b1, g1, be1, m1, v1, w2, b2, g2, be2, m2, v2, eps=1e-5):
    """Plain-JAX f32 reference of the PyTorch module."""
    def conv(x, w, b):
        y = lax.conv_general_dilated(
            x, w, window_strides=(1, 1), padding="VALID",
            dimension_numbers=("NCHW", "OIHW", "NCHW"),
            precision=lax.Precision.HIGHEST)
        return y + b[None, :, None, None]

    def maxpool2(x):
        n, c, h, w = x.shape
        x = x[:, :, :(h // 2) * 2, :(w // 2) * 2]
        return x.reshape(n, c, h // 2, 2, w // 2, 2).max(axis=(3, 5))

    def bn(x, g, be, m, v):
        return ((x - m[None, :, None, None]) / jnp.sqrt(v[None, :, None, None] + eps)
                * g[None, :, None, None] + be[None, :, None, None])

    y = jnp.maximum(bn(maxpool2(conv(x_nchw, w1, b1)), g1, be1, m1, v1), 0.0)
    z = bn(maxpool2(conv(y, w2, b2)), g2, be2, m2, v2)
    return jnp.maximum(x_nchw + z, 0.0)


if __name__ == "__main__":
    # Residual_DownConv(kernel=3, in_channels=8, out_channels=8, NF=8)
    # H = W = 12 so the two conv+pool stages reduce 12 -> 5 -> 1 and the
    # residual add broadcasts (the only runnable configuration of the module).
    K, C, N, H, W = 3, 8, 2, 12, 12

    key = jax.random.PRNGKey(0)
    ks = jax.random.split(key, 13)
    stdv = 1.0 / math.sqrt(C * K * K)

    def conv_params(kw_, kb_):
        w = jax.random.uniform(kw_, (C, C, K, K), minval=-stdv, maxval=stdv, dtype=jnp.float32)
        b = jax.random.uniform(kb_, (C,), minval=-stdv, maxval=stdv, dtype=jnp.float32)
        return w, b

    def bn_params(kg, kb, km, kv):
        g = jax.random.uniform(kg, (C,), minval=0.5, maxval=1.5, dtype=jnp.float32)
        be = jax.random.uniform(kb, (C,), minval=-0.5, maxval=0.5, dtype=jnp.float32)
        m = jax.random.uniform(km, (C,), minval=-0.3, maxval=0.3, dtype=jnp.float32)
        v = jax.random.uniform(kv, (C,), minval=0.5, maxval=1.5, dtype=jnp.float32)
        return g, be, m, v

    w1, b1 = conv_params(ks[0], ks[1])
    g1, be1, m1, v1 = bn_params(ks[2], ks[3], ks[4], ks[5])
    w2, b2 = conv_params(ks[6], ks[7])
    g2, be2, m2, v2 = bn_params(ks[8], ks[9], ks[10], ks[11])
    x = jax.random.normal(ks[12], (N, C, H, W), dtype=jnp.float32)

    out = residual_downconv(x, w1, b1, g1, be1, m1, v1, w2, b2, g2, be2, m2, v2)
    out = jax.block_until_ready(out)

    ref = _reference(x, w1, b1, g1, be1, m1, v1, w2, b2, g2, be2, m2, v2)
    assert out.shape == (N, C, H, W), out.shape
    max_err = float(jnp.max(jnp.abs(out - ref)))
    assert jnp.allclose(out, ref, atol=1e-2, rtol=1e-2), max_err
    print("KERNEL_OK")
</pallas_src>

<mosaic_0001>
module attributes {stable_mosaic.version = 11 : i64} {
  func.func @_residual_downconv_kernel(%arg0: i32, %arg1: memref<2x12x12x8xf32, #tpu.memory_space<vmem>>, %arg2: memref<2x9x128xf32, #tpu.memory_space<vmem>>, %arg3: memref<72x8xf32, #tpu.memory_space<vmem>>, %arg4: memref<1x8xf32, #tpu.memory_space<vmem>>, %arg5: memref<1x8xf32, #tpu.memory_space<vmem>>, %arg6: memref<72x8xf32, #tpu.memory_space<vmem>>, %arg7: memref<1x8xf32, #tpu.memory_space<vmem>>, %arg8: memref<1x8xf32, #tpu.memory_space<vmem>>, %arg9: memref<2x9x128xf32, #tpu.memory_space<vmem>>) attributes {dimension_semantics = [#tpu.dimension_semantics<parallel>], iteration_bounds = array<i64: 1>, scalar_prefetch = 0 : i64, scratch_operands = 0 : i64, tpu.core_type = #tpu.core_type<tc>, window_params = [{transform_indices = @transform_0, window_bounds = array<i64: 2, 12, 12, 8>}, {transform_indices = @transform_1, window_bounds = array<i64: 2, 9, 128>}, {pipeline_mode = #tpu.pipeline_mode<synchronous>, transform_indices = @transform_2, window_bounds = array<i64: 72, 8>}, {pipeline_mode = #tpu.pipeline_mode<synchronous>, transform_indices = @transform_3, window_bounds = array<i64: 1, 8>}, {pipeline_mode = #tpu.pipeline_mode<synchronous>, transform_indices = @transform_4, window_bounds = array<i64: 1, 8>}, {pipeline_mode = #tpu.pipeline_mode<synchronous>, transform_indices = @transform_5, window_bounds = array<i64: 72, 8>}, {pipeline_mode = #tpu.pipeline_mode<synchronous>, transform_indices = @transform_6, window_bounds = array<i64: 1, 8>}, {pipeline_mode = #tpu.pipeline_mode<synchronous>, transform_indices = @transform_7, window_bounds = array<i64: 1, 8>}, {transform_indices = @transform_8, window_bounds = array<i64: 2, 9, 128>}]} {
    %c0 = arith.constant 0 : index
    %c0_0 = arith.constant 0 : index
    %c0_1 = arith.constant 0 : index
    %c0_2 = arith.constant 0 : index
    %0 = vector.load %arg1[%c0, %c0_0, %c0_1, %c0_2] : memref<2x12x12x8xf32, #tpu.memory_space<vmem>>, vector<2x12x12x8xf32>
    %1 = vector.extract_strided_slice %0 {offsets = [0, 0, 0, 0], sizes = [2, 10, 10, 8], strides = [1, 1, 1, 1]} : vector<2x12x12x8xf32> to vector<2x10x10x8xf32>
    %2 = vector.shape_cast %1 : vector<2x10x10x8xf32> to vector<200x8xf32>
    %3 = vector.extract_strided_slice %0 {offsets = [0, 0, 1, 0], sizes = [2, 10, 10, 8], strides = [1, 1, 1, 1]} : vector<2x12x12x8xf32> to vector<2x10x10x8xf32>
    %4 = vector.shape_cast %3 : vector<2x10x10x8xf32> to vector<200x8xf32>
    %5 = vector.extract_strided_slice %0 {offsets = [0, 0, 2, 0], sizes = [2, 10, 10, 8], strides = [1, 1, 1, 1]} : vector<2x12x12x8xf32> to vector<2x10x10x8xf32>
    %6 = vector.shape_cast %5 : vector<2x10x10x8xf32> to vector<200x8xf32>
    %7 = vector.extract_strided_slice %0 {offsets = [0, 1, 0, 0], sizes = [2, 10, 10, 8], strides = [1, 1, 1, 1]} : vector<2x12x12x8xf32> to vector<2x10x10x8xf32>
    %8 = vector.shape_cast %7 : vector<2x10x10x8xf32> to vector<200x8xf32>
    %9 = vector.extract_strided_slice %0 {offsets = [0, 1, 1, 0], sizes = [2, 10, 10, 8], strides = [1, 1, 1, 1]} : vector<2x12x12x8xf32> to vector<2x10x10x8xf32>
    %10 = vector.shape_cast %9 : vector<2x10x10x8xf32> to vector<200x8xf32>
    %11 = vector.extract_strided_slice %0 {offsets = [0, 1, 2, 0], sizes = [2, 10, 10, 8], strides = [1, 1, 1, 1]} : vector<2x12x12x8xf32> to vector<2x10x10x8xf32>
    %12 = vector.shape_cast %11 : vector<2x10x10x8xf32> to vector<200x8xf32>
    %13 = vector.extract_strided_slice %0 {offsets = [0, 2, 0, 0], sizes = [2, 10, 10, 8], strides = [1, 1, 1, 1]} : vector<2x12x12x8xf32> to vector<2x10x10x8xf32>
    %14 = vector.shape_cast %13 : vector<2x10x10x8xf32> to vector<200x8xf32>
    %15 = vector.extract_strided_slice %0 {offsets = [0, 2, 1, 0], sizes = [2, 10, 10, 8], strides = [1, 1, 1, 1]} : vector<2x12x12x8xf32> to vector<2x10x10x8xf32>
    %16 = vector.shape_cast %15 : vector<2x10x10x8xf32> to vector<200x8xf32>
    %17 = vector.extract_strided_slice %0 {offsets = [0, 2, 2, 0], sizes = [2, 10, 10, 8], strides = [1, 1, 1, 1]} : vector<2x12x12x8xf32> to vector<2x10x10x8xf32>
    %18 = vector.shape_cast %17 : vector<2x10x10x8xf32> to vector<200x8xf32>
    %19 = tpu.concatenate %2, %4, %6, %8, %10, %12, %14, %16, %18 in 1 : vector<200x8xf32>, vector<200x8xf32>, vector<200x8xf32>, vector<200x8xf32>, vector<200x8xf32>, vector<200x8xf32>, vector<200x8xf32>, vector<200x8xf32>, vector<200x8xf32> -> vector<200x72xf32>
    %c0_3 = arith.constant 0 : index
    %c0_4 = arith.constant 0 : index
    %20 = vector.load %arg3[%c0_3, %c0_4] : memref<72x8xf32, #tpu.memory_space<vmem>>, vector<72x8xf32>
    %cst = arith.constant dense<0.000000e+00> : vector<200x8xf32>
    %21 = tpu.matmul %19, %20, %cst {dimension_numbers = #tpu.dot_dimension_numbers<[1], [0], [0], [1], [0, 0, 1, 1], [], []>} : vector<200x72xf32>, vector<72x8xf32>, vector<200x8xf32> -> vector<200x8xf32>
    %22 = vector.shape_cast %21 : vector<200x8xf32> to vector<2x10x10x8xf32>
    %23 = vector.extract_strided_slice %22 {offsets = [0, 0, 0, 0], sizes = [2, 1, 10, 8], strides = [1, 1, 1, 1]} : vector<2x10x10x8xf32> to vector<2x1x10x8xf32>
    %24 = vector.extract_strided_slice %22 {offsets = [0, 1, 0, 0], sizes = [2, 1, 10, 8], strides = [1, 1, 1, 1]} : vector<2x10x10x8xf32> to vector<2x1x10x8xf32>
    %25 = arith.maximumf %23, %24 : vector<2x1x10x8xf32>
    %26 = vector.extract_strided_slice %22 {offsets = [0, 2, 0, 0], sizes = [2, 1, 10, 8], strides = [1, 1, 1, 1]} : vector<2x10x10x8xf32> to vector<2x1x10x8xf32>
    %27 = vector.extract_strided_slice %22 {offsets = [0, 3, 0, 0], sizes = [2, 1, 10, 8], strides = [1, 1, 1, 1]} : vector<2x10x10x8xf32> to vector<2x1x10x8xf32>
    %28 = arith.maximumf %26, %27 : vector<2x1x10x8xf32>
    %29 = vector.extract_strided_slice %22 {offsets = [0, 4, 0, 0], sizes = [2, 1, 10, 8], strides = [1, 1, 1, 1]} : vector<2x10x10x8xf32> to vector<2x1x10x8xf32>
    %30 = vector.extract_strided_slice %22 {offsets = [0, 5, 0, 0], sizes = [2, 1, 10, 8], strides = [1, 1, 1, 1]} : vector<2x10x10x8xf32> to vector<2x1x10x8xf32>
    %31 = arith.maximumf %29, %30 : vector<2x1x10x8xf32>
    %32 = vector.extract_strided_slice %22 {offsets = [0, 6, 0, 0], sizes = [2, 1, 10, 8], strides = [1, 1, 1, 1]} : vector<2x10x10x8xf32> to vector<2x1x10x8xf32>
    %33 = vector.extract_strided_slice %22 {offsets = [0, 7, 0, 0], sizes = [2, 1, 10, 8], strides = [1, 1, 1, 1]} : vector<2x10x10x8xf32> to vector<2x1x10x8xf32>
    %34 = arith.maximumf %32, %33 : vector<2x1x10x8xf32>
    %35 = vector.extract_strided_slice %22 {offsets = [0, 8, 0, 0], sizes = [2, 1, 10, 8], strides = [1, 1, 1, 1]} : vector<2x10x10x8xf32> to vector<2x1x10x8xf32>
    %36 = vector.extract_strided_slice %22 {offsets = [0, 9, 0, 0], sizes = [2, 1, 10, 8], strides = [1, 1, 1, 1]} : vector<2x10x10x8xf32> to vector<2x1x10x8xf32>
    %37 = arith.maximumf %35, %36 : vector<2x1x10x8xf32>
    %38 = tpu.concatenate %25, %28, %31, %34, %37 in 1 : vector<2x1x10x8xf32>, vector<2x1x10x8xf32>, vector<2x1x10x8xf32>, vector<2x1x10x8xf32>, vector<2x1x10x8xf32> -> vector<2x5x10x8xf32>
    %39 = vector.extract_strided_slice %38 {offsets = [0, 0, 0, 0], sizes = [2, 5, 1, 8], strides = [1, 1, 1, 1]} : vector<2x5x10x8xf32> to vector<2x5x1x8xf32>
    %40 = vector.extract_strided_slice %38 {offsets = [0, 0, 1, 0], sizes = [2, 5, 1, 8], strides = [1, 1, 1, 1]} : vector<2x5x10x8xf32> to vector<2x5x1x8xf32>
    %41 = arith.maximumf %39, %40 : vector<2x5x1x8xf32>
    %42 = vector.extract_strided_slice %38 {offsets = [0, 0, 2, 0], sizes = [2, 5, 1, 8], strides = [1, 1, 1, 1]} : vector<2x5x10x8xf32> to vector<2x5x1x8xf32>
    %43 = vector.extract_strided_slice %38 {offsets = [0, 0, 3, 0], sizes = [2, 5, 1, 8], strides = [1, 1, 1, 1]} : vector<2x5x10x8xf32> to vector<2x5x1x8xf32>
    %44 = arith.maximumf %42, %43 : vector<2x5x1x8xf32>
    %45 = vector.extract_strided_slice %38 {offsets = [0, 0, 4, 0], sizes = [2, 5, 1, 8], strides = [1, 1, 1, 1]} : vector<2x5x10x8xf32> to vector<2x5x1x8xf32>
    %46 = vector.extract_strided_slice %38 {offsets = [0, 0, 5, 0], sizes = [2, 5, 1, 8], strides = [1, 1, 1, 1]} : vector<2x5x10x8xf32> to vector<2x5x1x8xf32>
    %47 = arith.maximumf %45, %46 : vector<2x5x1x8xf32>
    %48 = vector.extract_strided_slice %38 {offsets = [0, 0, 6, 0], sizes = [2, 5, 1, 8], strides = [1, 1, 1, 1]} : vector<2x5x10x8xf32> to vector<2x5x1x8xf32>
    %49 = vector.extract_strided_slice %38 {offsets = [0, 0, 7, 0], sizes = [2, 5, 1, 8], strides = [1, 1, 1, 1]} : vector<2x5x10x8xf32> to vector<2x5x1x8xf32>
    %50 = arith.maximumf %48, %49 : vector<2x5x1x8xf32>
    %51 = vector.extract_strided_slice %38 {offsets = [0, 0, 8, 0], sizes = [2, 5, 1, 8], strides = [1, 1, 1, 1]} : vector<2x5x10x8xf32> to vector<2x5x1x8xf32>
    %52 = vector.extract_strided_slice %38 {offsets = [0, 0, 9, 0], sizes = [2, 5, 1, 8], strides = [1, 1, 1, 1]} : vector<2x5x10x8xf32> to vector<2x5x1x8xf32>
    %53 = arith.maximumf %51, %52 : vector<2x5x1x8xf32>
    %54 = tpu.concatenate %41, %44, %47, %50, %53 in 2 : vector<2x5x1x8xf32>, vector<2x5x1x8xf32>, vector<2x5x1x8xf32>, vector<2x5x1x8xf32>, vector<2x5x1x8xf32> -> vector<2x5x5x8xf32>
    %c0_5 = arith.constant 0 : index
    %c0_6 = arith.constant 0 : index
    %55 = vector.load %arg4[%c0_5, %c0_6] : memref<1x8xf32, #tpu.memory_space<vmem>>, vector<1x8xf32>
    %56 = vector.shape_cast %55 : vector<1x8xf32> to vector<1x1x1x8xf32>
    %57 = vector.broadcast %56 : vector<1x1x1x8xf32> to vector<2x5x5x8xf32>
    %58 = arith.mulf %54, %57 : vector<2x5x5x8xf32>
    %c0_7 = arith.constant 0 : index
    %c0_8 = arith.constant 0 : index
    %59 = vector.load %arg5[%c0_7, %c0_8] : memref<1x8xf32, #tpu.memory_space<vmem>>, vector<1x8xf32>
    %60 = vector.shape_cast %59 : vector<1x8xf32> to vector<1x1x1x8xf32>
    %61 = vector.broadcast %60 : vector<1x1x1x8xf32> to vector<2x5x5x8xf32>
    %62 = arith.addf %58, %61 : vector<2x5x5x8xf32>
    %cst_9 = arith.constant 0.000000e+00 : f32
    %63 = vector.broadcast %cst_9 : f32 to vector<2x5x5x8xf32>
    %64 = arith.maximumf %62, %63 : vector<2x5x5x8xf32>
    %65 = vector.extract_strided_slice %64 {offsets = [0, 0, 0, 0], sizes = [2, 3, 3, 8], strides = [1, 1, 1, 1]} : vector<2x5x5x8xf32> to vector<2x3x3x8xf32>
    %66 = vector.shape_cast %65 : vector<2x3x3x8xf32> to vector<18x8xf32>
    %67 = vector.extract_strided_slice %64 {offsets = [0, 0, 1, 0], sizes = [2, 3, 3, 8], strides = [1, 1, 1, 1]} : vector<2x5x5x8xf32> to vector<2x3x3x8xf32>
    %68 = vector.shape_cast %67 : vector<2x3x3x8xf32> to vector<18x8xf32>
    %69 = vector.extract_strided_slice %64 {offsets = [0, 0, 2, 0], sizes = [2, 3, 3, 8], strides = [1, 1, 1, 1]} : vector<2x5x5x8xf32> to vector<2x3x3x8xf32>
    %70 = vector.shape_cast %69 : vector<2x3x3x8xf32> to vector<18x8xf32>
    %71 = vector.extract_strided_slice %64 {offsets = [0, 1, 0, 0], sizes = [2, 3, 3, 8], strides = [1, 1, 1, 1]} : vector<2x5x5x8xf32> to vector<2x3x3x8xf32>
    %72 = vector.shape_cast %71 : vector<2x3x3x8xf32> to vector<18x8xf32>
    %73 = vector.extract_strided_slice %64 {offsets = [0, 1, 1, 0], sizes = [2, 3, 3, 8], strides = [1, 1, 1, 1]} : vector<2x5x5x8xf32> to vector<2x3x3x8xf32>
    %74 = vector.shape_cast %73 : vector<2x3x3x8xf32> to vector<18x8xf32>
    %75 = vector.extract_strided_slice %64 {offsets = [0, 1, 2, 0], sizes = [2, 3, 3, 8], strides = [1, 1, 1, 1]} : vector<2x5x5x8xf32> to vector<2x3x3x8xf32>
    %76 = vector.shape_cast %75 : vector<2x3x3x8xf32> to vector<18x8xf32>
    %77 = vector.extract_strided_slice %64 {offsets = [0, 2, 0, 0], sizes = [2, 3, 3, 8], strides = [1, 1, 1, 1]} : vector<2x5x5x8xf32> to vector<2x3x3x8xf32>
    %78 = vector.shape_cast %77 : vector<2x3x3x8xf32> to vector<18x8xf32>
    %79 = vector.extract_strided_slice %64 {offsets = [0, 2, 1, 0], sizes = [2, 3, 3, 8], strides = [1, 1, 1, 1]} : vector<2x5x5x8xf32> to vector<2x3x3x8xf32>
    %80 = vector.shape_cast %79 : vector<2x3x3x8xf32> to vector<18x8xf32>
    %81 = vector.extract_strided_slice %64 {offsets = [0, 2, 2, 0], sizes = [2, 3, 3, 8], strides = [1, 1, 1, 1]} : vector<2x5x5x8xf32> to vector<2x3x3x8xf32>
    %82 = vector.shape_cast %81 : vector<2x3x3x8xf32> to vector<18x8xf32>
    %83 = tpu.concatenate %66, %68, %70, %72, %74, %76, %78, %80, %82 in 1 : vector<18x8xf32>, vector<18x8xf32>, vector<18x8xf32>, vector<18x8xf32>, vector<18x8xf32>, vector<18x8xf32>, vector<18x8xf32>, vector<18x8xf32>, vector<18x8xf32> -> vector<18x72xf32>
    %c0_10 = arith.constant 0 : index
    %c0_11 = arith.constant 0 : index
    %84 = vector.load %arg6[%c0_10, %c0_11] : memref<72x8xf32, #tpu.memory_space<vmem>>, vector<72x8xf32>
    %cst_12 = arith.constant dense<0.000000e+00> : vector<18x8xf32>
    %85 = tpu.matmul %83, %84, %cst_12 {dimension_numbers = #tpu.dot_dimension_numbers<[1], [0], [0], [1], [0, 0, 1, 1], [], []>} : vector<18x72xf32>, vector<72x8xf32>, vector<18x8xf32> -> vector<18x8xf32>
    %86 = vector.shape_cast %85 : vector<18x8xf32> to vector<2x3x3x8xf32>
    %87 = vector.extract_strided_slice %86 {offsets = [0, 0, 0, 0], sizes = [2, 1, 3, 8], strides = [1, 1, 1, 1]} : vector<2x3x3x8xf32> to vector<2x1x3x8xf32>
    %88 = vector.extract_strided_slice %86 {offsets = [0, 1, 0, 0], sizes = [2, 1, 3, 8], strides = [1, 1, 1, 1]} : vector<2x3x3x8xf32> to vector<2x1x3x8xf32>
    %89 = arith.maximumf %87, %88 : vector<2x1x3x8xf32>
    %90 = vector.extract_strided_slice %89 {offsets = [0, 0, 0, 0], sizes = [2, 1, 1, 8], strides = [1, 1, 1, 1]} : vector<2x1x3x8xf32> to vector<2x1x1x8xf32>
    %91 = vector.extract_strided_slice %89 {offsets = [0, 0, 1, 0], sizes = [2, 1, 1, 8], strides = [1, 1, 1, 1]} : vector<2x1x3x8xf32> to vector<2x1x1x8xf32>
    %92 = arith.maximumf %90, %91 : vector<2x1x1x8xf32>
    %93 = vector.shape_cast %92 : vector<2x1x1x8xf32> to vector<2x8xf32>
    %c0_13 = arith.constant 0 : index
    %c0_14 = arith.constant 0 : index
    %94 = vector.load %arg7[%c0_13, %c0_14] : memref<1x8xf32, #tpu.memory_space<vmem>>, vector<1x8xf32>
    %95 = vector.broadcast %94 : vector<1x8xf32> to vector<2x8xf32>
    %96 = arith.mulf %93, %95 : vector<2x8xf32>
    %c0_15 = arith.constant 0 : index
    %c0_16 = arith.constant 0 : index
    %97 = vector.load %arg8[%c0_15, %c0_16] : memref<1x8xf32, #tpu.memory_space<vmem>>, vector<1x8xf32>
    %98 = vector.broadcast %97 : vector<1x8xf32> to vector<2x8xf32>
    %99 = arith.addf %96, %98 : vector<2x8xf32>
    %100 = tpu.concatenate %99, %99, %99, %99, %99, %99, %99, %99, %99, %99, %99, %99, %99, %99, %99, %99 in 1 : vector<2x8xf32>, vector<2x8xf32>, vector<2x8xf32>, vector<2x8xf32>, vector<2x8xf32>, vector<2x8xf32>, vector<2x8xf32>, vector<2x8xf32>, vector<2x8xf32>, vector<2x8xf32>, vector<2x8xf32>, vector<2x8xf32>, vector<2x8xf32>, vector<2x8xf32>, vector<2x8xf32>, vector<2x8xf32> -> vector<2x128xf32>
    %101 = vector.shape_cast %100 : vector<2x128xf32> to vector<2x1x128xf32>
    %102 = vector.shape_cast %101 : vector<2x1x128xf32> to vector<2x1x128xf32>
    %103 = vector.broadcast %102 : vector<2x1x128xf32> to vector<2x9x128xf32>
    %c0_17 = arith.constant 0 : index
    %c0_18 = arith.constant 0 : index
    %c0_19 = arith.constant 0 : index
    %104 = vector.load %arg2[%c0_17, %c0_18, %c0_19] : memref<2x9x128xf32, #tpu.memory_space<vmem>>, vector<2x9x128xf32>
    %105 = arith.addf %104, %103 : vector<2x9x128xf32>
    %cst_20 = arith.constant 0.000000e+00 : f32
    %106 = vector.broadcast %cst_20 : f32 to vector<2x9x128xf32>
    %107 = arith.maximumf %105, %106 : vector<2x9x128xf32>
    %c0_21 = arith.constant 0 : index
    %c0_22 = arith.constant 0 : index
    %c0_23 = arith.constant 0 : index
    %108 = vector.load %arg9[%c0_21, %c0_22, %c0_23] : memref<2x9x128xf32, #tpu.memory_space<vmem>>, vector<2x9x128xf32>
    tpu.vector_store %arg9[%c0_21, %c0_22, %c0_23], %107 {strides = array<i32>} : memref<2x9x128xf32, #tpu.memory_space<vmem>>, vector<2x9x128xf32>,
    return
  }
  func.func @transform_0(%arg0: i32) -> (i32, i32, i32, i32) {
    %c0_i32 = arith.constant 0 : i32
    %c0_i32_0 = arith.constant 0 : i32
    %c0_i32_1 = arith.constant 0 : i32
    %c0_i32_2 = arith.constant 0 : i32
    return %arg0, %c0_i32, %c0_i32_0, %c0_i32_1 : i32, i32, i32, i32
  }
  func.func @transform_1(%arg0: i32) -> (i32, i32, i32) {
    %c0_i32 = arith.constant 0 : i32
    %c0_i32_0 = arith.constant 0 : i32
    %c0_i32_1 = arith.constant 0 : i32
    return %arg0, %c0_i32, %c0_i32_0 : i32, i32, i32
  }
  func.func @transform_2(%arg0: i32) -> (i32, i32) {
    %c0_i32 = arith.constant 0 : i32
    %c0_i32_0 = arith.constant 0 : i32
    %c0_i32_1 = arith.constant 0 : i32
    return %c0_i32, %c0_i32_0 : i32, i32
  }
  func.func @transform_3(%arg0: i32) -> (i32, i32) {
    %c0_i32 = arith.constant 0 : i32
    %c0_i32_0 = arith.constant 0 : i32
    %c0_i32_1 = arith.constant 0 : i32
    return %c0_i32, %c0_i32_0 : i32, i32
  }
  func.func @transform_4(%arg0: i32) -> (i32, i32) {
    %c0_i32 = arith.constant 0 : i32
    %c0_i32_0 = arith.constant 0 : i32
    %c0_i32_1 = arith.constant 0 : i32
    return %c0_i32, %c0_i32_0 : i32, i32
  }
  func.func @transform_5(%arg0: i32) -> (i32, i32) {
    %c0_i32 = arith.constant 0 : i32
    %c0_i32_0 = arith.constant 0 : i32
    %c0_i32_1 = arith.constant 0 : i32
    return %c0_i32, %c0_i32_0 : i32, i32
  }
  func.func @transform_6(%arg0: i32) -> (i32, i32) {
    %c0_i32 = arith.constant 0 : i32
    %c0_i32_0 = arith.constant 0 : i32
    %c0_i32_1 = arith.constant 0 : i32
    return %c0_i32, %c0_i32_0 : i32, i32
  }
  func.func @transform_7(%arg0: i32) -> (i32, i32) {
    %c0_i32 = arith.constant 0 : i32
    %c0_i32_0 = arith.constant 0 : i32
    %c0_i32_1 = arith.constant 0 : i32
    return %c0_i32, %c0_i32_0 : i32, i32
  }
  func.func @transform_8(%arg0: i32) -> (i32, i32, i32) {
    %c0_i32 = arith.constant 0 : i32
    %c0_i32_0 = arith.constant 0 : i32
    %c0_i32_1 = arith.constant 0 : i32
    return %arg0, %c0_i32, %c0_i32_0 : i32, i32, i32
  }
}

</mosaic_0001>

<bundles_post_ra>
// kernel: residual_downconv.1
= control target key start
LH: loop header
LB: loop body
LE: loop exit
PB: predicated region body
PF: predicated region fallthrough
CT: control target
= control target key end

     0   :  { %v121_v0 = vlaneseq  ;;  %vm617_vm0 = vcmask 1040384   ;;  %vm618_vm1 = vcmask 1042434   ;;  %v7944_v2 = vmov 1983009808   ;;  %s7945_s19 = smov 24   ;;  %s7946_s20 = smov 16   ;;  %s12440_s0 = inlined_call_operand.vmem [shape: f32[2,12,12,8], index: 0, kind: input, shape index: {}]   ;;  %s12441_s2 = inlined_call_operand.vmem [shape: f32[72,8], index: 2, kind: input, shape index: {}]   ;;  %s12442_s3 = inlined_call_operand.vmem [shape: f32[1,8], index: 3, kind: input, shape index: {}]   ;;  %s12443_s4 = inlined_call_operand.vmem [shape: f32[1,8], index: 4, kind: input, shape index: {}]   ;;  %s12444_s5 = inlined_call_operand.vmem [shape: f32[72,8], index: 5, kind: input, shape index: {}]   ;;  %s12445_s6 = inlined_call_operand.vmem [shape: f32[1,8], index: 6, kind: input, shape index: {}]   ;;  %s12446_s7 = inlined_call_operand.vmem [shape: f32[1,8], index: 7, kind: input, shape index: {}]   ;;  %s12447_s1 = inlined_call_operand.vmem [shape: f32[2,9,128], index: 1, kind: input, shape index: {}]   ;;  %s12448_s8 = inlined_call_operand.vmem [shape: f32[2,9,128], index: 8, kind: output, shape index: {}]  }
   0x1   :  { %v31_v1 = vld [vmem:[%s12440_s0 + $0x10] sm:$0xff]  ;;  %v119_v3 = vunpack.c.l.s4 %v7944_v2  ;;  %v29_v4 = vld [vmem:[%s12440_s0] sm:$0xff]  ;;  %v8017_v5 = vld.sshfl [vmem:[%s12440_s0 + $0x8] sm:$0x33 pattern:$0x76325410] }
   0x2   :  { %v8019_v6 = vshrl.u32 %v121_v0, 7  ;;  %v8024_v7 = vld.sshfl [vmem:[%s12440_s0 + $0x18] sm:$0x33 pattern:$0x76325410]  ;;  %vm619_vm2 = vmor %vm617_vm0, %vm618_vm1  ;;  %v597_v8 = vcombine.high %v8017_v5, %v8017_v5  ;;  %v141_v10 = vcombine.high %v31_v1, %v31_v1  ;;  %v117_v11 = vcombine.high %v29_v4, %v29_v4  ;;  %v33_v12 = vld [vmem:[%s12440_s0 + $0x20] sm:$0xff] }
   0x3   :  { %v120_v9 = vunpack.c.0.s8 %v119_v3  ;;  %v8035_v13 = vld.sshfl [vmem:[%s12440_s0 + $0x28] sm:$0x33 pattern:$0x76325410]  ;;  %v8039_v14 = vcombine.high %v8024_v7, %v8024_v7  ;;  %v165_v15 = vcombine.high %v33_v12, %v33_v12  ;;  %vm620_vm3 = vcmask 1044484   ;;  %v8045_v17 = vld [vmem:[%s12440_s0 + $0x30] sm:$0xff] }
   0x4   :  { %12551 = vst [vmem:[#allocation2_spill] sm:$0xff] %v8019_v6  ;;  %vm622_vm4 = vcmask 1046534   ;;  %v635_v16 = vrot.slane %v8017_v5, 7  ;;  %vm621_vm5 = vmor %vm619_vm2, %vm620_vm3  ;;  %v651_v19 = vrot.slane %v8024_v7, 7  ;;  %v8051_v20 = vrot.slane %v597_v8, 7  ;;  %s7947_s21 = smov 40  }
   0x5   :  { %v8048_v18 = vsub.s32 %v120_v9, %v8019_v6  ;;  %v667_v21 = vrot.slane %v8035_v13, 7  ;;  %v654_v23 = vrot.slane %v8039_v14, 7  ;;  %v189_v24 = vcombine.high %v8045_v17, %v8045_v17  ;;  %vm8076_vm6 = vmor %vm621_vm5, %vm622_vm4  ;;  %s7948_s22 = smov 48   ;;  %s7949_s23 = smov 64  }
   0x6   :  { %v8056_v22 = vrot.slane %v635_v16, 2  ;;  %v2100_v25 = vcombine.low %v8024_v7, %v8039_v14  ;;  %v8092_v34 = vrot.slane %v651_v19, 2  ;;  %s7950_s24 = smov 8   ;;  %s7951_s25 = smov 32   ;;  %vm7954_vm7 = vmmov 0  }
   0x7   :  { %v8064_v26 = vrot.slane %v31_v1, %v8048_v18  ;;  %v8067_v27 = vrot.slane %v141_v10, %v8048_v18  ;;  %v8070_v28 = vrot.slane %v29_v4, %v8048_v18  ;;  %v8073_v29 = vrot.slane %v117_v11, %v8048_v18  ;;  %s7952_s26 = smov 56   ;;  %s7958_s28 = smov 96  }
   0x8   :  { %v8081_v31 = vrot.slane %v33_v12, %v8048_v18  ;;  %v8084_v32 = vrot.slane %v165_v15, %v8048_v18  ;;  %v639_v33 = vsel %vm8076_vm6, %v8056_v22, %v8051_v20  ;;  %vm4118_vm8 = vcmask 64512  }
   0x9   :  { %v8096_v35 = vcombine.high %v8064_v26, %v8064_v26  ;;  %v8100_v36 = vcombine.high %v8067_v27, %v8067_v27  ;;  %v8104_v37 = vcombine.high %v8070_v28, %v8070_v28  ;;  %v8108_v38 = vcombine.high %v8073_v29, %v8073_v29 }
   0xa   :  { %v7596_v39 = vcombine.high %v8017_v5, %v8064_v26  ;;  %v8114_v40 = vcombine.high %v8081_v31, %v8081_v31  ;;  %v8118_v41 = vcombine.high %v8084_v32, %v8084_v32  ;;  %v2575_v42 = vcombine.low %v8024_v7, %v8081_v31 }
   0xb   :  { %v2084_v43 = vcombine.low %v8067_v27, %v8100_v36  ;;  %v2566_v44 = vcombine.low %v8064_v26, %v8096_v35  ;;  %v2066_v45 = vcombine.low %v8104_v37, %v8073_v29  ;;  %v2067_v46 = vcombine.low %v8108_v38, %v8017_v5 }
   0xc   :  { %v1134_v47 = vcombine.low %v8096_v35, %v8067_v27  ;;  %v1150_v48 = vcombine.low %v8100_v36, %v8024_v7  ;;  %v2091_v49 = vrot.slane %v7596_v39, %v8048_v18  ;;  %v1151_v50 = vcombine.low %v8081_v31, %v8114_v40 }
   0xd   :  { %v2098_v51 = vrot.slane %v2084_v43, %v8048_v18  ;;  %v2573_v52 = vrot.slane %v2566_v44, %v8048_v18  ;;  %v2074_v53 = vrot.slane %v2066_v45, %v8048_v18  ;;  %v2081_v54 = vrot.slane %v2067_v46, %v8048_v18 }
   0xe   :  { %v8142_v55 = vrot.slane %v1134_v47, %v8048_v18  ;;  %v8145_v56 = vrot.slane %v1150_v48, %v8048_v18  ;;  %v8148_v57 = vrot.slane %v1151_v50, %v8048_v18  ;;  %v1167_v58 = vcombine.low %v8084_v32, %v8118_v41 }
   0xf   :  { %v2574_v59 = vcombine.low %v2573_v52, %v2098_v51  ;;  %v2082_v60 = vcombine.low %v2074_v53, %v2081_v54  ;;  %v2099_v61 = vcombine.low %v2091_v49, %v2098_v51  ;;  %v2101_v62 = vcombine.low %v8114_v40, %v8084_v32 }
  0x10   :  { %v3354_v63 = vcombine.low %v8142_v55, %v8145_v56  ;;  %v8157_v0 = vrot.slane %v1167_v58, %v8048_v18  ;;  %v2582_v1 = vrot.slane %v2575_v42, %v8048_v18  ;;  %v2117_v2 = vcombine.low %v8118_v41, %v8035_v13 }
  0x11   :  { %2779 = vrot.lane.b32.xlu1 %v2574_v59, %s7945_s19  ;;  %2491 = vrot.lane.b32.xlu0 %v2082_v60, %s7946_s20  ;;  %v8165_v3 = vrot.slane %v2101_v62, %v8048_v18  ;;  %v7568_v4 = vrot.slane %v8070_v28, 9  ;;  %v626_v8 = vrot.slane %v8104_v37, 7  ;;  %v629_v9 = vrot.slane %v8073_v29, 7 }
  0x12   :  { %12554 = vst [vmem:[#allocation3_spill] sm:$0xff] %v8157_v0  ;;  %v3630_v10 = vcombine.low %v8148_v57, %v8157_v0  ;;  %v8173_v11 = vrot.slane %v2117_v2, %v8048_v18  ;;  %v632_v12 = vrot.slane %v8108_v38, 7  ;;  %v7569_v15 = vrot.slane %v8064_v26, 9 }
  0x13   :  { %v2583_v39 = vcombine.low %v2582_v1, %v8165_v3  ;;  %v627_v42 = vsel %vm8076_vm6, %v7568_v4, %v626_v8  ;;  %v628_v43 = vrot.slane %v626_v8, 2  ;;  %v631_v44 = vrot.slane %v629_v9, 2 }
  0x14   :  { %v3970_v45 = vcombine.low %v8165_v3, %v8173_v11  ;;  %v634_v46 = vrot.slane %v632_v12, 2  ;;  %v642_v47 = vrot.slane %v8096_v35, 7  ;;  %v645_v48 = vrot.slane %v8067_v27, 7 }
  0x15   :  { %3555 = vrot.lane.b32.xlu1 %v3354_v63, %s7947_s21  ;;  %2493 = vrot.lane.b32.xlu0 %v2099_v61, %s7946_s20  ;;  %v630_v49 = vsel %vm8076_vm6, %v628_v43, %v629_v9  ;;  %v633_v50 = vsel %vm8076_vm6, %v631_v44, %v632_v12  ;;  %v648_v51 = vrot.slane %v8100_v36, 7  ;;  %v7570_v52 = vrot.slane %v8081_v31, 9 }
  0x16   :  { %v636_v27 = vsel %vm8076_vm6, %v634_v46, %v635_v16  ;;  %v1566_v35 = vcombine.low %v627_v42, %v630_v49  ;;  %v643_v53 = vsel %vm8076_vm6, %v7569_v15, %v642_v47  ;;  %v644_v54 = vrot.slane %v642_v47, 2 }
  0x17   :  { %v1567_v58 = vcombine.low %v633_v50, %v636_v27  ;;  %v647_v59 = vrot.slane %v645_v48, 2  ;;  %v650_v60 = vrot.slane %v648_v51, 2  ;;  %v1583_v36 = vcombine.low %v639_v33, %v643_v53 }
  0x18   :  { %v1574_v61 = vrot.slane %v1566_v35, %v8048_v18  ;;  %v646_v5 = vsel %vm8076_vm6, %v644_v54, %v645_v48  ;;  %v658_v16 = vrot.slane %v8114_v40, 7  ;;  %v661_v62 = vrot.slane %v8084_v32, 7 }
  0x19   :  { %3715 = vrot.lane.b32.xlu1 %v3630_v10, %s7948_s22  ;;  %2781 = vrot.lane.b32.xlu0 %v2583_v39, %s7945_s19  ;;  %v1581_v63 = vrot.slane %v1567_v58, %v8048_v18  ;;  %v649_v20 = vsel %vm8076_vm6, %v647_v59, %v648_v51  ;;  %v652_v22 = vsel %vm8076_vm6, %v650_v60, %v651_v19  ;;  %v664_v33 = vrot.slane %v8118_v41, 7 }
  0x1a   :  { %v2854_v40 = vcombine.low %v643_v53, %v646_v5  ;;  %v2855_v1 = vcombine.low %v649_v20, %v652_v22  ;;  %v1584_v32 = vcombine.low %v646_v5, %v649_v20  ;;  %v1591_v2 = vrot.slane %v1583_v36, %v8048_v18 }
  0x1b   :  { %v1582_v4 = vcombine.low %v1574_v61, %v1581_v63  ;;  %v659_v8 = vsel %vm8076_vm6, %v7570_v52, %v658_v16  ;;  %v660_v9 = vrot.slane %v658_v16, 2  ;;  %v663_v10 = vrot.slane %v661_v62, 2 }
  0x1c   :  { %v2862_v12 = vrot.slane %v2854_v40, %v8048_v18  ;;  %v2869_v15 = vrot.slane %v2855_v1, %v8048_v18  ;;  %v1598_v39 = vrot.slane %v1584_v32, %v8048_v18  ;;  %v666_v19 = vrot.slane %v664_v33, 2 }
  0x1d   :  { %4043 = vrot.lane.b32.xlu1 %v3970_v45, %s7949_s23  ;;  %1991 = vrot.lane.b32.xlu0 %v1582_v4, %s7950_s24  ;;  %v662_v41 = vsel %vm8076_vm6, %v660_v9, %v661_v62  ;;  %v665_v42 = vsel %vm8076_vm6, %v663_v10, %v664_v33  ;;  %v655_v43 = vsel %vm8076_vm6, %v8092_v34, %v654_v23  ;;  %v669_v61 = vrot.slane %v667_v21, 2 }
  0x1e   :  { %v2870_v44 = vcombine.low %v2862_v12, %v2869_v15  ;;  %v1599_v46 = vcombine.low %v1591_v2, %v1598_v39  ;;  %v8239_v45 = vsel %vm8076_vm6, %v666_v19, %v667_v21  ;;  %v1601_v47 = vcombine.low %v659_v8, %v662_v41 }
  0x1f   :  { %v1617_v48 = vcombine.low %v665_v42, %v8239_v45  ;;  %v2871_v49 = vcombine.low %v655_v43, %v659_v8  ;;  %v2872_v50 = vcombine.low %v662_v41, %v665_v42  ;;  %v7606_v51 = vcombine.high %v8024_v7, %v8081_v31 }
  0x20   :  { %v1615_v52 = vrot.slane %v1601_v47, %v8048_v18  ;;  %v1600_v27 = vcombine.low %v652_v22, %v655_v43  ;;  %v196_v23 = vrot.slane %v8045_v17, %v8048_v18  ;;  %v203_v34 = vrot.slane %v189_v24, %v8048_v18 }
  0x21   :  { %3279 = vrot.lane.b32.xlu1 %v2870_v44, %s7951_s25  ;;  %1993 = vrot.lane.b32.xlu0 %v1599_v46, %s7950_s24  ;;  %v8254_v35 = vrot.slane %v1617_v48, %v8048_v18  ;;  %v2879_v31 = vrot.slane %v2871_v49, %v8048_v18  ;;  %v2886_v53 = vrot.slane %v2872_v50, %v8048_v18  ;;  %vm4144_vm9 = vcmask 130048  }
  0x22   :  { %v3362_v54 = vrot.slane %v7606_v51, %v8048_v18  ;;  %v1608_v58 = vrot.slane %v1600_v27, %v8048_v18  ;;  %v204_v59 = vcombine.high %v196_v23, %v196_v23  ;;  %v1168_v17 = vcombine.low %v8035_v13, %v196_v23 }
  0x23   :  { %v3790_v24 = vcombine.low %v1615_v52, %v8254_v35  ;;  %v2887_v60 = vcombine.low %v2879_v31, %v2886_v53  ;;  %v8262_v36 = vcombine.high %v203_v34, %v203_v34  ;;  %v2108_v63 = vrot.slane %v2100_v25, %v8048_v18  ;;  %v8285_v25 = vld.sshfl [vmem:[%s12440_s0 + $0x38] sm:$0x33 pattern:$0x76325410] }
  0x24   :  { %v3363_v5 = vcombine.low %v3362_v54, %v8157_v0  ;;  %v1616_v16 = vcombine.low %v1608_v58, %v1615_v52  ;;  %v1184_v62 = vcombine.low %v204_v59, %v203_v34  ;;  %v8274_v20 = vrot.slane %v1168_v17, %v8048_v18 }
  0x25   :  { %3895 = vrot.lane.b32.xlu1 %v3790_v24, %s7952_s26  ;;  %3281 = vrot.lane.b32.xlu0 %v2887_v60, %s7951_s25  ;;  %v599_v21 = vcombine.high %v8035_v13, %v8035_v13  ;;  %v7571_v22 = vrot.slane %v196_v23, 9  ;;  %v674_v33 = vrot.slane %v204_v59, 7  ;;  %v677_v1 = vrot.slane %v203_v34, 7 }
  0x26   :  { %12555 = vst [vmem:[#allocation4_spill] sm:$0xff] %v8274_v20  ;;  %v8279_v40 = vrot.slane %v1184_v62, %v8048_v18  ;;  %v680_v7 = vrot.slane %v8262_v36, 7  ;;  %v2584_v14 = vcombine.low %v196_v23, %v204_v59  ;;  %v7597_v8 = vcombine.high %v8035_v13, %v196_v23 }
  0x27   :  { %v670_v32 = vrot.slane %v599_v21, 7  ;;  %v675_v2 = vsel %vm8076_vm6, %v7571_v22, %v674_v33  ;;  %v676_v4 = vrot.slane %v674_v33, 2  ;;  %v2116_v9 = vcombine.low %v2108_v63, %v8165_v3  ;;  %v37_v3 = vld [vmem:[%s12440_s0 + $0x40] sm:$0xff] }
  0x28   :  { %12556 = vst [vmem:[#allocation5_spill] sm:$0xff] %v8279_v40  ;;  %v679_v10 = vrot.slane %v677_v1, 2  ;;  %v2591_v12 = vrot.slane %v2584_v14, %v8048_v18  ;;  %v2134_v15 = vcombine.low %v203_v34, %v8262_v36  ;;  %v3631_v39 = vcombine.low %v8274_v20, %v8279_v40 }
  0x29   :  { %3557 = vrot.lane.b32.xlu1 %v3363_v5, %s7947_s21  ;;  %1995 = vrot.lane.b32.xlu0 %v1616_v16, %s7950_s24  ;;  %v671_v19 = vsel %vm8076_vm6, %v669_v61, %v670_v32  ;;  %v678_v41 = vsel %vm8076_vm6, %v676_v4, %v677_v1  ;;  %v683_v42 = vrot.slane %v8285_v25, 7  ;;  %v8311_v47 = vrot.slane %v7597_v8, %v8048_v18 }
  0x2a   :  { %v8307_v43 = vsel %vm8076_vm6, %v679_v10, %v680_v7  ;;  %v1618_v44 = vcombine.low %v671_v19, %v675_v2  ;;  %v2592_v46 = vcombine.low %v8173_v11, %v2591_v12  ;;  %v8315_v49 = vrot.slane %v2134_v15, %v8048_v18  ;;  %v8373_v12 = vld [vmem:[%s12440_s0 + $0x50] sm:$0xff] }
  0x2b   :  { %v1634_v48 = vcombine.low %v678_v41, %v8307_v43  ;;  %v2888_v50 = vcombine.low %v8239_v45, %v671_v19  ;;  %v2889_v51 = vcombine.low %v675_v2, %v678_v41  ;;  %v3364_v27 = vcombine.low %v8035_v13, %v599_v21 }
  0x2c   :  { %v1632_v52 = vrot.slane %v1618_v44, %v8048_v18  ;;  %v213_v23 = vcombine.high %v37_v3, %v37_v3  ;;  %v8321_v34 = vrot.slane %v37_v3, %v8048_v18  ;;  %v682_v58 = vrot.slane %v680_v7, 2 }
  0x2d   :  { %3717 = vrot.lane.b32.xlu1 %v3631_v39, %s7948_s22  ;;  %2495 = vrot.lane.b32.xlu0 %v2116_v9, %s7946_s20  ;;  %v8326_v31 = vrot.slane %v1634_v48, %v8048_v18  ;;  %v2896_v53 = vrot.slane %v2888_v50, %v8048_v18  ;;  %v2903_v45 = vrot.slane %v2889_v51, %v8048_v18  ;;  %v685_v24 = vrot.slane %v683_v42, 2  ;;  %v8389_v48 = vld.sshfl [vmem:[%s12440_s0 + $0x48] sm:$0x33 pattern:$0x76325410] }
  0x2e   :  { %v228_v54 = vcombine.high %v8321_v34, %v8321_v34  ;;  %v3971_v59 = vcombine.low %v8311_v47, %v8315_v49  ;;  %v8336_v17 = vrot.slane %v213_v23, %v8048_v18  ;;  %v3371_v61 = vrot.slane %v3364_v27, %v8048_v18 }
  0x2f   :  { %v3791_v13 = vcombine.low %v1632_v52, %v8326_v31  ;;  %v2904_v60 = vcombine.low %v2896_v53, %v2903_v45  ;;  %v1185_v5 = vcombine.low %v8262_v36, %v8285_v25  ;;  %v600_v16 = vcombine.high %v8285_v25, %v8285_v25 }
  0x30   :  { %v1201_v62 = vcombine.low %v8321_v34, %v228_v54  ;;  %v7572_v63 = vrot.slane %v8321_v34, 9  ;;  %v690_v21 = vrot.slane %v228_v54, 7  ;;  %v693_v22 = vrot.slane %v8336_v17, 7 }
  0x31   :  { %3897 = vrot.lane.b32.xlu1 %v3791_v13, %s7952_s26  ;;  %2783 = vrot.lane.b32.xlu0 %v2592_v46, %s7945_s19  ;;  %v684_v33 = vsel %vm8076_vm6, %v682_v58, %v683_v42  ;;  %v686_v1 = vrot.slane %v600_v16, 7  ;;  %v1633_v36 = vcombine.low %v8254_v35, %v1632_v52  ;;  %v3372_v32 = vcombine.low %v3371_v61, %v8279_v40 }
  0x32   :  { %v691_v7 = vsel %vm8076_vm6, %v7572_v63, %v690_v21  ;;  %v692_v14 = vrot.slane %v690_v21, 2  ;;  %v8355_v2 = vrot.slane %v1185_v5, %v8048_v18  ;;  %v2593_v8 = vcombine.low %v8285_v25, %v8321_v34 }
  0x33   :  { %v687_v4 = vsel %vm8076_vm6, %v685_v24, %v686_v1  ;;  %v8364_v35 = vrot.slane %v1201_v62, %v8048_v18  ;;  %v2135_v39 = vcombine.low %v8285_v25, %v600_v16  ;;  %v2151_v19 = vcombine.low %v228_v54, %v8336_v17  ;;  %v55_v16 = vld [vmem:[%s12440_s0 + $0xd0] sm:$0xff] }
  0x34   :  { %12557 = vst [vmem:[#allocation6_spill] sm:$0xff] %v8355_v2  ;;  %v8368_v9 = vsel %vm8076_vm6, %v692_v14, %v693_v22  ;;  %v1635_v10 = vcombine.low %v684_v33, %v687_v4  ;;  %v2905_v41 = vcombine.low %v8307_v43, %v684_v33  ;;  %v2906_v3 = vcombine.low %v687_v4, %v691_v7 }
  0x35   :  { %4045 = vrot.lane.b32.xlu1 %v3971_v59, %s7949_s23  ;;  %3283 = vrot.lane.b32.xlu0 %v2904_v60, %s7951_s25  ;;  %12558 = vst [vmem:[#allocation7_spill] sm:$0xff] %v8364_v35  ;;  %v1651_v15 = vcombine.low %v691_v7, %v8368_v9  ;;  %v8381_v42 = vcombine.high %v8336_v17, %v8336_v17  ;;  %v695_v59 = vrot.slane %v693_v22, 2  ;;  %v8442_v22 = vld.sshfl [vmem:[%s12440_s0 + $0xd8] sm:$0x33 pattern:$0x76325410] }
  0x36   :  { %v2133_v44 = vcombine.low %v8173_v11, %v8311_v47  ;;  %v2600_v46 = vrot.slane %v2593_v8, %v8048_v18  ;;  %v8393_v50 = vrot.slane %v8373_v12, %v8048_v18  ;;  %v3632_v43 = vcombine.low %v8355_v2, %v8364_v35 }
  0x37   :  { %v8400_v11 = vrot.slane %v1635_v10, %v8048_v18  ;;  %v8403_v47 = vrot.slane %v1651_v15, %v8048_v18  ;;  %v696_v51 = vrot.slane %v8381_v42, 7  ;;  %v8407_v52 = vrot.slane %v2135_v39, %v8048_v18 }
  0x38   :  { %v7607_v27 = vcombine.high %v8285_v25, %v8321_v34  ;;  %v8413_v23 = vcombine.high %v8393_v50, %v8393_v50  ;;  %v8416_v53 = vrot.slane %v2151_v19, %v8048_v18  ;;  %v2913_v45 = vrot.slane %v2905_v41, %v8048_v18 }
  0x39   :  { %3559 = vrot.lane.b32.xlu1 %v3372_v32, %s7947_s21  ;;  %1997 = vrot.lane.b32.xlu0 %v1633_v36, %s7950_s24  ;;  %v2920_v54 = vrot.slane %v2906_v3, %v8048_v18  ;;  %v8422_v58 = vcombine.high %v8389_v48, %v8389_v48  ;;  %v2601_v13 = vcombine.low %v8315_v49, %v2600_v46  ;;  %v698_v24 = vrot.slane %v696_v51, 2 }
  0x3a   :  { %v699_v25 = vrot.slane %v8389_v48, 7  ;;  %v3792_v34 = vcombine.low %v8400_v11, %v8403_v47  ;;  %v7573_v61 = vrot.slane %v8393_v50, 9  ;;  %v706_v5 = vrot.slane %v8413_v23, 7 }
  0x3b   :  { %v702_v60 = vrot.slane %v8422_v58, 7  ;;  %v3380_v62 = vrot.slane %v7607_v27, %v8048_v18  ;;  %v1202_v63 = vcombine.low %v8336_v17, %v8381_v42  ;;  %v3972_v33 = vcombine.low %v8407_v52, %v8416_v53 }
  0x3c   :  { %v701_v21 = vrot.slane %v699_v25, 2  ;;  %v2921_v1 = vcombine.low %v2913_v45, %v2920_v54  ;;  %v1650_v36 = vcombine.low %v8326_v31, %v8400_v11  ;;  %v2150_v7 = vcombine.low %v8315_v49, %v8407_v52 }
  0x3d   :  { %3719 = vrot.lane.b32.xlu1 %v3632_v43, %s7948_s22  ;;  %2497 = vrot.lane.b32.xlu0 %v2133_v44, %s7946_s20  ;;  %v697_v14 = vsel %vm8076_vm6, %v695_v59, %v696_v51  ;;  %v700_v17 = vsel %vm8076_vm6, %v698_v24, %v699_v25  ;;  %v381_v32 = vcombine.high %v55_v16, %v55_v16  ;;  %v811_v10 = vrot.slane %v8442_v22, 7 }
  0x3e   :  { %v8455_v4 = vrot.slane %v55_v16, %v8048_v18  ;;  %v1218_v31 = vcombine.low %v8389_v48, %v8393_v50  ;;  %v703_v49 = vsel %vm8076_vm6, %v701_v21, %v702_v60  ;;  %v8467_v8 = vsel %vm8076_vm6, %v7573_v61, %v706_v5 }
  0x3f   :  { %v3381_v15 = vcombine.low %v8355_v2, %v3380_v62  ;;  %v8472_v39 = vrot.slane %v1202_v63, %v8048_v18  ;;  %v8475_v19 = vrot.slane %v381_v32, %v8048_v18  ;;  %v1652_v3 = vcombine.low %v697_v14, %v700_v17 }
  0x40   :  { %12559 = vst [vmem:[#allocation8_spill] sm:$0xff] %v8455_v4  ;;  %v8479_v41 = vcombine.high %v8455_v4, %v8455_v4  ;;  %v2152_v44 = vcombine.low %v8381_v42, %v8389_v48  ;;  %v8485_v46 = vcombine.high %v8442_v22, %v8442_v22  ;;  %v7579_v43 = vrot.slane %v8455_v4, 9  ;;  %v4333_v4 = vld [vmem:[%s12441_s2 + $0x38] sm:$0xff] }
  0x41   :  { %3899 = vrot.lane.b32.xlu1 %v3792_v34, %s7952_s26  ;;  %2785 = vrot.lane.b32.xlu0 %v2601_v13, %s7945_s19  ;;  %12560 = vst [vmem:[#allocation9_spill] sm:$0xff] %v8472_v39  ;;  %12561 = vst [vmem:[#allocation10_spill] sm:$0xff] %v8475_v19  ;;  %v1668_v11 = vcombine.low %v703_v49, %v8467_v8  ;;  %v8491_v51 = vcombine.high %v8475_v19, %v8475_v19  ;;  %v805_v27 = vrot.slane %v8475_v19, 7  ;;  %vm4170_vm10 = vcmask 195584  }
  0x42   :  { %12562 = vst [vmem:[#allocation11_spill] sm:$0xff] %v8479_v41  ;;  %v802_v52 = vrot.slane %v8479_v41, 7  ;;  %v8498_v42 = vrot.slane %v1218_v31, %v8048_v18  ;;  %v7598_v45 = vcombine.high %v8389_v48, %v8393_v50  ;;  %v2922_v54 = vcombine.low %v8368_v9, %v697_v14  ;;  %v57_v9 = vld [vmem:[%s12440_s0 + $0xe0] sm:$0xff] }
  0x43   :  { %12563 = vst [vmem:[#allocation12_spill] sm:$0xff] %v8491_v51  ;;  %v813_v13 = vrot.slane %v811_v10, 2  ;;  %v807_v25 = vrot.slane %v805_v27, 2  ;;  %v814_v34 = vrot.slane %v8485_v46, 7  ;;  %v2166_v60 = vrot.slane %v2152_v44, %v8048_v18 }
  0x44   :  { %12564 = vst [vmem:[#allocation13_spill] sm:$0xff] %v8498_v42  ;;  %v8505_v59 = vsel %vm8076_vm6, %v7579_v43, %v802_v52  ;;  %v804_v24 = vrot.slane %v802_v52, 2  ;;  %v2923_v61 = vcombine.low %v700_v17, %v703_v49  ;;  %v808_v16 = vrot.slane %v8491_v51, 7 }
  0x45   :  { %4047 = vrot.lane.b32.xlu1 %v3972_v33, %s7949_s23  ;;  %3285 = vrot.lane.b32.xlu0 %v2921_v1, %s7951_s25  ;;  %12565 = vst [vmem:[#allocation14_spill] sm:$0xff] %v8505_v59  ;;  %v237_v62 = vcombine.high %v8373_v12, %v8373_v12  ;;  %v8516_v63 = vrot.slane %v1652_v3, %v8048_v18  ;;  %vm4196_vm11 = vcmask 261120   ;;  %vm4222_vm12 = vcmask 326656  }
  0x46   :  { %v8519_v21 = vrot.slane %v1668_v11, %v8048_v18  ;;  %v8523_v33 = vsel %vm8076_vm6, %v804_v24, %v805_v27  ;;  %v3382_v1 = vcombine.low %v8389_v48, %v8422_v58  ;;  %v3633_v12 = vcombine.low %v8472_v39, %v8498_v42 }
  0x47   :  { %12566 = vst [vmem:[#allocation15_spill] sm:$0xff] %v8523_v33  ;;  %v8532_v14 = vrot.slane %v7598_v45, %v8048_v18  ;;  %v810_v17 = vrot.slane %v808_v16, 2  ;;  %v8538_v31 = vsel %vm8076_vm6, %v807_v25, %v808_v16  ;;  %v8542_v48 = vsel %vm8076_vm6, %v813_v13, %v814_v34  ;;  %v8587_v34 = vld.sshfl [vmem:[%s12440_s0 + $0x58] sm:$0x33 pattern:$0x76325410] }
  0x48   :  { %12567 = vst [vmem:[#allocation16_spill] sm:$0xff] %v8538_v31  ;;  %12568 = vst [vmem:[#allocation17_spill] sm:$0xff] %v8542_v48  ;;  %v8545_v58 = vrot.slane %v237_v62, %v8048_v18  ;;  %v8548_v49 = vcombine.low %v8416_v53, %v2166_v60  ;;  %v2937_v3 = vrot.slane %v2923_v61, %v8048_v18  ;;  %vm4248_vm13 = vcmask 392192  }
  0x49   :  { %3561 = vrot.lane.b32.xlu1 %v3381_v15, %s7947_s21  ;;  %1999 = vrot.lane.b32.xlu0 %v1650_v36, %s7950_s24  ;;  %v405_v36 = vcombine.high %v57_v9, %v57_v9  ;;  %v2930_v15 = vrot.slane %v2922_v54, %v8048_v18  ;;  %v8554_v44 = vsel %vm8076_vm6, %v810_v17, %v811_v10  ;;  %vm4274_vm14 = vcmask 457728  }
  0x4a   :  { %12569 = vst [vmem:[#allocation18_spill] sm:$0xff] %v8554_v44  ;;  %v3793_v43 = vcombine.low %v8516_v63, %v8519_v21  ;;  %v8561_v52 = vrot.slane %v3382_v1, %v8048_v18  ;;  %v2304_v53 = vcombine.low %v8475_v19, %v8491_v51  ;;  %v1804_v10 = vcombine.low %v8523_v33, %v8538_v31 }
  0x4b   :  { %v1805_v27 = vcombine.low %v8554_v44, %v8542_v48  ;;  %v8572_v45 = vrot.slane %v57_v9, %v8048_v18  ;;  %v253_v54 = vcombine.high %v8545_v58, %v8545_v58  ;;  %v2305_v13 = vcombine.low %v8442_v22, %v8485_v46  ;;  %v8820_v48 = vld.sshfl [vmem:[%s12440_s0 + $0x68] sm:$0x33 pattern:$0x76325410] }
  0x4c   :  { %v8579_v24 = vrot.slane %v405_v36, %v8048_v18  ;;  %v1667_v25 = vcombine.low %v8403_v47, %v8516_v63  ;;  %v709_v61 = vrot.slane %v8545_v58, 7  ;;  %v2938_v16 = vcombine.low %v2930_v15, %v2937_v3  ;;  %v8618_v15 = vld.sshfl [vmem:[%s12440_s0 + $0xe8] sm:$0x33 pattern:$0x76325410] }
  0x4d   :  { %3721 = vrot.lane.b32.xlu1 %v3633_v12, %s7948_s22  ;;  %2499 = vrot.lane.b32.xlu0 %v2150_v7, %s7946_s20  ;;  %12570 = vst [vmem:[#allocation19_spill] sm:$0xff] %v8572_v45  ;;  %v3973_v7 = vcombine.low %v2166_v60, %v8532_v14  ;;  %v3390_v62 = vcombine.low %v8472_v39, %v8561_v52  ;;  %v712_v63 = vrot.slane %v253_v54, 7  ;;  %v715_v36 = vrot.slane %v8587_v34, 7  ;;  %v8841_v39 = vld [vmem:[%s12441_s2 + $0x30] sm:$0xff] }
  0x4e   :  { %v1219_v22 = vcombine.low %v8413_v23, %v8545_v58  ;;  %v8595_v46 = vrot.slane %v2304_v53, %v8048_v18  ;;  %v1812_v47 = vrot.slane %v1804_v10, %v8048_v18  ;;  %v1819_v60 = vrot.slane %v1805_v27, %v8048_v18 }
  0x4f   :  { %v8604_v9 = vcombine.high %v8572_v45, %v8572_v45  ;;  %v1235_v1 = vcombine.low %v253_v54, %v8587_v34  ;;  %v8608_v12 = vrot.slane %v2305_v13, %v8048_v18  ;;  %v8612_v17 = vcombine.high %v8579_v24, %v8579_v24 }
  0x50   :  { %12571 = vst [vmem:[#allocation20_spill] sm:$0xff] %v8595_v46  ;;  %v2602_v3 = vcombine.low %v8393_v50, %v8413_v23  ;;  %v711_v52 = vrot.slane %v709_v61, 2  ;;  %v8626_v53 = vcombine.high %v8587_v34, %v8587_v34  ;;  %v8629_v10 = vrot.slane %v1219_v22, %v8048_v18 }
  0x51   :  { %3901 = vrot.lane.b32.xlu1 %v3793_v43, %s7952_s26  ;;  %2787 = vrot.lane.b32.xlu0 %v8548_v49, %s7945_s19  ;;  %12572 = vst [vmem:[#allocation21_spill] sm:$0xff] %v8604_v9  ;;  %v708_v43 = vrot.slane %v706_v5, 2  ;;  %v2169_v27 = vcombine.low %v8545_v58, %v253_v54  ;;  %v714_v13 = vrot.slane %v712_v63, 2  ;;  %v717_v32 = vrot.slane %v715_v36, 2 }
  0x52   :  { %12573 = vst [vmem:[#allocation22_spill] sm:$0xff] %v8629_v10  ;;  %v1820_v50 = vcombine.low %v1812_v47, %v1819_v60  ;;  %v2321_v23 = vcombine.low %v8604_v9, %v8579_v24  ;;  %v718_v5 = vrot.slane %v8626_v53, 7  ;;  %v8639_v11 = vcombine.high %v8618_v15, %v8618_v15 }
  0x53   :  { %v8642_v22 = vrot.slane %v1235_v1, %v8048_v18  ;;  %v2322_v58 = vcombine.low %v8612_v17, %v8618_v15  ;;  %v818_v54 = vrot.slane %v8604_v9, 7  ;;  %v713_v47 = vsel %vm8076_vm6, %v711_v52, %v712_v63 }
  0x54   :  { %v824_v60 = vrot.slane %v8612_v17, 7  ;;  %v827_v6 = vrot.slane %v8618_v15, 7  ;;  %v716_v1 = vsel %vm8076_vm6, %v714_v13, %v715_v36  ;;  %v8658_v33 = vsel %vm8076_vm6, %v717_v32, %v718_v5 }
  0x55   :  { %4049 = vrot.lane.b32.xlu1 %v3973_v7, %s7949_s23  ;;  %3287 = vrot.lane.b32.xlu0 %v2938_v16, %s7951_s25  ;;  %12574 = vst [vmem:[#allocation23_spill] sm:$0xff] %v8642_v22  ;;  %v821_v7 = vrot.slane %v8579_v24, 7  ;;  %v710_v16 = vsel %vm8076_vm6, %v708_v43, %v709_v61  ;;  %v820_v59 = vrot.slane %v818_v54, 2  ;;  %v2320_v61 = vcombine.low %v8595_v46, %v8608_v12 }
  0x56   :  { %v826_v63 = vrot.slane %v824_v60, 2  ;;  %v829_v43 = vrot.slane %v827_v6, 2  ;;  %v830_v52 = vrot.slane %v8639_v11, 7  ;;  %v8666_v31 = vrot.slane %v2321_v23, %v8048_v18 }
  0x57   :  { %v823_v44 = vrot.slane %v821_v7, 2  ;;  %v8669_v36 = vrot.slane %v2169_v27, %v8048_v18  ;;  %v2609_v32 = vrot.slane %v2602_v3, %v8048_v18  ;;  %v2939_v13 = vcombine.low %v8467_v8, %v710_v16 }
  0x58   :  { %12575 = vst [vmem:[#allocation24_spill] sm:$0xff] %v8666_v31  ;;  %v1669_v5 = vcombine.low %v710_v16, %v713_v47  ;;  %v7580_v12 = vrot.slane %v8572_v45, 9  ;;  %v8677_v46 = vcombine.low %v8629_v10, %v8642_v22  ;;  %v8680_v23 = vrot.slane %v2322_v58, %v8048_v18 }
  0x59   :  { %2019 = vrot.lane.b32.xlu1 %v1820_v50, %s7950_s24  ;;  %2001 = vrot.lane.b32.xlu0 %v1667_v25, %s7950_s24  ;;  %v2940_v50 = vcombine.low %v713_v47, %v716_v1  ;;  %v1685_v25 = vcombine.low %v716_v1, %v8658_v33  ;;  %v822_v27 = vsel %vm8076_vm6, %v820_v59, %v821_v7  ;;  %v41_v1 = vld [vmem:[%s12440_s0 + $0x60] sm:$0xff]  ;;  %v12583_v45 = vmov 0.0  }
  0x5a   :  { %12576 = vst [vmem:[#allocation25_spill] sm:$0xff] %v8680_v23  ;;  %v825_v3 = vsel %vm8076_vm6, %v823_v44, %v824_v60  ;;  %v828_v8 = vsel %vm8076_vm6, %v826_v63, %v827_v6  ;;  %v8693_v16 = vsel %vm8076_vm6, %v829_v43, %v830_v52  ;;  %v8697_v58 = vsel %vm8076_vm6, %v7580_v12, %v818_v54  ;;  %v59_v54 = vld [vmem:[%s12440_s0 + $0xf0] sm:$0xff] }
  0x5b   :  { %12577 = vst [vmem:[#allocation26_spill] sm:$0xff] %v8697_v58  ;;  %v2947_v59 = vrot.slane %v2939_v13, %v8048_v18  ;;  %v8707_v6 = vrot.slane %v1685_v25, %v8048_v18  ;;  %v2185_v7 = vcombine.low %v8587_v34, %v8626_v53  ;;  %v3092_v47 = vcombine.low %v822_v27, %v825_v3 }
  0x5c   :  { %v3093_v60 = vcombine.low %v828_v8, %v8693_v16  ;;  %v8723_v63 = vcombine.low %v8666_v31, %v8680_v23  ;;  %v2610_v53 = vcombine.low %v2609_v32, %v8669_v36  ;;  %v429_v43 = vcombine.high %v59_v54, %v59_v54  ;;  %7774 = vmatprep.mubr.msk.f32.mxu0 %vm7954_vm7, %v12583_v45 }
  0x5d   :  { %2501 = vrot.lane.b32.xlu1 %v8548_v49, %s7946_s20  ;;  %3563 = vrot.lane.b32.xlu0 %v3390_v62, %s7947_s21  ;;  %v2954_v49 = vrot.slane %v2940_v50, %v8048_v18  ;;  %v8704_v62 = vrot.slane %v1669_v5, %v8048_v18  ;;  %v8729_v50 = vrot.slane %v2185_v7, %v8048_v18  ;;  %vm4300_vm15 = vcmask 523264  }
  0x5e   :  { %v261_v5 = vcombine.high %v41_v1, %v41_v1  ;;  %v3100_v25 = vrot.slane %v3092_v47, %v8048_v18  ;;  %v3107_v12 = vrot.slane %v3093_v60, %v8048_v18  ;;  %v1372_v44 = vcombine.low %v8579_v24, %v8612_v17  ;;  %7816 = vmatprep.mubr.msk.f32.mxu1 %vm7954_vm7, %v12583_v45 }
  0x5f   :  { %v2955_v52 = vcombine.low %v2947_v59, %v2954_v49  ;;  %v3794_v13 = vcombine.low %v8704_v62, %v8707_v6  ;;  %v1821_v32 = vcombine.low %v8697_v58, %v822_v27  ;;  %v3464_v59 = vcombine.low %v8618_v15, %v8639_v11 }
  0x60   :  { %v8742_v49 = vrot.slane %v59_v54, %v8048_v18  ;;  %v8745_v7 = vrot.slane %v429_v43, %v8048_v18  ;;  %v8751_v24 = vrot.slane %v261_v5, %v8048_v18  ;;  %v3974_v17 = vcombine.low %v8669_v36, %v8729_v50 }
  0x61   :  { %3723 = vrot.lane.b32.xlu1 %v8677_v46, %s7948_s22  ;;  %2519 = vrot.lane.b32.xlu0 %v2320_v61, %s7946_s20  ;;  %v1822_v61 = vcombine.low %v825_v3, %v828_v8  ;;  %v8748_v3 = vrot.slane %v41_v1, %v8048_v18  ;;  %v3108_v8 = vcombine.low %v3100_v25, %v3107_v12  ;;  %v8774_v1 = vld.sshfl [vmem:[%s12440_s0 + $0xf8] sm:$0x33 pattern:$0x76325410]  ;;  %v12594_v2 = vrot.slane %v8820_v48, 7 }
  0x62   :  { %12578 = vst [vmem:[#allocation27_spill] sm:$0xff] %v8742_v49  ;;  %v8759_v11 = vrot.slane %v1372_v44, %v8048_v18  ;;  %v8764_v54 = vrot.slane %v1821_v32, %v8048_v18  ;;  %v3471_v47 = vrot.slane %v3464_v59, %v8048_v18  ;;  %v8769_v60 = vcombine.high %v8742_v49, %v8742_v49 }
  0x63   :  { %v8756_v27 = vrot.slane %v1822_v61, %v8048_v18  ;;  %v445_v44 = vcombine.high %v8745_v7, %v8745_v7  ;;  %v8782_v43 = vcombine.high %v8748_v3, %v8748_v3  ;;  %v8791_v5 = vcombine.high %v8774_v1, %v8774_v1 }
  0x64   :  { %12580 = vst [vmem:[#allocation29_spill] sm:$0xff] %v8759_v11  ;;  %12581 = vst [vmem:[#allocation30_spill] sm:$0xff] %v8764_v54  ;;  %v837_v12 = vrot.slane %v8745_v7, 7  ;;  %v3472_v32 = vcombine.low %v8759_v11, %v3471_v47  ;;  %v1389_v59 = vcombine.low %v8769_v60, %v8745_v7  ;;  %v2611_v25 = vcombine.low %v8587_v34, %v8748_v3 }
  0x65   :  { %2807 = vrot.lane.b32.xlu1 %v8723_v63, %s7945_s19  ;;  %2789 = vrot.lane.b32.xlu0 %v2610_v53, %s7945_s19  ;;  %12579 = vst [vmem:[#allocation28_spill] sm:$0xff] %v8756_v27  ;;  %v1684_v53 = vcombine.low %v8519_v21, %v8704_v62  ;;  %v840_v61 = vrot.slane %v445_v44, 7  ;;  %v4334_v21 = vld [vmem:[%s12441_s2 + $0x40] sm:$0xff]  ;;  %v1837_v62 = vcombine.low %v8764_v54, %v8756_v27  ;;  %v722_v23 = vrot.slane %v8782_v43, 7 }
  0x66   :  { %v725_v31 = vrot.slane %v8751_v24, 7  ;;  %v1236_v47 = vcombine.low %v8748_v3, %v8782_v43  ;;  %v839_v42 = vrot.slane %v837_v12, 2  ;;  %v846_v11 = vrot.slane %v8791_v5, 7 }
  0x67   :  { %v842_v10 = vrot.slane %v840_v61, 2  ;;  %v8832_v9 = vrot.slane %v1389_v59, %v8048_v18  ;;  %v2339_v35 = vcombine.low %v8745_v7, %v445_v44  ;;  %v724_v51 = vrot.slane %v722_v23, 2 }
  0x68   :  { %v727_v41 = vrot.slane %v725_v31, 2  ;;  %v8848_v7 = vrot.slane %v1236_v47, %v8048_v18  ;;  %v2186_v19 = vcombine.low %v8782_v43, %v8751_v24  ;;  %v733_v0 = vrot.slane %v12594_v2, 2 }
  0x69   :  { %3289 = vrot.lane.b32.xlu1 %v2955_v52, %s7951_s25  ;;  %3903 = vrot.lane.b32.xlu0 %v3794_v13, %s7952_s26  ;;  %v8786_v52 = vcombine.high %v8751_v24, %v8751_v24  ;;  %v843_v13 = vrot.slane %v8774_v1, 7  ;;  %12584 = vst [vmem:[#allocation31_spill] sm:$0xff] %v8832_v9  ;;  %vm4335_vm1 = vcmask 588800   ;;  %vm5701_vm2 = vcmask 1041408  }
  0x6a   :  { %12586 = vst [vmem:[#allocation33_spill] sm:$0xff] %v8848_v7  ;;  %vm5712_vm3 = vcmask 1042432   ;;  %vm5723_vm4 = vcmask 1043456   ;;  %vm7485_vm5 = vcmask 719872  }
  0x6b   :  { %v728_v58 = vrot.slane %v8786_v52, 7  ;;  %v1252_v27 = vcombine.low %v8751_v24, %v8786_v52  ;;  %v845_v54 = vrot.slane %v843_v13, 2  ;;  %v8870_v24 = vld [vmem:[%s12441_s2 + $0x28] sm:$0xff] }
  0x6d   :  { %4051 = vrot.lane.b32.xlu1 %v3974_v17, %s7949_s23  ;;  %3307 = vrot.lane.b32.xlu0 %v3108_v8, %s7951_s25  ;;  %v12467_v17 = vmov 0.0   ;;  %v1405_v8 = vcombine.low %v445_v44, %v8774_v1  ;;  %v8851_v44 = vrot.slane %v1252_v27, %v8048_v18  ;;  %v8864_v47 = vsel %vm8076_vm6, %v845_v54, %v846_v11 }
  0x6e   :  { %7756 = vmatprep.subr.mxu0 %v12467_v17  ;;  %7876 = vmatprep.subr.mxu1 %v12467_v17  ;;  %v12582_v17 = vrot.slane %v8769_v60, 7  ;;  %v7581_v27 = vrot.slane %v8742_v49, 9  ;;  %v726_v54 = vsel %vm8076_vm6, %v724_v51, %v725_v31  ;;  %v729_v43 = vsel %vm8076_vm6, %v727_v41, %v728_v58  ;;  %v8901_v51 = vld [vmem:[%s12441_s2 + $0x20] sm:$0xff] }
  0x6f   :  { %7757 = vmatpush3.msra.mxu0 %v4334_v21  ;;  %7885 = vmatpush3.msra.mxu1 %v4334_v21  ;;  %v2690_v21 = vcombine.low %v8742_v49, %v8769_v60  ;;  %v8845_v59 = vrot.slane %v1405_v8, %v8048_v18  ;;  %12587 = vst [vmem:[#allocation34_spill] sm:$0xff] %v8851_v44 }
  0x70   :  { %v836_v22 = vrot.slane %v12582_v17, 2  ;;  %7758 = vmatprep.subr.mxu0 %v12583_v45  ;;  %v7574_v17 = vrot.slane %v8748_v3, 9  ;;  %v844_v8 = vsel %vm8076_vm6, %v842_v10, %v843_v13  ;;  %v8878_v10 = vrot.slane %v2339_v35, %v8048_v18  ;;  %7877 = vmatprep.subr.mxu1 %v12583_v45 }
  0x71   :  { %2021 = vrot.lane.b32.xlu1 %v1837_v62, %s7950_s24  ;;  %2003 = vrot.lane.b32.xlu0 %v1684_v53, %s7950_s24  ;;  %v730_v62 = vrot.slane %v728_v58, 2  ;;  %12585 = vst [vmem:[#allocation32_spill] sm:$0xff] %v8845_v59  ;;  %v841_v53 = vsel %vm8076_vm6, %v839_v42, %v840_v61  ;;  %v2184_v42 = vcombine.low %v8532_v14, %v8669_v36 }
  0x72   :  { %7759 = vmatpush3.msra.mxu0 %v4333_v4  ;;  %v838_v40 = vsel %vm8076_vm6, %v836_v22, %v837_v12  ;;  %v2697_v22 = vrot.slane %v2690_v21, %v8048_v18  ;;  %v723_v11 = vsel %vm8076_vm6, %v7574_v17, %v722_v23  ;;  %v2618_v35 = vrot.slane %v2611_v25, %v8048_v18 }
  0x73   :  { %7760 = vmatprep.subr.mxu0 %v12583_v45  ;;  %v1839_v36 = vcombine.low %v838_v40, %v841_v53  ;;  %v1855_v13 = vcombine.low %v844_v8, %v8864_v47  ;;  %v8905_v41 = vcombine.low %v8832_v9, %v8845_v59  ;;  %v3634_v31 = vcombine.low %v8848_v7, %v8851_v44 }
  0x74   :  { %7761 = vmatpush3.msra.mxu0 %v8841_v39  ;;  %v8910_v23 = vrot.slane %v2186_v19, %v8048_v18  ;;  %v1686_v58 = vcombine.low %v723_v11, %v726_v54  ;;  %v12589_v12 = vrot.slane %v8769_v60, 7  ;;  %v8927_v19 = vld [vmem:[%s12441_s2 + $0x18] sm:$0xff]  ;;  %7886 = vmatpush3.msra.mxu1 %v4333_v4  ;;  %v3110_v60 = vcombine.low %v841_v53, %v844_v8  ;;  %v8946_v4 = vld [vmem:[%s12441_s2 + $0x10] sm:$0xff] }
  0x75   :  { %3583 = vrot.lane.b32.xlu1 %v3472_v32, %s7947_s21  ;;  %3565 = vrot.lane.b32.xlu0 %v8677_v46, %s7947_s21  ;;  %v12588_v46 = vrot.slane %v8820_v48, 7  ;;  %v2698_v32 = vcombine.low %v2697_v22, %v8878_v10  ;;  %v8935_v21 = vrot.slane %v1855_v13, %v8048_v18  ;;  %v1117_v13 = vcombine.low %v8073_v29, %v8108_v38 }
  0x76   :  { %7762 = vmatprep.subr.mxu0 %v12583_v45  ;;  %v8922_v61 = vsel %vm8076_vm6, %v7581_v27, %v12589_v12  ;;  %7878 = vmatprep.subr.mxu1 %v12583_v45  ;;  %v2619_v53 = vcombine.low %v2618_v35, %v8910_v23  ;;  %v3124_v22 = vrot.slane %v3110_v60, %v8048_v18 }
  0x77   :  { %v8892_v14 = vsel %vm8076_vm6, %v730_v62, %v12588_v46  ;;  %7763 = vmatpush3.msra.mxu0 %v8870_v24  ;;  %v3109_v17 = vcombine.low %v8922_v61, %v838_v40  ;;  %v2956_v62 = vcombine.low %v8658_v33, %v723_v11  ;;  %v8954_v40 = vrot.slane %v1686_v58, %v8048_v18  ;;  %v8969_v11 = vld [vmem:[%s12441_s2 + $0x8] sm:$0xff] }
  0x78   :  { %7764 = vmatprep.subr.mxu0 %v12583_v45  ;;  %v1702_v25 = vcombine.low %v729_v43, %v8892_v14  ;;  %v2355_v27 = vcombine.low %v8774_v1, %v8791_v5  ;;  %7887 = vmatpush3.msra.mxu1 %v8841_v39  ;;  %v2202_v35 = vcombine.low %v8786_v52, %v8820_v48  ;;  %v61_v5 = vld [vmem:[%s12440_s0 + $0x100] sm:$0xff]  ;;  %v7937_v58 = vld.sshfl [vmem:[%s12440_s0 + $0x8] sm:$0x33 pattern:$0x76325410] }
  0x79   :  { %2521 = vrot.lane.b32.xlu1 %v8723_v63, %s7946_s20  ;;  %2503 = vrot.lane.b32.xlu0 %v2184_v42, %s7946_s20  ;;  %v8932_v63 = vrot.slane %v1839_v36, %v8048_v18  ;;  %v2957_v42 = vcombine.low %v726_v54, %v729_v43  ;;  %v3117_v54 = vrot.slane %v3109_v17, %v8048_v18  ;;  %v8992_v52 = vld [vmem:[%s12441_s2] sm:$0xff] }
  0x7a   :  { %7765 = vmatpush3.msra.mxu0 %v8901_v51  ;;  %v8957_v33 = vrot.slane %v1702_v25, %v8048_v18  ;;  %v2964_v43 = vrot.slane %v2956_v62, %v8048_v18  ;;  %v1116_v36 = vcombine.low %v8070_v28, %v8104_v37  ;;  %v1133_v25 = vcombine.low %v7937_v58, %v8064_v26 }
  0x7b   :  { %7766 = vmatprep.subr.mxu0 %v12583_v45  ;;  %v3844_v8 = vcombine.low %v8932_v63, %v8935_v21  ;;  %v2971_v46 = vrot.slane %v2957_v42, %v8048_v18  ;;  %v7608_v28 = vcombine.high %v8587_v34, %v8748_v3  ;;  %v9008_v38 = vrot.slane %v2355_v27, %v8048_v18  ;;  %v43_v3 = vld [vmem:[%s12440_s0 + $0x70] sm:$0xff] }
  0x7c   :  { %7767 = vmatpush3.msra.mxu0 %v8927_v19  ;;  %v3795_v39 = vcombine.low %v8954_v40, %v8957_v33  ;;  %7879 = vmatprep.subr.mxu1 %v12583_v45  ;;  %v3125_v12 = vcombine.low %v3117_v54, %v3124_v22  ;;  %v9013_v26 = vrot.slane %v2202_v35, %v8048_v18 }
  0x7d   :  { %3743 = vrot.lane.b32.xlu1 %v8905_v41, %s7948_s22  ;;  %3725 = vrot.lane.b32.xlu0 %v3634_v31, %s7948_s22  ;;  %v1838_v31 = vcombine.low %v8693_v16, %v8922_v61  ;;  %12590 = vst [vmem:[#allocation35_spill] sm:$0xff] %v9008_v38  ;;  %v453_v16 = vcombine.high %v61_v5, %v61_v5 }
  0x7e   :  { %7768 = vmatprep.subr.mxu0 %v12583_v45  ;;  %v7602_v34 = vcombine.high %v8618_v15, %v8742_v49  ;;  %7888 = vmatpush3.msra.mxu1 %v8870_v24  ;;  %v2972_v61 = vcombine.low %v2964_v43, %v2971_v46  ;;  %v9028_v60 = vrot.slane %v1117_v13, %v8048_v18 }
  0x7f   :  { %7769 = vmatpush3.msra.mxu0 %v8946_v4  ;;  %v9031_v15 = vrot.slane %v1838_v31, %v8048_v18  ;;  %v9034_v17 = vrot.slane %v1133_v25, %v8048_v18  ;;  %v9037_v24 = vrot.slane %v7608_v28, %v8048_v18  ;;  %v9040_v62 = vrot.slane %v61_v5, %v8048_v18 }
  0x80   :  { %7770 = vmatprep.subr.mxu0 %v12583_v45  ;;  %7880 = vmatprep.subr.mxu1 %v12583_v45  ;;  %v285_v22 = vcombine.high %v43_v3, %v43_v3  ;;  %v9051_v27 = vrot.slane %v43_v3, %v8048_v18  ;;  %v4008_v54 = vcombine.low %v8878_v10, %v9008_v38 }
  0x81   :  { %2809 = vrot.lane.b32.xlu1 %v2698_v32, %s7945_s19  ;;  %2791 = vrot.lane.b32.xlu0 %v2619_v53, %s7945_s19  ;;  %v9025_v32 = vrot.slane %v1116_v36, %v8048_v18  ;;  %12591 = vst [vmem:[#allocation36_spill] sm:$0xff] %v9031_v15  ;;  %v3975_v43 = vcombine.low %v8910_v23, %v9013_v26 }
  0x82   :  { %7771 = vmatpush3.msra.mxu0 %v8969_v11  ;;  %7889 = vmatpush3.msra.mxu1 %v8901_v51  ;;  %v1701_v46 = vcombine.low %v8707_v6, %v8954_v40  ;;  %v9063_v35 = vrot.slane %v7602_v34, %v8048_v18  ;;  %v9075_v6 = vld.sshfl [vmem:[%s12440_s0 + $0x108] sm:$0x33 pattern:$0x76325410]  ;;  %v1854_v40 = vcombine.low %v9031_v15, %v8932_v63 }
  0x83   :  { %v9003_v29 = vpop.permute.xlu1 %2779  ;;  %v9005_v37 = vpop.permute.xlu0 %2491  ;;  %7772 = vmatprep.subr.mxu0 %v12583_v45  ;;  %7881 = vmatprep.subr.mxu1 %v12583_v45  ;;  %v1132_v51 = vcombine.low %v9025_v32, %v9028_v60  ;;  %v9085_v13 = vcombine.high %v9040_v62, %v9040_v62  ;;  %v9097_v25 = vrot.slane %v285_v22, %v8048_v18  ;;  %v7582_v32 = vrot.slane %v9040_v62, 9 }
  0x84   :  { %7773 = vmatpush3.msra.mxu0 %v8992_v52  ;;  %12592 = vst [vmem:[#allocation37_spill] sm:$0xff] %v9063_v35  ;;  %7890 = vmatpush3.msra.mxu1 %v8927_v19  ;;  %v9101_v28 = vcombine.high %v9051_v27, %v9051_v27  ;;  %v9120_v22 = vcombine.high %v8820_v48, %v8820_v48 }
  0x85   :  { %3923 = vrot.lane.b32.xlu1 %v3844_v8, %s7952_s26  ;;  %3905 = vrot.lane.b32.xlu0 %v3795_v39, %s7952_s26  ;;  %v9048_v8 = vrot.slane %v453_v16, %v8048_v18  ;;  %v1253_v16 = vcombine.low %v8820_v48, %v9051_v27  ;;  %v741_v39 = vrot.slane %v9097_v25, 7 }
  0x86   :  { %7882 = vmatprep.subr.mxu1 %v12583_v45  ;;  %v1269_v15 = vcombine.low %v9101_v28, %v9097_v25 }
  0x87   :  { %v9043_v42 = vpop.permute.xlu1 %3555  ;;  %v9045_v53 = vpop.permute.xlu0 %2493  ;;  %v9094_v63 = vcombine.high %v9048_v8, %v9048_v8  ;;  %v853_v34 = vrot.slane %v9048_v8, 7  ;;  %7891 = vmatpush3.msra.mxu1 %v8946_v4  ;;  %v1406_v4 = vcombine.low %v9040_v62, %v9085_v13  ;;  %v9134_v36 = vrot.slane %v1253_v16, %v8048_v18 }
  0x88   :  { %7883 = vmatprep.subr.mxu1 %v12583_v45  ;;  %v2356_v59 = vcombine.low %v9085_v13, %v9048_v8 }
  0x89   :  { %3309 = vrot.lane.b32.xlu1 %v3125_v12, %s7951_s25  ;;  %3291 = vrot.lane.b32.xlu0 %v2972_v61, %s7951_s25  ;;  %v850_v12 = vrot.slane %v9085_v13, 7  ;;  %v2699_v61 = vcombine.low %v8774_v1, %v9040_v62  ;;  %v856_v60 = vrot.slane %v9094_v63, 7  ;;  %v1422_v3 = vcombine.low %v9048_v8, %v9094_v63  ;;  %12593 = vst [vmem:[#allocation38_spill] sm:$0xff] %v9134_v36 }
  0x8a   :  { %7892 = vmatpush3.msra.mxu1 %v8969_v11  ;;  %v855_v49 = vrot.slane %v853_v34, 2  ;;  %v734_v8 = vrot.slane %v9120_v22, 7  ;;  %v7575_v11 = vrot.slane %v9051_v27, 9 }
  0x8b   :  { %v9088_v31 = vpop.permute.xlu1 %3715  ;;  %v9090_v58 = vpop.permute.xlu0 %2781  ;;  %v852_v9 = vrot.slane %v850_v12, 2  ;;  %7884 = vmatprep.subr.mxu1 %v12583_v45  ;;  %v858_v20 = vrot.slane %v856_v60, 2 }
  0x8c   :  { %7893 = vmatpush3.msra.mxu1 %v8992_v52  ;;  %v9168_v52 = vrot.slane %v1269_v15, %v8048_v18 }
  0x8d   :  { %4071 = vrot.lane.b32.xlu1 %v4008_v54, %s7949_s23  ;;  %4053 = vrot.lane.b32.xlu0 %v3975_v43, %s7949_s23  ;;  %v9126_v54 = vcombine.high %v9097_v25, %v9097_v25  ;;  %v738_v43 = vrot.slane %v9101_v28, 7 }
  0x8e   :  { %7849 = vmatprep.subr.mxu1 %v12583_v45  ;;  %12597 = vst [vmem:[#allocation41_spill] sm:$0xff] %v9168_v52 }
  0x8f   :  { %v4044_v5 = vpop.permute.xlu1 %4043  ;;  %v1992_v19 = vpop.permute.xlu0 %1991  ;;  %v740_v13 = vrot.slane %v738_v43, 2 }
  0x90   :  { %v4119_v7 = vsel %vm4118_vm8, %v1132_v51, %v1992_v19  ;;  %v743_v19 = vrot.slane %v741_v39, 2 }
  0x91   :  { %v4145_v16 = vsel %vm4144_vm9, %v4119_v7, %v9005_v37  ;;  %2023 = vrot.lane.b32.xlu1 %v1854_v40, %s7950_s24  ;;  %2005 = vrot.lane.b32.xlu0 %v1701_v46, %s7950_s24  ;;  %v9156_v37 = vrot.slane %v1406_v4, %v8048_v18  ;;  %v9159_v46 = vrot.slane %v1422_v3, %v8048_v18 }
  0x92   :  { %v4171_v51 = vsel %vm4170_vm10, %v4145_v16, %v9003_v29  ;;  %v2620_v40 = vcombine.low %v9051_v27, %v9101_v28  ;;  %v851_v29 = vsel %vm8076_vm6, %v7582_v32, %v850_v12  ;;  %v854_v4 = vsel %vm8076_vm6, %v852_v9, %v853_v34 }
  0x93   :  { %v3280_v38 = vpop.permute.xlu1 %3279  ;;  %v1994_v7 = vpop.permute.xlu0 %1993  ;;  %12595 = vst [vmem:[#allocation39_spill] sm:$0xff] %v9156_v37  ;;  %12596 = vst [vmem:[#allocation40_spill] sm:$0xff] %v9159_v46  ;;  %v857_v3 = vsel %vm8076_vm6, %v855_v49, %v856_v60  ;;  %v12598_v28 = vcombine.low %v9037_v24, %v8851_v44  ;;  %v735_v49 = vsel %vm8076_vm6, %v733_v0, %v734_v8 }
  0x94   :  { %v4197_v16 = vsel %vm4196_vm11, %v4171_v51, %v3280_v38  ;;  %v12599_v38 = vrot.slane %v9075_v6, 7  ;;  %v742_v24 = vsel %vm8076_vm6, %v740_v13, %v741_v39  ;;  %v3674_v0 = vcombine.low %v9156_v37, %v9159_v46 }
  0x95   :  { %v4223_v2 = vsel %vm4222_vm12, %v4197_v16, %v9043_v42  ;;  %3585 = vrot.lane.b32.xlu1 %v8905_v41, %s7947_s21  ;;  %3567 = vrot.lane.b32.xlu0 %v12598_v28, %s7947_s21  ;;  %v739_v41 = vsel %vm8076_vm6, %v7575_v11, %v738_v43  ;;  %v12600_v42 = vrot.slane %v9126_v54, 7  ;;  %v9205_v32 = vrot.slane %v2356_v59, %v8048_v18 }
  0x96   :  { %v9186_v9 = vsel %vm8076_vm6, %v858_v20, %v12599_v38  ;;  %v4249_v15 = vsel %vm4248_vm13, %v4223_v2, %v9088_v31  ;;  %v2706_v31 = vrot.slane %v2699_v61, %v8048_v18  ;;  %v2627_v60 = vrot.slane %v2620_v40, %v8048_v18 }
  0x97   :  { %v9200_v12 = vsel %vm8076_vm6, %v743_v19, %v12600_v42  ;;  %v3896_v20 = vpop.permute.xlu1 %3895  ;;  %v3282_v34 = vpop.permute.xlu0 %3281  ;;  %v3635_v43 = vcombine.low %v9134_v36, %v9168_v52  ;;  %v1856_v8 = vcombine.low %v851_v29, %v854_v4  ;;  %v1872_v11 = vcombine.low %v857_v3, %v9186_v9 }
  0x98   :  { %v4275_v39 = vsel %vm4274_vm14, %v4249_v15, %v3896_v20  ;;  %v12601_v51 = vcombine.low %v9063_v35, %v8878_v10  ;;  %v12602_v59 = vcombine.low %v8729_v50, %v8910_v23  ;;  %v1703_v13 = vcombine.low %v735_v49, %v739_v41 }
  0x99   :  { %v4301_v61 = vsel %vm4300_vm15, %v4275_v39, %v4044_v5  ;;  %v1719_v19 = vcombine.low %v742_v24, %v9200_v12  ;;  %v12603_v2 = vcombine.low %v9034_v17, %v8142_v55  ;;  %v2707_v28 = vcombine.low %v2706_v31, %v9205_v32 }
  0x9a   :  { %2523 = vrot.lane.b32.xlu1 %v12601_v51, %s7946_s20  ;;  %2505 = vrot.lane.b32.xlu0 %v12602_v59, %s7946_s20  ;;  %v3126_v50 = vcombine.low %v8864_v47, %v851_v29  ;;  %v3127_v23 = vcombine.low %v854_v4, %v857_v3  ;;  %v2628_v5 = vcombine.low %v9013_v26, %v2627_v60 }
  0x9b   :  { %7775 = vmatmul.mubr.msk.f32.vlgmr.msra.gmra.mxu0 %vm4335_vm1, %v4301_v61  ;;  %v4120_v40 = vsel %vm4118_vm8, %v12603_v2, %v1994_v7  ;;  %v3558_v16 = vpop.permute.xlu1 %3557  ;;  %v9228_v10 = vpop.permute.xlu0 %1995  ;;  %v9236_v38 = vrot.slane %v1856_v8, %v8048_v18  ;;  %v2973_v55 = vcombine.low %v8892_v14, %v735_v49  ;;  %v2974_v17 = vcombine.low %v739_v41, %v742_v24 }
  0x9c   :  { %7777 = vmatprep.mubr.msk.f32.mxu0 %vm7954_vm7, %v12583_v45  ;;  %v9242_v7 = vrot.slane %v1872_v11, %v8048_v18  ;;  %v9245_v15 = vrot.slane %v1703_v13, %v8048_v18  ;;  %v9248_v47 = vrot.slane %v1719_v19, %v8048_v18  ;;  %v4146_v29 = vsel %vm4144_vm9, %v4120_v40, %v9045_v53 }
  0x9d   :  { %v3134_v14 = vrot.slane %v3126_v50, %v8048_v18  ;;  %v3141_v49 = vrot.slane %v3127_v23, %v8048_v18  ;;  %v2372_v41 = vcombine.low %v9094_v63, %v9075_v6  ;;  %v2981_v24 = vrot.slane %v2973_v55, %v8048_v18 }
  0x9e   :  { %3745 = vrot.lane.b32.xlu1 %v3674_v0, %s7948_s22  ;;  %3727 = vrot.lane.b32.xlu0 %v3635_v43, %s7948_s22  ;;  %v2988_v42 = vrot.slane %v2974_v17, %v8048_v18  ;;  %v7599_v20 = vcombine.high %v8820_v48, %v9051_v27  ;;  %v2219_v53 = vcombine.low %v9097_v25, %v9126_v54 }
  0x9f   :  { %v3718_v4 = vpop.permute.xlu1 %3717  ;;  %v9252_v3 = vpop.permute.xlu0 %2495  ;;  %v4172_v0 = vsel %vm4170_vm10, %v4146_v29, %v9090_v58  ;;  %v3845_v63 = vcombine.low %v9236_v38, %v9242_v7  ;;  %v3796_v31 = vcombine.low %v9245_v15, %v9248_v47  ;;  %v3142_v27 = vcombine.low %v3134_v14, %v3141_v49  ;;  %v63_v58 = vld [vmem:[%s12440_s0 + $0x110] sm:$0xff] }
  0xa0   :  { %v9275_v43 = vrot.slane %v2372_v41, %v8048_v18  ;;  %v4198_v25 = vsel %vm4196_vm11, %v4172_v0, %v3282_v34  ;;  %v2989_v8 = vcombine.low %v2981_v24, %v2988_v42  ;;  %v9282_v11 = vrot.slane %v7599_v20, %v8048_v18  ;;  %v45_v34 = vld [vmem:[%s12440_s0 + $0x80] sm:$0xff]  ;;  %v12606_v20 = vld [vmem:[#allocation35_spill] sm:$0xff] }
  0xa1   :  { %v9285_v51 = vrot.slane %v2219_v53, %v8048_v18  ;;  %v4224_v59 = vsel %vm4222_vm12, %v4198_v25, %v3558_v16  ;;  %v7612_v61 = vcombine.high %v8774_v1, %v9040_v62  ;;  %v3401_v13 = vcombine.low %v8820_v48, %v9120_v22 }
  0xa2   :  { %2811 = vrot.lane.b32.xlu1 %v2707_v28, %s7945_s19  ;;  %2793 = vrot.lane.b32.xlu0 %v2628_v5, %s7945_s19  ;;  %v4250_v19 = vsel %vm4248_vm13, %v4224_v59, %v3718_v4  ;;  %v477_v2 = vcombine.high %v63_v58, %v63_v58  ;;  %v9299_v40 = vrot.slane %v63_v58, %v8048_v18  ;;  %v12604_v48 = vrot.slane %v9075_v6, 7 }
  0xa3   :  { %v3898_v60 = vpop.permute.xlu1 %3897  ;;  %v9272_v39 = vpop.permute.xlu0 %2783  ;;  %v1166_v16 = vcombine.low %v8145_v56, %v8148_v57  ;;  %v4009_v23 = vcombine.low %v9205_v32, %v9275_v43  ;;  %v1871_v5 = vcombine.low %v8935_v21, %v9236_v38  ;;  %v9318_v56 = vld.sshfl [vmem:[%s12440_s0 + $0x78] sm:$0x33 pattern:$0x76325410]  ;;  %v9321_v57 = vrot.slane %v45_v34, %v8048_v18 }
  0xa4   :  { %v4276_v28 = vsel %vm4274_vm14, %v4250_v19, %v3898_v60  ;;  %v9308_v62 = vrot.slane %v12604_v48, 2  ;;  %v3976_v55 = vcombine.low %v9282_v11, %v9285_v51  ;;  %v3481_v17 = vrot.slane %v7612_v61, %v8048_v18 }
  0xa5   :  { %v3408_v29 = vrot.slane %v3401_v13, %v8048_v18  ;;  %v12605_v21 = vrot.slane %v9126_v54, 7  ;;  %v1718_v4 = vcombine.low %v8957_v33, %v9245_v15  ;;  %v9335_v14 = vrot.slane %v477_v2, %v8048_v18 }
  0xa6   :  { %3925 = vrot.lane.b32.xlu1 %v3845_v63, %s7952_s26  ;;  %3907 = vrot.lane.b32.xlu0 %v3796_v31, %s7952_s26  ;;  %v9339_v49 = vcombine.high %v9299_v40, %v9299_v40  ;;  %v309_v41 = vcombine.high %v45_v34, %v45_v34  ;;  %v1423_v33 = vcombine.low %v9075_v6, %v9299_v40  ;;  %v7583_v59 = vrot.slane %v9299_v40, 9 }
  0xa7   :  { %v4046_v50 = vpop.permute.xlu1 %4045  ;;  %v9304_v1 = vpop.permute.xlu0 %3283  ;;  %v746_v38 = vrot.slane %v12605_v21, 2  ;;  %v1270_v15 = vcombine.low %v9126_v54, %v9318_v56  ;;  %v9353_v0 = vcombine.high %v9075_v6, %v9075_v6  ;;  %v9357_v63 = vcombine.high %v9321_v57, %v9321_v57 }
  0xa8   :  { %v4302_v22 = vsel %vm4300_vm15, %v4276_v28, %v4046_v50  ;;  %v9361_v31 = vcombine.high %v9335_v14, %v9335_v14  ;;  %v866_v60 = vrot.slane %v9339_v49, 7  ;;  %v3482_v54 = vcombine.low %v3481_v17, %v9159_v46 }
  0xa9   :  { %7778 = vmatmul.mubr.msk.f32.gmra.mxu0 %vm4335_vm1, %v4302_v22  ;;  %v3409_v58 = vcombine.low %v3408_v29, %v9168_v52  ;;  %v2218_v25 = vcombine.low %v9013_v26, %v9282_v11  ;;  %v9374_v61 = vrot.slane %v309_v41, %v8048_v18  ;;  %v9378_v13 = vcombine.high %v9318_v56, %v9318_v56 }
  0xaa   :  { %3311 = vrot.lane.b32.xlu1 %v3142_v27, %s7951_s25  ;;  %3293 = vrot.lane.b32.xlu0 %v2989_v8, %s7951_s25  ;;  %v869_v27 = vrot.slane %v9335_v14, 7  ;;  %v747_v8 = vrot.slane %v9318_v56, 7  ;;  %v754_v34 = vrot.slane %v9357_v63, 7  ;;  %v4121_v19 = vsel %vm4118_vm8, %v1166_v16, %v9228_v10 }
  0xab   :  { %v3560_v24 = vpop.permute.xlu1 %3559  ;;  %v9341_v42 = vpop.permute.xlu0 %1997  ;;  %7780 = vmatprep.mubr.msk.f32.mxu0 %vm7954_vm7, %v12583_v45  ;;  %v9386_v26 = vrot.slane %v1423_v33, %v8048_v18  ;;  %v1439_v11 = vcombine.low %v9339_v49, %v9335_v14  ;;  %v862_v50 = vrot.slane %v9353_v0, 7  ;;  %v9392_v48 = vrot.slane %v1270_v15, %v8048_v18 }
  0xac   :  { %v868_v22 = vrot.slane %v866_v60, 2  ;;  %v4147_v10 = vsel %vm4144_vm9, %v4121_v19, %v9252_v3  ;;  %v1286_v16 = vcombine.low %v9321_v57, %v9357_v63  ;;  %v2708_v17 = vcombine.low %v9299_v40, %v9339_v49 }
  0xad   :  { %12607 = vst [vmem:[#allocation35_spill] sm:$0xff] %v9386_v26  ;;  %12608 = vst [vmem:[#allocation42_spill] sm:$0xff] %v9392_v48  ;;  %v749_v29 = vrot.slane %v747_v8, 2  ;;  %v750_v21 = vrot.slane %v9378_v13, 7  ;;  %v7576_v41 = vrot.slane %v9321_v57, 9  ;;  %v756_v33 = vrot.slane %v754_v34, 2 }
  0xae   :  { %4073 = vrot.lane.b32.xlu1 %v4009_v23, %s7949_s23  ;;  %4055 = vrot.lane.b32.xlu0 %v3976_v55, %s7949_s23  ;;  %v871_v23 = vrot.slane %v869_v27, 2  ;;  %v4173_v3 = vsel %vm4170_vm10, %v4147_v10, %v9272_v39  ;;  %v2629_v49 = vcombine.low %v9318_v56, %v9321_v57  ;;  %v863_v53 = vsel %vm8076_vm6, %v9308_v62, %v862_v50 }
  0xaf   :  { %v3720_v2 = vpop.permute.xlu1 %3719  ;;  %v9383_v28 = vpop.permute.xlu0 %2497  ;;  %v4199_v55 = vsel %vm4196_vm11, %v4173_v3, %v9304_v1  ;;  %v867_v15 = vsel %vm8076_vm6, %v7583_v59, %v866_v60  ;;  %v870_v39 = vsel %vm8076_vm6, %v868_v22, %v869_v27  ;;  %v12610_v10 = vrot.slane %v9361_v31, 7 }
  0xb0   :  { %v4225_v35 = vsel %vm4222_vm12, %v4199_v55, %v3560_v24  ;;  %v9434_v1 = vrot.slane %v1286_v16, %v8048_v18  ;;  %v748_v62 = vsel %vm8076_vm6, %v746_v38, %v747_v8  ;;  %v751_v27 = vsel %vm8076_vm6, %v749_v29, %v750_v21 }
  0xb1   :  { %v4251_v60 = vsel %vm4248_vm13, %v4225_v35, %v3720_v2  ;;  %v755_v59 = vsel %vm8076_vm6, %v7576_v41, %v754_v34  ;;  %v12612_v24 = vrot.slane %v9374_v61, 7  ;;  %v2715_v34 = vrot.slane %v2708_v17, %v8048_v18  ;;  %v12614_v41 = vld [vmem:[#allocation4_spill] sm:$0xff] }
  0xb2   :  { %2025 = vrot.lane.b32.xlu1 %v1871_v5, %s7950_s24  ;;  %2007 = vrot.lane.b32.xlu0 %v1718_v4, %s7950_s24  ;;  %v9411_v4 = vrot.slane %v1439_v11, %v8048_v18  ;;  %v9428_v11 = vsel %vm8076_vm6, %v871_v23, %v12610_v10  ;;  %12611 = vst [vmem:[#allocation44_spill] sm:$0xff] %v9434_v1 }
  0xb3   :  { %v3900_v5 = vpop.permute.xlu1 %3899  ;;  %v9408_v19 = vpop.permute.xlu0 %2785  ;;  %v1873_v23 = vcombine.low %v863_v53, %v867_v15  ;;  %v1889_v38 = vcombine.low %v870_v39, %v9428_v11  ;;  %v2636_v2 = vrot.slane %v2629_v49, %v8048_v18  ;;  %v12613_v55 = vcombine.low %v12606_v20, %v9205_v32 }
  0xb4   :  { %12609 = vst [vmem:[#allocation43_spill] sm:$0xff] %v9411_v4  ;;  %v3675_v8 = vcombine.low %v9386_v26, %v9411_v4  ;;  %v3636_v16 = vcombine.low %v9392_v48, %v9434_v1  ;;  %v1720_v29 = vcombine.low %v748_v62, %v751_v27  ;;  %v3143_v20 = vcombine.low %v9186_v9, %v863_v53 }
  0xb5   :  { %v9470_v49 = vrot.slane %v1873_v23, %v8048_v18  ;;  %v9473_v32 = vrot.slane %v1889_v38, %v8048_v18  ;;  %v2716_v10 = vcombine.low %v9275_v43, %v2715_v34  ;;  %v7603_v38 = vcombine.high %v9075_v6, %v9299_v40 }
  0xb6   :  { %3587 = vrot.lane.b32.xlu1 %v3482_v54, %s7947_s21  ;;  %3569 = vrot.lane.b32.xlu0 %v3409_v58, %s7947_s21  ;;  %v9447_v54 = vsel %vm8076_vm6, %v756_v33, %v12612_v24  ;;  %v4277_v58 = vsel %vm4274_vm14, %v4251_v60, %v3900_v5  ;;  %v12615_v33 = vld [vmem:[#allocation3_spill] sm:$0xff]  ;;  %v2990_v60 = vcombine.low %v9200_v12, %v748_v62 }
  0xb7   :  { %v4048_v50 = vpop.permute.xlu1 %4047  ;;  %v3286_v22 = vpop.permute.xlu0 %3285  ;;  %v1736_v21 = vcombine.low %v755_v59, %v9447_v54  ;;  %v1183_v3 = vcombine.low %v12615_v33, %v12614_v41  ;;  %v2991_v24 = vcombine.low %v751_v27, %v755_v59  ;;  %v3846_v12 = vcombine.low %v9470_v49, %v9473_v32 }
  0xb8   :  { %v4303_v35 = vsel %vm4300_vm15, %v4277_v58, %v4048_v50  ;;  %v2637_v58 = vcombine.low %v9285_v51, %v2636_v2  ;;  %v9484_v50 = vrot.slane %v1720_v29, %v8048_v18  ;;  %v2998_v27 = vrot.slane %v2990_v60, %v8048_v18 }
  0xb9   :  { %7781 = vmatmul.mubr.msk.f32.gmra.mxu0 %vm4335_vm1, %v4303_v35  ;;  %v9487_v23 = vrot.slane %v1736_v21, %v8048_v18  ;;  %v4122_v9 = vsel %vm4118_vm8, %v1183_v3, %v9341_v42  ;;  %v3005_v59 = vrot.slane %v2991_v24, %v8048_v18  ;;  %v2389_v42 = vcombine.low %v9335_v14, %v9361_v31 }
  0xba   :  { %2525 = vrot.lane.b32.xlu1 %v12613_v55, %s7946_s20  ;;  %2507 = vrot.lane.b32.xlu0 %v2218_v25, %s7946_s20  ;;  %v3144_v25 = vcombine.low %v867_v15, %v870_v39  ;;  %v3151_v39 = vrot.slane %v3143_v20, %v8048_v18  ;;  %v2236_v34 = vcombine.low %v9357_v63, %v9374_v61  ;;  %v65_v63 = vld [vmem:[%s12440_s0 + $0x120] sm:$0xff]  ;;  %v12616_v20 = vrot.slane %v9361_v31, 7 }
  0xbb   :  { %v3562_v17 = vpop.permute.xlu1 %3561  ;;  %v9467_v5 = vpop.permute.xlu0 %1999  ;;  %7783 = vmatprep.mubr.msk.f32.mxu0 %vm7954_vm7, %v12583_v45  ;;  %v3797_v35 = vcombine.low %v9484_v50, %v9487_v23  ;;  %v4148_v2 = vsel %vm4144_vm9, %v4122_v9, %v9383_v28  ;;  %v3006_v21 = vcombine.low %v2998_v27, %v3005_v59  ;;  %v9519_v41 = vrot.slane %v7603_v38, %v8048_v18  ;;  %v9571_v38 = vld [vmem:[%s12440_s0 + $0x90] sm:$0xff] }
  0xbc   :  { %v3158_v62 = vrot.slane %v3144_v25, %v8048_v18  ;;  %v4174_v40 = vsel %vm4170_vm10, %v4148_v2, %v9408_v19  ;;  %v874_v25 = vrot.slane %v12616_v20, 2  ;;  %v9545_v24 = vrot.slane %v65_v63, %v8048_v18 }
  0xbd   :  { %v4200_v29 = vsel %vm4196_vm11, %v4174_v40, %v3286_v22  ;;  %v9534_v22 = vrot.slane %v2236_v34, %v8048_v18  ;;  %v9554_v9 = vcombine.high %v9374_v61, %v9374_v61  ;;  %v7609_v27 = vcombine.high %v9318_v56, %v9321_v57 }
  0xbe   :  { %3747 = vrot.lane.b32.xlu1 %v3675_v8, %s7948_s22  ;;  %3729 = vrot.lane.b32.xlu0 %v3636_v16, %s7948_s22  ;;  %v2220_v8 = vcombine.low %v9318_v56, %v9378_v13  ;;  %v3159_v16 = vcombine.low %v3151_v39, %v3158_v62  ;;  %v9522_v13 = vrot.slane %v2389_v42, %v8048_v18 }
  0xbf   :  { %v3722_v53 = vpop.permute.xlu1 %3721  ;;  %v9491_v15 = vpop.permute.xlu0 %2499  ;;  %v4226_v28 = vsel %vm4222_vm12, %v4200_v29, %v3562_v17  ;;  %v3483_v17 = vcombine.low %v9075_v6, %v9353_v0  ;;  %v501_v59 = vcombine.high %v65_v63, %v65_v63  ;;  %v760_v42 = vrot.slane %v9554_v9, 7 }
  0xc0   :  { %v9531_v19 = vrot.slane %v2220_v8, %v8048_v18  ;;  %v4252_v33 = vsel %vm4248_vm13, %v4226_v28, %v3722_v53  ;;  %v12617_v53 = vrot.slane %v9374_v61, 7  ;;  %v4010_v6 = vcombine.low %v9519_v41, %v9522_v13  ;;  %v12619_v8 = vld [vmem:[#allocation5_spill] sm:$0xff] }
  0xc1   :  { %v3490_v57 = vrot.slane %v3483_v17, %v8048_v18  ;;  %v1888_v29 = vcombine.low %v9242_v7, %v9470_v49  ;;  %v1735_v28 = vcombine.low %v9248_v47, %v9484_v50  ;;  %v9614_v7 = vld.sshfl [vmem:[%s12440_s0 + $0x88] sm:$0x33 pattern:$0x76325410]  ;;  %v9617_v49 = vrot.slane %v501_v59, %v8048_v18 }
  0xc2   :  { %2813 = vrot.lane.b32.xlu1 %v2716_v10, %s7945_s19  ;;  %2795 = vrot.lane.b32.xlu0 %v2637_v58, %s7945_s19  ;;  %v9550_v58 = vld.sshfl [vmem:[%s12440_s0 + $0x118] sm:$0x33 pattern:$0x76325410]  ;;  %v3977_v62 = vcombine.low %v9531_v19, %v9534_v22  ;;  %v9626_v47 = vcombine.high %v9614_v7, %v9614_v7  ;;  %v763_v50 = vrot.slane %v9614_v7, 7 }
  0xc3   :  { %v3902_v14 = vpop.permute.xlu1 %3901  ;;  %v9515_v55 = vpop.permute.xlu0 %2787  ;;  %v875_v0 = vrot.slane %v9550_v58, 7  ;;  %v9604_v63 = vcombine.high %v9550_v58, %v9550_v58 }
  0xc4   :  { %v4278_v3 = vsel %vm4274_vm14, %v4252_v33, %v3902_v14  ;;  %v9588_v14 = vcombine.high %v9545_v24, %v9545_v24  ;;  %v3417_v33 = vrot.slane %v7609_v27, %v8048_v18  ;;  %v766_v34 = vrot.slane %v9626_v47, 7 }
  0xc5   :  { %v9579_v2 = vsel %vm8076_vm6, %v874_v25, %v875_v0  ;;  %v877_v20 = vrot.slane %v875_v0, 2  ;;  %v878_v59 = vrot.slane %v9604_v63, 7 }
  0xc6   :  { %3927 = vrot.lane.b32.xlu1 %v3846_v12, %s7952_s26  ;;  %3909 = vrot.lane.b32.xlu0 %v3797_v35, %s7952_s26  ;;  %v759_v12 = vrot.slane %v12617_v53, 2  ;;  %v12618_v35 = vld [vmem:[#allocation6_spill] sm:$0xff]  ;;  %v3491_v53 = vcombine.low %v3490_v57, %v9411_v4  ;;  %v1456_v0 = vcombine.low %v9545_v24, %v9588_v14  ;;  %v765_v57 = vrot.slane %v763_v50, 2 }
  0xc7   :  { %v4050_v10 = vpop.permute.xlu1 %4049  ;;  %v9540_v60 = vpop.permute.xlu0 %3287 }
  0xc8   :  { %v4304_v39 = vsel %vm4300_vm15, %v4278_v3, %v4050_v10  ;;  %v882_v3 = vrot.slane %v9588_v14, 7 }
  0xc9   :  { %7784 = vmatmul.mubr.msk.f32.gmra.mxu0 %vm4335_vm1, %v4304_v39  ;;  %v1440_v39 = vcombine.low %v9361_v31, %v9550_v58  ;;  %v7584_v31 = vrot.slane %v9545_v24, 9 }
  0xca   :  { %3313 = vrot.lane.b32.xlu1 %v3159_v16, %s7951_s25  ;;  %3295 = vrot.lane.b32.xlu0 %v3006_v21, %s7951_s25  ;;  %v9594_v16 = vsel %vm8076_vm6, %v759_v12, %v760_v42  ;;  %v9600_v21 = vrot.slane %v9571_v38, %v8048_v18  ;;  %v2388_v12 = vcombine.low %v9275_v43, %v9519_v41  ;;  %v884_v41 = vrot.slane %v882_v3, 2 }
  0xcb   :  { %v9581_v40 = vpop.permute.xlu1 %2019  ;;  %v9583_v56 = vpop.permute.xlu0 %2001  ;;  %7786 = vmatprep.mubr.msk.f32.mxu0 %vm7954_vm7, %v12583_v45  ;;  %v3418_v43 = vcombine.low %v9392_v48, %v3417_v33  ;;  %v2717_v33 = vcombine.low %v9550_v58, %v9545_v24  ;;  %v9665_v48 = vrot.slane %v1456_v0, %v8048_v18 }
  0xcc   :  { %v9622_v25 = vcombine.high %v9600_v21, %v9600_v21  ;;  %v1303_v27 = vcombine.low %v9614_v7, %v9600_v21 }
  0xcd   :  { %12621 = vst [vmem:[#allocation3_spill] sm:$0xff] %v9665_v48 }
  0xce   :  { %4075 = vrot.lane.b32.xlu1 %v4010_v6, %s7949_s23  ;;  %4057 = vrot.lane.b32.xlu0 %v3977_v62, %s7949_s23  ;;  %v762_v6 = vrot.slane %v760_v42, 2  ;;  %v1287_v62 = vcombine.low %v9374_v61, %v9554_v9  ;;  %v7577_v61 = vrot.slane %v9600_v21, 9  ;;  %v2237_v42 = vcombine.low %v9554_v9, %v9614_v7 }
  0xcf   :  { %v9629_v10 = vpop.permute.xlu1 %2501  ;;  %v9631_v17 = vpop.permute.xlu0 %3563  ;;  %v9671_v46 = vrot.slane %v1303_v27, %v8048_v18  ;;  %v12624_v9 = vrot.slane %v9617_v49, 7 }
  0xd0   :  { %v9668_v1 = vrot.slane %v1287_v62, %v8048_v18  ;;  %v764_v0 = vsel %vm8076_vm6, %v762_v6, %v763_v50  ;;  %v767_v62 = vsel %vm8076_vm6, %v765_v57, %v766_v34  ;;  %v12626_v50 = vcombine.low %v12619_v8, %v12618_v35 }
  0xd1   :  { %12623 = vst [vmem:[#allocation5_spill] sm:$0xff] %v9671_v46  ;;  %v3160_v8 = vcombine.low %v9428_v11, %v9579_v2 }
  0xd2   :  { %2027 = vrot.lane.b32.xlu1 %v1888_v29, %s7950_s24  ;;  %2009 = vrot.lane.b32.xlu0 %v1735_v28, %s7950_s24  ;;  %v2235_v29 = vcombine.low %v9285_v51, %v9531_v19  ;;  %v9658_v28 = vrot.slane %v1440_v39, %v8048_v18  ;;  %12622 = vst [vmem:[#allocation6_spill] sm:$0xff] %v9668_v1 }
  0xd3   :  { %v3724_v4 = vpop.permute.xlu1 %3723  ;;  %v9653_v52 = vpop.permute.xlu0 %2519  ;;  %v879_v51 = vsel %vm8076_vm6, %v877_v20, %v878_v59  ;;  %v883_v19 = vsel %vm8076_vm6, %v7584_v31, %v882_v3  ;;  %v9683_v39 = vsel %vm8076_vm6, %v884_v41, %v12624_v9  ;;  %v12625_v20 = vrot.slane %v9622_v25, 7 }
  0xd4   :  { %12620 = vst [vmem:[#allocation4_spill] sm:$0xff] %v9658_v28  ;;  %v2724_v59 = vrot.slane %v2717_v33, %v8048_v18  ;;  %v4123_v34 = vsel %vm4118_vm8, %v12626_v50, %v9467_v5  ;;  %v1890_v6 = vcombine.low %v9579_v2, %v879_v51  ;;  %v1906_v31 = vcombine.low %v883_v19, %v9683_v39 }
  0xd5   :  { %v1737_v41 = vcombine.low %v9594_v16, %v764_v0  ;;  %v3637_v57 = vcombine.low %v9668_v1, %v9671_v46  ;;  %v4149_v5 = vsel %vm4144_vm9, %v4123_v34, %v9491_v15  ;;  %v3161_v50 = vcombine.low %v879_v51, %v883_v19 }
  0xd6   :  { %3589 = vrot.lane.b32.xlu1 %v3491_v53, %s7947_s21  ;;  %3571 = vrot.lane.b32.xlu0 %v3418_v43, %s7947_s21  ;;  %v9693_v53 = vsel %vm8076_vm6, %v7577_v61, %v12625_v20  ;;  %v9701_v43 = vrot.slane %v2237_v42, %v8048_v18  ;;  %v3676_v42 = vcombine.low %v9658_v28, %v9665_v48 }
  0xd7   :  { %v9695_v27 = vpop.permute.xlu1 %2807  ;;  %v9697_v3 = vpop.permute.xlu0 %2789  ;;  %v1753_v35 = vcombine.low %v767_v62, %v9693_v53  ;;  %v3007_v61 = vcombine.low %v9447_v54, %v9594_v16  ;;  %v2725_v9 = vcombine.low %v9522_v13, %v2724_v59  ;;  %v9736_v11 = vrot.slane %v1890_v6, %v8048_v18 }
  0xd8   :  { %v9731_v20 = vcombine.low %v9534_v22, %v9701_v43  ;;  %v9739_v54 = vrot.slane %v1906_v31, %v8048_v18  ;;  %v3168_v34 = vrot.slane %v3160_v8, %v8048_v18  ;;  %v3175_v6 = vrot.slane %v3161_v50, %v8048_v18  ;;  %v12631_v8 = vld [vmem:[#allocation12_spill] sm:$0xff] }
  0xd9   :  { %v9749_v22 = vrot.slane %v1753_v35, %v8048_v18  ;;  %v12630_v35 = vld [vmem:[#allocation11_spill] sm:$0xff] }
  0xda   :  { %2527 = vrot.lane.b32.xlu1 %v2388_v12, %s7946_s20  ;;  %2509 = vrot.lane.b32.xlu0 %v2235_v29, %s7946_s20  ;;  %v4175_v12 = vsel %vm4170_vm10, %v4149_v5, %v9515_v55  ;;  %12627 = vst [vmem:[#allocation45_spill] sm:$0xff] %v9739_v54  ;;  %v9742_v55 = vrot.slane %v1737_v41, %v8048_v18 }
  0xdb   :  { %v9726_v29 = vpop.permute.xlu1 %3289  ;;  %v3904_v33 = vpop.permute.xlu0 %3903  ;;  %v4201_v15 = vsel %vm4196_vm11, %v4175_v12, %v9540_v60  ;;  %12628 = vst [vmem:[#allocation46_spill] sm:$0xff] %v9749_v22  ;;  %v3008_v60 = vcombine.low %v764_v0, %v767_v62  ;;  %v2390_v41 = vcombine.low %v9550_v58, %v9604_v63  ;;  %v2406_v0 = vcombine.low %v9588_v14, %v9617_v49  ;;  %v12629_v63 = vld [vmem:[#allocation10_spill] sm:$0xff]  ;;  %v7938_v14 = vld.sshfl [vmem:[%s12440_s0 + $0xd8] sm:$0x33 pattern:$0x76325410] }
  0xdc   :  { %v4227_v2 = vsel %vm4222_vm12, %v4201_v15, %v9631_v17  ;;  %v3015_v17 = vrot.slane %v3007_v61, %v8048_v18  ;;  %v3847_v62 = vcombine.low %v9736_v11, %v9739_v54  ;;  %v1354_v5 = vcombine.low %v12630_v35, %v12629_v63 }
  0xdd   :  { %v4253_v16 = vsel %vm4248_vm13, %v4227_v2, %v3724_v4  ;;  %v7600_v4 = vcombine.high %v9614_v7, %v9600_v21  ;;  %v1355_v61 = vcombine.low %v12631_v8, %v7938_v14  ;;  %v9790_v50 = vrot.slane %v2406_v0, %v8048_v18 }
  0xde   :  { %3749 = vrot.lane.b32.xlu1 %v3676_v42, %s7948_s22  ;;  %3731 = vrot.lane.b32.xlu0 %v3637_v57, %s7948_s22  ;;  %v4279_v51 = vsel %vm4274_vm14, %v4253_v16, %v3904_v33  ;;  %v3798_v42 = vcombine.low %v9742_v55, %v9749_v22  ;;  %v3022_v57 = vrot.slane %v3008_v60, %v8048_v18  ;;  %v12645_v35 = vrot.slane %v9622_v25, 7 }
  0xdf   :  { %v4052_v19 = vpop.permute.xlu1 %4051  ;;  %v9753_v59 = vpop.permute.xlu0 %3307  ;;  %v9793_v15 = vrot.slane %v7600_v4, %v8048_v18  ;;  %v333_v2 = vcombine.high %v9571_v38, %v9571_v38  ;;  %v3176_v60 = vcombine.low %v3168_v34, %v3175_v6  ;;  %v9825_v6 = vld.sshfl [vmem:[%s12440_s0 + $0x128] sm:$0x33 pattern:$0x76325410]  ;;  %v1905_v63 = vcombine.low %v9473_v32, %v9736_v11 }
  0xe0   :  { %v4305_v31 = vsel %vm4300_vm15, %v4279_v51, %v4052_v19  ;;  %v3023_v16 = vcombine.low %v3015_v17, %v3022_v57  ;;  %v7613_v51 = vcombine.high %v9550_v58, %v9545_v24  ;;  %v9802_v19 = vrot.slane %v1354_v5, %v8048_v18  ;;  %v12638_v57 = vld [vmem:[#allocation7_spill] sm:$0xff]  ;;  %v9875_v32 = vld.sshfl [vmem:[%s12440_s0 + $0x98] sm:$0x33 pattern:$0x76325410] }
  0xe1   :  { %7787 = vmatmul.mubr.msk.f32.gmra.mxu0 %vm4335_vm1, %v4305_v31  ;;  %12634 = vst [vmem:[#allocation47_spill] sm:$0xff] %v9793_v15  ;;  %v9805_v31 = vrot.slane %v1355_v61, %v8048_v18  ;;  %v3978_v24 = vcombine.low %v9701_v43, %v9793_v15  ;;  %v3419_v58 = vcombine.low %v9614_v7, %v9626_v47  ;;  %v891_v47 = vrot.slane %v9825_v6, 7 }
  0xe2   :  { %2815 = vrot.lane.b32.xlu1 %v2725_v9, %s7945_s19  ;;  %2797 = vrot.lane.b32.xlu0 %v9731_v20, %s7945_s19  ;;  %v9787_v9 = vrot.slane %v2390_v41, %v8048_v18  ;;  %12635 = vst [vmem:[#allocation48_spill] sm:$0xff] %v9802_v19  ;;  %v9810_v41 = vld [vmem:[%s12440_s0 + $0x130] sm:$0xff]  ;;  %v9828_v17 = vrot.slane %v333_v2, %v8048_v18 }
  0xe3   :  { %v9780_v12 = vpop.permute.xlu1 %2021  ;;  %v9782_v33 = vpop.permute.xlu0 %2003  ;;  %7789 = vmatprep.mubr.msk.f32.mxu0 %vm7954_vm7, %v12583_v45  ;;  %12636 = vst [vmem:[#allocation49_spill] sm:$0xff] %v9805_v31  ;;  %v3499_v4 = vrot.slane %v7613_v51, %v8048_v18  ;;  %v517_v43 = vcombine.high %v9617_v49, %v9617_v49  ;;  %v9837_v7 = vrot.slane %v9810_v41, %v8048_v18  ;;  %v12644_v51 = vrot.slane %v9617_v49, 7 }
  0xe4   :  { %12632 = vst [vmem:[#allocation10_spill] sm:$0xff] %v9780_v12  ;;  %12633 = vst [vmem:[#allocation12_spill] sm:$0xff] %v9782_v33  ;;  %v4011_v34 = vcombine.low %v9787_v9, %v9790_v50  ;;  %v1752_v8 = vcombine.low %v9487_v23, %v9742_v55  ;;  %v349_v26 = vcombine.high %v9828_v17, %v9828_v17  ;;  %v893_v23 = vrot.slane %v891_v47, 2 }
  0xe5   :  { %v888_v46 = vrot.slane %v517_v43, 7  ;;  %v3500_v44 = vcombine.low %v9658_v28, %v3499_v4  ;;  %v773_v11 = vrot.slane %v9828_v17, 7  ;;  %v1457_v55 = vcombine.low %v9617_v49, %v517_v43 }
  0xe6   :  { %3929 = vrot.lane.b32.xlu1 %v3847_v62, %s7952_s26  ;;  %3911 = vrot.lane.b32.xlu0 %v3798_v42, %s7952_s26  ;;  %v12637_v42 = vld [vmem:[#allocation9_spill] sm:$0xff]  ;;  %v887_v62 = vrot.slane %v12644_v51, 2  ;;  %v3426_v51 = vrot.slane %v3419_v58, %v8048_v18  ;;  %v9881_v48 = vcombine.high %v9875_v32, %v9875_v32  ;;  %v7585_v37 = vrot.slane %v9837_v7, 9 }
  0xe7   :  { %v9812_v38 = vpop.permute.xlu1 %3583  ;;  %v9814_v0 = vpop.permute.xlu0 %3565  ;;  %v890_v28 = vrot.slane %v888_v46, 2  ;;  %v1473_v49 = vcombine.low %v9825_v6, %v9837_v7  ;;  %v2638_v33 = vcombine.low %v9600_v21, %v9622_v25  ;;  %v1320_v22 = vcombine.low %v349_v26, %v9875_v32 }
  0xe8   :  { %v3427_v15 = vcombine.low %v9668_v1, %v3426_v51  ;;  %v772_v12 = vrot.slane %v12645_v35, 2  ;;  %v775_v54 = vrot.slane %v773_v11, 2 }
  0xe9   :  { %v9926_v51 = vrot.slane %v1473_v49, %v8048_v18 }
  0xea   :  { %3315 = vrot.lane.b32.xlu1 %v3176_v60, %s7951_s25  ;;  %3297 = vrot.lane.b32.xlu0 %v3023_v16, %s7951_s25  ;;  %v9852_v60 = vcombine.high %v9837_v7, %v9837_v7  ;;  %v9856_v16 = vcombine.high %v9825_v6, %v9825_v6 }
  0xeb   :  { %v9846_v61 = vpop.permute.xlu1 %2521  ;;  %v9848_v2 = vpop.permute.xlu0 %2503  ;;  %12648 = vst [vmem:[#allocation52_spill] sm:$0xff] %v9926_v51 }
  0xec   :  { %12641 = vst [vmem:[#allocation9_spill] sm:$0xff] %v9846_v61  ;;  %12642 = vst [vmem:[#allocation7_spill] sm:$0xff] %v9848_v2  ;;  %v894_v36 = vrot.slane %v9856_v16, 7  ;;  %v1304_v2 = vcombine.low %v9622_v25, %v9828_v17  ;;  %v2407_v61 = vcombine.low %v517_v43, %v9825_v6  ;;  %v782_v43 = vrot.slane %v9881_v48, 7 }
  0xed   :  { %12643 = vst [vmem:[#allocation50_spill] sm:$0xff] %v9856_v16  ;;  %v2254_v16 = vcombine.low %v9828_v17, %v349_v26  ;;  %v12646_v35 = vrot.slane %v9852_v60, 7  ;;  %v9923_v17 = vrot.slane %v1457_v55, %v8048_v18 }
  0xee   :  { %4077 = vrot.lane.b32.xlu1 %v4011_v34, %s7949_s23  ;;  %4059 = vrot.lane.b32.xlu0 %v3978_v24, %s7949_s23  ;;  %v776_v34 = vrot.slane %v349_v26, 7  ;;  %v779_v24 = vrot.slane %v9875_v32, 7  ;;  %v895_v25 = vsel %vm8076_vm6, %v893_v23, %v894_v36  ;;  %v9937_v36 = vrot.slane %v1320_v22, %v8048_v18 }
  0xef   :  { %v9884_v4 = vpop.permute.xlu1 %3743  ;;  %v9886_v58 = vpop.permute.xlu0 %3725  ;;  %v9920_v26 = vsel %vm8076_vm6, %v7585_v37, %v12646_v35  ;;  %12647 = vst [vmem:[#allocation51_spill] sm:$0xff] %v9923_v17  ;;  %v774_v37 = vsel %vm8076_vm6, %v772_v12, %v773_v11  ;;  %v12651_v22 = vcombine.low %v9802_v19, %v9805_v31 }
  0xf0   :  { %v778_v45 = vrot.slane %v776_v34, 2  ;;  %v781_v5 = vrot.slane %v779_v24, 2  ;;  %12650 = vst [vmem:[#allocation54_spill] sm:$0xff] %v9937_v36 }
  0xf2   :  { %2029 = vrot.lane.b32.xlu1 %v1905_v63, %s7950_s24  ;;  %2011 = vrot.lane.b32.xlu0 %v1752_v8, %s7950_s24  ;;  %v889_v63 = vsel %vm8076_vm6, %v887_v62, %v888_v46  ;;  %v892_v8 = vsel %vm8076_vm6, %v890_v28, %v891_v47  ;;  %v9929_v46 = vrot.slane %v1304_v2, %v8048_v18 }
  0xf3   :  { %v9906_v14 = vpop.permute.xlu1 %2809  ;;  %v9908_v21 = vpop.permute.xlu0 %2791  ;;  %v9932_v28 = vrot.slane %v2407_v61, %v8048_v18  ;;  %v777_v47 = vsel %vm8076_vm6, %v775_v54, %v776_v34  ;;  %v1907_v62 = vcombine.low %v889_v63, %v892_v8  ;;  %v1923_v2 = vcombine.low %v895_v25, %v9920_v26  ;;  %v12675_v31 = vld [vmem:[#allocation9_spill] sm:$0xff] }
  0xf4   :  { %12649 = vst [vmem:[#allocation53_spill] sm:$0xff] %v9929_v46  ;;  %v780_v61 = vsel %vm8076_vm6, %v778_v45, %v779_v24  ;;  %v12652_v54 = vcombine.low %v12638_v57, %v12637_v42  ;;  %v9961_v45 = vrot.slane %v2254_v16, %v8048_v18  ;;  %v3677_v34 = vcombine.low %v9923_v17, %v9926_v51 }
  0xf5   :  { %v1754_v42 = vcombine.low %v774_v37, %v777_v47  ;;  %v12653_v57 = vcombine.low %v9522_v13, %v9787_v9  ;;  %v9988_v16 = vrot.slane %v1907_v62, %v8048_v18  ;;  %v3177_v13 = vcombine.low %v9683_v39, %v889_v63 }
  0xf6   :  { %3591 = vrot.lane.b32.xlu1 %v3500_v44, %s7947_s21  ;;  %3573 = vrot.lane.b32.xlu0 %v3427_v15, %s7947_s21  ;;  %v9948_v44 = vsel %vm8076_vm6, %v781_v5, %v782_v43  ;;  %v4133_v15 = vsel %vm4118_vm8, %v12651_v22, %v9581_v40  ;;  %v4124_v12 = vsel %vm4118_vm8, %v12652_v54, %v9583_v56 }
  0xf7   :  { %v3924_v23 = vpop.permute.xlu1 %3923  ;;  %v3906_v11 = vpop.permute.xlu0 %3905  ;;  %v2645_v5 = vrot.slane %v2638_v33, %v8048_v18  ;;  %v4150_v55 = vsel %vm4144_vm9, %v4124_v12, %v9629_v10  ;;  %v9970_v40 = vcombine.low %v9790_v50, %v9932_v28  ;;  %v4159_v56 = vsel %vm4144_vm9, %v4133_v15, %v9653_v52  ;;  %v49_v12 = vld [vmem:[%s12440_s0 + $0xa0] sm:$0xff] }
  0xf8   :  { %v9982_v10 = vcombine.low %v9929_v46, %v9937_v36  ;;  %v1770_v33 = vcombine.low %v780_v61, %v9948_v44  ;;  %v4176_v50 = vsel %vm4170_vm10, %v4150_v55, %v9697_v3  ;;  %v9991_v52 = vrot.slane %v1923_v2, %v8048_v18  ;;  %v12654_v55 = vld [vmem:[#allocation19_spill] sm:$0xff] }
  0xf9   :  { %v4202_v9 = vsel %vm4196_vm11, %v4176_v50, %v9726_v29  ;;  %v2646_v3 = vcombine.low %v2645_v5, %v9961_v45  ;;  %v3178_v43 = vcombine.low %v892_v8, %v895_v25  ;;  %v10006_v62 = vrot.slane %v1754_v42, %v8048_v18 }
  0xfa   :  { %2529 = vrot.lane.b32.xlu1 %v12653_v57, %s7946_s20  ;;  %2511 = vrot.lane.b32.xlu0 %v9731_v20, %s7946_s20  ;;  %v4185_v20 = vsel %vm4170_vm10, %v4159_v56, %v9695_v27  ;;  %v3024_v39 = vcombine.low %v9693_v53, %v774_v37  ;;  %v3025_v63 = vcombine.low %v777_v47, %v780_v61  ;;  %v7939_v57 = vld.sshfl [vmem:[%s12440_s0 + $0xe8] sm:$0x33 pattern:$0x76325410] }
  0xfb   :  { %v9998_v24 = vpop.permute.xlu1 %3309  ;;  %v10000_v49 = vpop.permute.xlu0 %3291  ;;  %v4211_v35 = vsel %vm4196_vm11, %v4185_v20, %v9753_v59  ;;  %v4228_v29 = vsel %vm4222_vm12, %v4202_v9, %v9814_v0  ;;  %v10017_v8 = vrot.slane %v1770_v33, %v8048_v18  ;;  %v3185_v25 = vrot.slane %v3177_v13, %v8048_v18  ;;  %v12658_v33 = vld [vmem:[#allocation27_spill] sm:$0xff] }
  0xfc   :  { %v4237_v27 = vsel %vm4222_vm12, %v4211_v35, %v9812_v38  ;;  %v4254_v53 = vsel %vm4248_vm13, %v4228_v29, %v9886_v58  ;;  %v3848_v38 = vcombine.low %v9988_v16, %v9991_v52  ;;  %v3192_v61 = vrot.slane %v3178_v43, %v8048_v18  ;;  %v12660_v35 = vld [vmem:[#allocation50_spill] sm:$0xff] }
  0xfd   :  { %v4263_v59 = vsel %vm4248_vm13, %v4237_v27, %v9884_v4  ;;  %v4280_v37 = vsel %vm4274_vm14, %v4254_v53, %v3906_v11  ;;  %v7604_v22 = vcombine.high %v9825_v6, %v9837_v7  ;;  %v3032_v15 = vrot.slane %v3024_v39, %v8048_v18 }
  0xfe   :  { %3751 = vrot.lane.b32.xlu1 %v3677_v34, %s7948_s22  ;;  %3733 = vrot.lane.b32.xlu0 %v9982_v10, %s7948_s22  ;;  %v4289_v0 = vsel %vm4274_vm14, %v4263_v59, %v3924_v23  ;;  %v3039_v54 = vrot.slane %v3025_v63, %v8048_v18  ;;  %v3799_v23 = vcombine.low %v10006_v62, %v10017_v8  ;;  %v12655_v34 = vld [vmem:[#allocation21_spill] sm:$0xff]  ;;  %v12659_v20 = vmov 0.0  }
  0xff   :  { %v4072_v47 = vpop.permute.xlu1 %4071  ;;  %v4054_v2 = vpop.permute.xlu0 %4053  ;;  %v2270_v11 = vcombine.low %v9875_v32, %v9881_v48  ;;  %v525_v5 = vcombine.high %v9810_v41, %v9810_v41  ;;  %v12656_v42 = vcombine.low %v12654_v55, %v12655_v34  ;;  %v1388_v50 = vcombine.low %v7939_v57, %v12658_v33  ;;  %v12662_v59 = vld [vmem:[#allocation29_spill] sm:$0xff]  ;;  %v12668_v34 = vld [vmem:[#allocation10_spill] sm:$0xff]  ;;  %v12670_v33 = vld [vmem:[#allocation47_spill] sm:$0xff] }
 0x100   :  { %v4315_v4 = vsel %vm4300_vm15, %v4289_v0, %v4072_v47  ;;  %v4306_v58 = vsel %vm4300_vm15, %v4280_v37, %v4054_v2  ;;  %v948_v41 = vcombine.high %v49_v12, %v49_v12  ;;  %v3193_v9 = vcombine.low %v3185_v25, %v3192_v61  ;;  %v12664_v25 = vld [vmem:[#allocation13_spill] sm:$0xff] }
 0x101   :  { %v10051_v56 = vrot.slane %v12656_v42, %v8048_v18  ;;  %7790 = vmatmul.mubr.msk.f32.gmra.mxu0 %vm4335_vm1, %v4306_v58  ;;  %7817 = vmatmul.mubr.msk.f32.vlgmr.msra.gmra.mxu1 %vm4335_vm1, %v4315_v4  ;;  %v10068_v43 = vrot.slane %v7604_v22, %v8048_v18  ;;  %v3501_v39 = vcombine.low %v9825_v6, %v12660_v35  ;;  %v10088_v6 = vld.sshfl [vmem:[%s12440_s0 + $0x138] sm:$0x33 pattern:$0x76325410] }
 0x102   :  { %2817 = vrot.lane.b32.xlu1 %v9970_v40, %s7945_s19  ;;  %2799 = vrot.lane.b32.xlu0 %v2646_v3, %s7945_s19  ;;  %v3040_v3 = vcombine.low %v3032_v15, %v3039_v54  ;;  %v10075_v63 = vrot.slane %v2270_v11, %v8048_v18  ;;  %v10078_v27 = vrot.slane %v525_v5, %v8048_v18  ;;  %v907_v22 = vrot.slane %v10088_v6, 7  ;;  %v12666_v58 = vld [vmem:[#allocation45_spill] sm:$0xff] }
 0x103   :  { %12657 = vst [vmem:[#allocation21_spill] sm:$0xff] %v10051_v56  ;;  %v10059_v48 = vpop.permute.xlu1 %2023  ;;  %v10061_v13 = vpop.permute.xlu0 %2005  ;;  %7792 = vmatprep.mubr.msk.f32.mxu0 %vm7954_vm7, %v12659_v20  ;;  %7819 = vmatprep.mubr.msk.f32.mxu1 %vm7954_vm7, %v12659_v20  ;;  %v10081_v29 = vrot.slane %v49_v12, %v8048_v18  ;;  %v1387_v53 = vcombine.low %v10051_v56, %v12662_v59 }
 0x104   :  { %12661 = vst [vmem:[#allocation27_spill] sm:$0xff] %v10075_v63  ;;  %v10093_v37 = vrot.slane %v1388_v50, %v8048_v18  ;;  %v10100_v61 = vrot.slane %v948_v41, %v8048_v18  ;;  %v4012_v4 = vcombine.low %v9932_v28, %v10068_v43  ;;  %v1922_v15 = vcombine.low %v12666_v58, %v9988_v16 }
 0x105   :  { %v10108_v54 = vrot.slane %v3501_v39, %v8048_v18  ;;  %v2726_v12 = vcombine.low %v9837_v7, %v9852_v60  ;;  %v541_v11 = vcombine.high %v10078_v27, %v10078_v27  ;;  %v963_v28 = vcombine.high %v10081_v29, %v10081_v29  ;;  %v12669_v7 = vld [vmem:[#allocation46_spill] sm:$0xff] }
 0x106   :  { %3931 = vrot.lane.b32.xlu1 %v3848_v38, %s7952_s26  ;;  %3913 = vrot.lane.b32.xlu0 %v3799_v23, %s7952_s26  ;;  %v12663_v38 = vld [vmem:[#allocation22_spill] sm:$0xff]  ;;  %12665 = vst [vmem:[#allocation50_spill] sm:$0xff] %v10093_v37  ;;  %v3979_v23 = vcombine.low %v9961_v45, %v10075_v63  ;;  %v12667_v16 = vrot.slane %v9852_v60, 7  ;;  %v4134_v42 = vsel %vm4118_vm8, %v1387_v53, %v12668_v34  ;;  %v901_v41 = vrot.slane %v10078_v27, 7 }
 0x107   :  { %v1234_v0 = vcombine.low %v12664_v25, %v12663_v38  ;;  %v10095_v47 = vpop.permute.xlu1 %3585  ;;  %v10097_v2 = vpop.permute.xlu0 %3567  ;;  %v1769_v57 = vcombine.low %v12669_v7, %v10006_v62  ;;  %v1474_v35 = vcombine.low %v9852_v60, %v10078_v27  ;;  %v10137_v39 = vcombine.high %v10100_v61, %v10100_v61  ;;  %v12673_v38 = vld [vmem:[#allocation12_spill] sm:$0xff] }
 0x108   :  { %v900_v5 = vrot.slane %v12667_v16, 2  ;;  %v10141_v53 = vcombine.high %v10088_v6, %v10088_v6  ;;  %v904_v62 = vrot.slane %v541_v11, 7  ;;  %v3509_v58 = vcombine.low %v9923_v17, %v10108_v54 }
 0x109   :  { %v4125_v25 = vsel %vm4118_vm8, %v1234_v0, %v12673_v38  ;;  %v909_v16 = vrot.slane %v907_v22, 2  ;;  %v1000_v34 = vrot.slane %v963_v28, 7  ;;  %v3638_v60 = vcombine.low %v10081_v29, %v963_v28 }
 0x10a   :  { %3317 = vrot.lane.b32.xlu1 %v3193_v9, %s7951_s25  ;;  %3299 = vrot.lane.b32.xlu0 %v3040_v3, %s7951_s25  ;;  %v10151_v7 = vrot.slane %v2726_v12, %v8048_v18  ;;  %v1003_v50 = vrot.slane %v10100_v61, 7  ;;  %v1006_v36 = vrot.slane %v10137_v39, 7  ;;  %v1490_v0 = vcombine.low %v541_v11, %v10088_v6 }
 0x10b   :  { %v2647_v54 = vcombine.low %v9875_v32, %v10081_v29  ;;  %v2648_v38 = vcombine.low %v963_v28, %v10100_v61  ;;  %v903_v51 = vrot.slane %v901_v41, 2  ;;  %v10169_v46 = vrot.slane %v1474_v35, %v8048_v18  ;;  %v53_v28 = vld [vmem:[%s12440_s0 + $0xc0] sm:$0xff] }
 0x10c   :  { %v10129_v9 = vpop.permute.xlu1 %2523  ;;  %v10131_v3 = vpop.permute.xlu0 %2505  ;;  %v2424_v17 = vcombine.low %v10078_v27, %v541_v11  ;;  %v906_v1 = vrot.slane %v904_v62, 2  ;;  %v910_v59 = vrot.slane %v10141_v53, 7  ;;  %v4160_v56 = vsel %vm4144_vm9, %v4134_v42, %v12675_v31 }
 0x10d   :  { %12671 = vst [vmem:[#allocation22_spill] sm:$0xff] %v10129_v9  ;;  %12672 = vst [vmem:[#allocation13_spill] sm:$0xff] %v10131_v3  ;;  %v3430_v55 = vcombine.low %v10100_v61, %v10137_v39  ;;  %v7590_v19 = vrot.slane %v10081_v29, 9  ;;  %v1002_v3 = vrot.slane %v1000_v34, 2  ;;  %v3645_v27 = vrot.slane %v3638_v60, %v8048_v18 }
 0x10e   :  { %4079 = vrot.lane.b32.xlu1 %v4012_v4, %s7949_s23  ;;  %4061 = vrot.lane.b32.xlu0 %v3979_v23, %s7949_s23  ;;  %v10162_v4 = vld.sshfl [vmem:[%s12440_s0 + $0xa8] sm:$0x33 pattern:$0x76325410]  ;;  %12674 = vst [vmem:[#allocation45_spill] sm:$0xff] %v10169_v46  ;;  %v1005_v11 = vrot.slane %v1003_v50, 2  ;;  %v10186_v63 = vrot.slane %v1490_v0, %v8048_v18  ;;  %v902_v31 = vsel %vm8076_vm6, %v900_v5, %v901_v41 }
 0x10f   :  { %v1008_v35 = vrot.slane %v1006_v36, 2  ;;  %v905_v61 = vsel %vm8076_vm6, %v903_v51, %v904_v62  ;;  %v10193_v42 = vrot.slane %v53_v28, %v8048_v18  ;;  %v10200_v60 = vrot.slane %v2424_v17, %v8048_v18 }
 0x110   :  { %v10164_v23 = vpop.permute.xlu1 %3745  ;;  %v10166_v12 = vpop.permute.xlu0 %3727  ;;  %12676 = vst [vmem:[#allocation10_spill] sm:$0xff] %v10186_v63  ;;  %v10203_v9 = vrot.slane %v2647_v54, %v8048_v18  ;;  %v908_v0 = vsel %vm8076_vm6, %v906_v1, %v907_v22  ;;  %v10209_v5 = vsel %vm8076_vm6, %v909_v16, %v910_v59  ;;  %v10212_v51 = vrot.slane %v3430_v55, %v8048_v18 }
 0x111   :  { %12677 = vst [vmem:[#allocation46_spill] sm:$0xff] %v10193_v42  ;;  %v10215_v41 = vrot.slane %v2648_v38, %v8048_v18  ;;  %v1001_v17 = vsel %vm8076_vm6, %v7590_v19, %v1000_v34  ;;  %v10221_v62 = vsel %vm8076_vm6, %v1002_v3, %v1003_v50  ;;  %v1924_v1 = vcombine.low %v902_v31, %v905_v61 }
 0x112   :  { %2031 = vrot.lane.b32.xlu1 %v1922_v15, %s7950_s24  ;;  %2013 = vrot.lane.b32.xlu0 %v1769_v57, %s7950_s24  ;;  %v1007_v55 = vsel %vm8076_vm6, %v1005_v11, %v1006_v36  ;;  %v12678_v59 = vrot.slane %v10162_v4, 7  ;;  %v1940_v19 = vcombine.low %v908_v0, %v10209_v5  ;;  %v3194_v50 = vcombine.low %v9920_v26, %v902_v31 }
 0x113   :  { %v357_v3 = vcombine.high %v53_v28, %v53_v28  ;;  %v10244_v54 = vcombine.low %v10169_v46, %v10186_v63  ;;  %v3800_v38 = vcombine.low %v1001_v17, %v10221_v62  ;;  %v3195_v11 = vcombine.low %v905_v61, %v908_v0  ;;  %v12697_v46 = vld [vmem:[#allocation18_spill] sm:$0xff] }
 0x114   :  { %v10195_v15 = vpop.permute.xlu1 %2811  ;;  %v10197_v57 = vpop.permute.xlu0 %2793  ;;  %v10232_v22 = vsel %vm8076_vm6, %v1008_v35, %v12678_v59  ;;  %v3646_v35 = vcombine.low %v3645_v27, %v10212_v51  ;;  %v2734_v26 = vcombine.low %v10151_v7, %v10200_v60  ;;  %v2663_v28 = vcombine.low %v10203_v9, %v10215_v41 }
 0x115   :  { %v3801_v31 = vcombine.low %v1007_v55, %v10232_v22  ;;  %v12681_v27 = vcombine.low %v12670_v33, %v9961_v45  ;;  %v10264_v7 = vrot.slane %v1924_v1, %v8048_v18  ;;  %v10267_v9 = vrot.slane %v1940_v19, %v8048_v18 }
 0x116   :  { %3593 = vrot.lane.b32.xlu1 %v3509_v58, %s7947_s21  ;;  %3575 = vrot.lane.b32.xlu0 %v9982_v10, %s7947_s21  ;;  %v10238_v58 = vcombine.high %v10193_v42, %v10193_v42  ;;  %v12680_v10 = vld [vmem:[#allocation7_spill] sm:$0xff]  ;;  %v10270_v61 = vrot.slane %v3194_v50, %v8048_v18  ;;  %v3808_v33 = vrot.slane %v3800_v38, %v8048_v18 }
 0x117   :  { %v4151_v16 = vsel %vm4144_vm9, %v4125_v25, %v12680_v10  ;;  %v4186_v25 = vsel %vm4170_vm10, %v4160_v56, %v9906_v14  ;;  %12682 = vst [vmem:[#allocation12_spill] sm:$0xff] %v10267_v9  ;;  %v10273_v14 = vrot.slane %v357_v3, %v8048_v18  ;;  %v10285_v0 = vrot.slane %v3195_v11, %v8048_v18 }
 0x118   :  { %12679 = vst [vmem:[#allocation47_spill] sm:$0xff] %v10238_v58  ;;  %v3926_v34 = vpop.permute.xlu1 %3925  ;;  %v3908_v36 = vpop.permute.xlu0 %3907  ;;  %v4177_v59 = vsel %vm4170_vm10, %v4151_v16, %v9908_v21  ;;  %v786_v21 = vrot.slane %v10238_v58, 7  ;;  %v3041_v1 = vcombine.low %v9948_v44, %v1001_v17  ;;  %v2440_v19 = vcombine.low %v10088_v6, %v10141_v53 }
 0x119   :  { %12683 = vst [vmem:[#allocation9_spill] sm:$0xff] %v10273_v14  ;;  %v4212_v50 = vsel %vm4196_vm11, %v4186_v25, %v9998_v24  ;;  %v4203_v3 = vsel %vm4196_vm11, %v4177_v59, %v10000_v49  ;;  %v3815_v10 = vrot.slane %v3801_v31, %v8048_v18  ;;  %v3042_v16 = vcombine.low %v10221_v62, %v1007_v55 }
 0x11a   :  { %2531 = vrot.lane.b32.xlu1 %v9970_v40, %s7946_s20  ;;  %2513 = vrot.lane.b32.xlu0 %v12681_v27, %s7946_s20  ;;  %v69_v40 = vld [vmem:[%s12440_s0 + $0x140] sm:$0xff]  ;;  %v4238_v38 = vsel %vm4222_vm12, %v4212_v50, %v10095_v47  ;;  %v4229_v11 = vsel %vm4222_vm12, %v4203_v3, %v10097_v2  ;;  %v7578_v44 = vrot.slane %v10193_v42, 9  ;;  %v788_v17 = vrot.slane %v786_v21, 2  ;;  %v51_v50 = vld [vmem:[%s12440_s0 + $0xb0] sm:$0xff] }
 0x11b   :  { %v549_v24 = vcombine.high %v69_v40, %v69_v40  ;;  %v4264_v49 = vsel %vm4248_vm13, %v4238_v38, %v10164_v23  ;;  %v4255_v53 = vsel %vm4248_vm13, %v4229_v11, %v10166_v12  ;;  %v12535_v47 = vrot.slane %v10273_v14, 7 }
 0x11c   :  { %v10279_v45 = vpop.permute.xlu1 %3311  ;;  %v10281_v56 = vpop.permute.xlu0 %3293  ;;  %v4290_v62 = vsel %vm4274_vm14, %v4264_v49, %v3926_v34  ;;  %v4281_v2 = vsel %vm4274_vm14, %v4255_v53, %v3908_v36  ;;  %v10314_v25 = vrot.slane %v69_v40, %v8048_v18  ;;  %v3049_v12 = vrot.slane %v3041_v1, %v8048_v18  ;;  %v12689_v49 = vld [vmem:[#allocation23_spill] sm:$0xff] }
 0x11d   :  { %v2664_v27 = vcombine.low %v10137_v39, %v10162_v4  ;;  %v3816_v34 = vcombine.low %v3808_v33, %v3815_v10  ;;  %v3056_v36 = vrot.slane %v3042_v16, %v8048_v18  ;;  %v7610_v40 = vcombine.high %v9875_v32, %v10081_v29 }
 0x11e   :  { %3753 = vrot.lane.b32.xlu1 %v10244_v54, %s7948_s22  ;;  %3735 = vrot.lane.b32.xlu0 %v3646_v35, %s7948_s22  ;;  %v3849_v35 = vcombine.low %v10264_v7, %v10267_v9  ;;  %v787_v1 = vsel %vm8076_vm6, %v7578_v44, %v786_v21  ;;  %v790_v39 = vsel %vm8076_vm6, %v788_v17, %v12535_v47  ;;  %v12694_v47 = vld [vmem:[#allocation8_spill] sm:$0xff] }
 0x11f   :  { %v10343_v32 = vcombine.high %v10314_v25, %v10314_v25  ;;  %v3210_v29 = vcombine.low %v10270_v61, %v10285_v0  ;;  %v10352_v21 = vrot.slane %v2440_v19, %v8048_v18  ;;  %v3057_v3 = vcombine.low %v3049_v12, %v3056_v36  ;;  %v10365_v61 = vld.sshfl [vmem:[%s12440_s0 + $0x148] sm:$0x33 pattern:$0x76325410] }
 0x120   :  { %v4074_v55 = vpop.permute.xlu1 %4073  ;;  %v4056_v31 = vpop.permute.xlu0 %4055  ;;  %v10360_v10 = vrot.slane %v2664_v27, %v8048_v18  ;;  %v1771_v16 = vcombine.low %v787_v1, %v790_v39  ;;  %v12687_v0 = vld [vmem:[#allocation31_spill] sm:$0xff]  ;;  %v10370_v38 = vrot.slane %v7610_v40, %v8048_v18  ;;  %v2271_v11 = vcombine.low %v10238_v58, %v10273_v14  ;;  %v12699_v58 = vld [vmem:[#allocation17_spill] sm:$0xff] }
 0x121   :  { %v4316_v23 = vsel %vm4300_vm15, %v4290_v62, %v4074_v55  ;;  %v4307_v59 = vsel %vm4300_vm15, %v4281_v2, %v4056_v31  ;;  %12686 = vst [vmem:[#allocation56_spill] sm:$0xff] %v10352_v21  ;;  %v1404_v19 = vcombine.low %v10093_v37, %v12687_v0  ;;  %v1491_v2 = vcombine.low %v10314_v25, %v10343_v32  ;;  %v12700_v37 = vld [vmem:[#allocation26_spill] sm:$0xff] }
 0x122   :  { %2819 = vrot.lane.b32.xlu1 %v2734_v26, %s7945_s19  ;;  %2801 = vrot.lane.b32.xlu0 %v2663_v28, %s7945_s19  ;;  %v10335_v26 = vrot.slane %v549_v24, %v8048_v18  ;;  %v12688_v24 = vld [vmem:[#allocation33_spill] sm:$0xff]  ;;  %v1034_v55 = vcombine.high %v51_v50, %v51_v50  ;;  %v10387_v31 = vrot.slane %v51_v50, %v8048_v18  ;;  %v7586_v36 = vrot.slane %v10314_v25, 9 }
 0x123   :  { %7793 = vmatmul.mubr.msk.f32.gmra.mxu0 %vm4335_vm1, %v4307_v59  ;;  %7820 = vmatmul.mubr.msk.f32.gmra.mxu1 %vm4335_vm1, %v4316_v23  ;;  %v1939_v23 = vcombine.low %v9991_v52, %v10264_v7  ;;  %v3980_v27 = vcombine.low %v10215_v41, %v10360_v10  ;;  %v914_v40 = vrot.slane %v10343_v32, 7  ;;  %v10405_v52 = vsel %vm4118_vm8, %v1404_v19, %v10059_v48 }
 0x124   :  { %v10337_v28 = vpop.permute.xlu1 %2025  ;;  %v10339_v33 = vpop.permute.xlu0 %2007  ;;  %7795 = vmatprep.mubr.msk.f32.mxu0 %vm7954_vm7, %v12659_v20  ;;  %7822 = vmatprep.mubr.msk.f32.mxu1 %vm7954_vm7, %v12659_v20  ;;  %v10376_v44 = vcombine.high %v10335_v26, %v10335_v26  ;;  %v3445_v7 = vcombine.low %v10370_v38, %v10212_v51  ;;  %v10410_v1 = vrot.slane %v2271_v11, %v8048_v18  ;;  %v917_v51 = vrot.slane %v10335_v26, 7 }
 0x125   :  { %12684 = vst [vmem:[#allocation7_spill] sm:$0xff] %v10337_v28  ;;  %12685 = vst [vmem:[#allocation55_spill] sm:$0xff] %v10339_v33  ;;  %v10419_v50 = vrot.slane %v1491_v2, %v8048_v18  ;;  %v1049_v48 = vcombine.high %v10387_v31, %v10387_v31  ;;  %v2441_v0 = vcombine.low %v10343_v32, %v10335_v26  ;;  %v916_v53 = vrot.slane %v914_v40, 2 }
 0x126   :  { %3933 = vrot.lane.b32.xlu1 %v3849_v35, %s7952_s26  ;;  %3915 = vrot.lane.b32.xlu0 %v3816_v34, %s7952_s26  ;;  %v4013_v35 = vcombine.low %v10200_v60, %v10352_v21  ;;  %v1785_v34 = vrot.slane %v1771_v16, %v8048_v18  ;;  %v1507_v39 = vcombine.low %v10335_v26, %v10376_v44  ;;  %v920_v19 = vrot.slane %v10376_v44, 7 }
 0x127   :  { %12692 = vst [vmem:[#allocation23_spill] sm:$0xff] %v10419_v50  ;;  %v3647_v16 = vcombine.low %v10162_v4, %v10387_v31  ;;  %v10434_v38 = vcombine.high %v10162_v4, %v10162_v4  ;;  %v2735_v2 = vcombine.low %v10088_v6, %v10314_v25  ;;  %v1086_v32 = vrot.slane %v1049_v48, 7 }
 0x128   :  { %v10380_v17 = vpop.permute.xlu1 %3587  ;;  %v10382_v62 = vpop.permute.xlu0 %3569  ;;  %v1786_v11 = vcombine.low %v10017_v8, %v1785_v34  ;;  %v10444_v26 = vrot.slane %v1507_v39, %v8048_v18  ;;  %v919_v63 = vrot.slane %v917_v51, 2  ;;  %v922_v33 = vrot.slane %v920_v19, 2 }
 0x129   :  { %v12702_v28 = vrot.slane %v10162_v4, 7  ;;  %v1012_v9 = vrot.slane %v10434_v38, 7 }
 0x12a   :  { %3319 = vrot.lane.b32.xlu1 %v3210_v29, %s7951_s25  ;;  %3301 = vrot.lane.b32.xlu0 %v3057_v3, %s7951_s25  ;;  %v10422_v3 = vrot.slane %v1034_v55, %v8048_v18  ;;  %v12693_v55 = vld [vmem:[#allocation11_spill] sm:$0xff] }
 0x12b   :  { %v2665_v59 = vcombine.low %v12694_v47, %v12693_v55  ;;  %12695 = vst [vmem:[#allocation11_spill] sm:$0xff] %v10444_v26  ;;  %v12696_v55 = vld [vmem:[#allocation16_spill] sm:$0xff]  ;;  %v1011_v21 = vrot.slane %v12702_v28, 2 }
 0x12c   :  { %v10414_v41 = vpop.permute.xlu1 %2525  ;;  %v10416_v29 = vpop.permute.xlu0 %2507  ;;  %v10448_v12 = vcombine.high %v10422_v3, %v10422_v3  ;;  %v3648_v34 = vcombine.low %v1049_v48, %v10422_v3  ;;  %v12698_v42 = vcombine.low %v12696_v55, %v12697_v46  ;;  %v7594_v48 = vrot.slane %v10387_v31, 9 }
 0x12d   :  { %12690 = vst [vmem:[#allocation31_spill] sm:$0xff] %v10414_v41  ;;  %12691 = vst [vmem:[#allocation33_spill] sm:$0xff] %v10416_v29  ;;  %v12701_v29 = vcombine.low %v12699_v58, %v12700_v37  ;;  %v3655_v46 = vrot.slane %v3647_v16, %v8048_v18  ;;  %v10479_v37 = vsel %vm8076_vm6, %v916_v53, %v917_v51  ;;  %v1088_v58 = vrot.slane %v1086_v32, 2 }
 0x12e   :  { %4081 = vrot.lane.b32.xlu1 %v4013_v35, %s7949_s23  ;;  %4063 = vrot.lane.b32.xlu0 %v3980_v27, %s7949_s23  ;;  %v1089_v35 = vrot.slane %v10422_v3, 7  ;;  %v10460_v39 = vrot.slane %v12698_v42, %v8048_v18  ;;  %v915_v42 = vsel %vm8076_vm6, %v7586_v36, %v914_v40  ;;  %v1092_v28 = vrot.slane %v10448_v12, 7 }
 0x12f   :  { %v10466_v41 = vrot.slane %v12701_v29, %v8048_v18  ;;  %v3662_v16 = vrot.slane %v3648_v34, %v8048_v18  ;;  %v10493_v36 = vrot.slane %v2735_v2, %v8048_v18  ;;  %v10496_v53 = vrot.slane %v2665_v59, %v8048_v18 }
 0x130   :  { %v10451_v27 = vpop.permute.xlu1 %3747  ;;  %v10453_v8 = vpop.permute.xlu0 %3729  ;;  %v1091_v29 = vrot.slane %v1089_v35, 2  ;;  %v921_v40 = vsel %vm8076_vm6, %v919_v63, %v920_v19  ;;  %v12703_v51 = vrot.slane %v10365_v61, 7  ;;  %v1013_v34 = vsel %vm8076_vm6, %v1011_v21, %v1012_v9  ;;  %v12705_v63 = vld [vmem:[#allocation27_spill] sm:$0xff] }
 0x131   :  { %v12704_v59 = vcombine.low %v12689_v49, %v12688_v24  ;;  %v1941_v19 = vcombine.low %v915_v42, %v10479_v37  ;;  %v1090_v9 = vsel %vm8076_vm6, %v1088_v58, %v1089_v35  ;;  %v10535_v24 = vcombine.high %v10273_v14, %v10273_v14  ;;  %v12707_v49 = vld [vmem:[#allocation22_spill] sm:$0xff] }
 0x132   :  { %2033 = vrot.lane.b32.xlu1 %v1939_v23, %s7950_s24  ;;  %2015 = vrot.lane.b32.xlu0 %v1786_v11, %s7950_s24  ;;  %v10490_v11 = vrot.slane %v2441_v0, %v8048_v18  ;;  %v10504_v55 = vsel %vm8076_vm6, %v922_v33, %v12703_v51  ;;  %v1087_v0 = vsel %vm8076_vm6, %v7594_v48, %v1086_v32 }
 0x133   :  { %v4126_v2 = vsel %vm4118_vm8, %v12704_v59, %v10061_v13  ;;  %v2286_v33 = vcombine.low %v12705_v63, %v10410_v1  ;;  %v1093_v21 = vsel %vm8076_vm6, %v1091_v29, %v1092_v28  ;;  %v3211_v13 = vcombine.low %v10209_v5, %v915_v42  ;;  %12706 = vst [vmem:[#allocation16_spill] sm:$0xff] %v10535_v24  ;;  %v12708_v42 = vld [vmem:[#allocation13_spill] sm:$0xff] }
 0x134   :  { %v10484_v47 = vpop.permute.xlu1 %2813  ;;  %v10486_v23 = vpop.permute.xlu0 %2795  ;;  %v3678_v35 = vcombine.low %v10419_v50, %v10444_v26  ;;  %v1957_v5 = vcombine.low %v921_v40, %v10504_v55  ;;  %v3817_v48 = vcombine.low %v1013_v34, %v1087_v0  ;;  %v4152_v58 = vsel %vm4144_vm9, %v4126_v2, %v12708_v42 }
 0x135   :  { %v3663_v29 = vcombine.low %v3655_v46, %v3662_v16  ;;  %v2743_v51 = vcombine.low %v10493_v36, %v10490_v11  ;;  %v2680_v59 = vcombine.low %v10360_v10, %v10496_v53  ;;  %v10555_v63 = vrot.slane %v1941_v19, %v8048_v18  ;;  %v12710_v10 = vld [vmem:[#allocation14_spill] sm:$0xff]  ;;  %v12711_v36 = vld [vmem:[#allocation15_spill] sm:$0xff] }
 0x136   :  { %3595 = vrot.lane.b32.xlu1 %v10244_v54, %s7947_s21  ;;  %3577 = vrot.lane.b32.xlu0 %v3445_v7, %s7947_s21  ;;  %v10531_v54 = vld.sshfl [vmem:[%s12440_s0 + $0xc8] sm:$0x33 pattern:$0x76325410]  ;;  %v4161_v7 = vsel %vm4144_vm9, %v10405_v52, %v12707_v49  ;;  %v12709_v52 = vcombine.low %v10068_v43, %v10200_v60  ;;  %v3818_v0 = vcombine.low %v1090_v9, %v1093_v21  ;;  %v792_v60 = vrot.slane %v10535_v24, 7 }
 0x137   :  { %v3212_v2 = vcombine.low %v10479_v37, %v921_v40  ;;  %v795_v46 = vrot.slane %v10531_v54, 7  ;;  %v10560_v16 = vrot.slane %v3211_v13, %v8048_v18  ;;  %v12712_v53 = vcombine.low %v12710_v10, %v12711_v36 }
 0x138   :  { %v3928_v1 = vpop.permute.xlu1 %3927  ;;  %v3910_v32 = vpop.permute.xlu0 %3909  ;;  %v607_v43 = vcombine.high %v10531_v54, %v10531_v54  ;;  %v4178_v37 = vsel %vm4170_vm10, %v4152_v58, %v10197_v57  ;;  %v10580_v9 = vrot.slane %v1957_v5, %v8048_v18  ;;  %v3825_v21 = vrot.slane %v3817_v48, %v8048_v18 }
 0x139   :  { %v10566_v49 = vrot.slane %v12712_v53, %v8048_v18  ;;  %v4204_v42 = vsel %vm4196_vm11, %v4178_v37, %v10281_v56  ;;  %v797_v48 = vrot.slane %v795_v46, 2 }
 0x13a   :  { %2533 = vrot.lane.b32.xlu1 %v12709_v52, %s7946_s20  ;;  %2515 = vrot.lane.b32.xlu0 %v2286_v33, %s7946_s20  ;;  %v4187_v33 = vsel %vm4170_vm10, %v4161_v7, %v10195_v15  ;;  %v3058_v15 = vcombine.low %v10232_v22, %v1013_v34  ;;  %v12713_v7 = vrot.slane %v10273_v14, 7  ;;  %v4230_v5 = vsel %vm4222_vm12, %v4204_v42, %v10382_v62 }
 0x13b   :  { %v4213_v13 = vsel %vm4196_vm11, %v4187_v33, %v10279_v45  ;;  %v3832_v45 = vrot.slane %v3818_v0, %v8048_v18  ;;  %v4256_v22 = vsel %vm4248_vm13, %v4230_v5, %v10453_v8  ;;  %v794_v34 = vrot.slane %v792_v60, 2 }
 0x13c   :  { %v10575_v40 = vpop.permute.xlu1 %3313  ;;  %v10577_v19 = vpop.permute.xlu0 %3295  ;;  %v791_v57 = vrot.slane %v12713_v7, 2  ;;  %v4239_v58 = vsel %vm4222_vm12, %v4213_v13, %v10380_v17  ;;  %v798_v52 = vrot.slane %v607_v43, 7  ;;  %v4282_v36 = vsel %vm4274_vm14, %v4256_v22, %v3910_v32 }
 0x13d   :  { %v4265_v56 = vsel %vm4248_vm13, %v4239_v58, %v10451_v27  ;;  %v3066_v33 = vrot.slane %v3058_v15, %v8048_v18  ;;  %v2457_v8 = vcombine.low %v10376_v44, %v10365_v61  ;;  %v7616_v32 = vcombine.high %v10162_v4, %v10387_v31 }
 0x13e   :  { %3755 = vrot.lane.b32.xlu1 %v3678_v35, %s7948_s22  ;;  %3737 = vrot.lane.b32.xlu0 %v3663_v29, %s7948_s22  ;;  %v4291_v17 = vsel %vm4274_vm14, %v4265_v56, %v3928_v1  ;;  %v3850_v35 = vcombine.low %v10555_v63, %v10580_v9  ;;  %v3226_v29 = vrot.slane %v3212_v2, %v8048_v18 }
 0x13f   :  { %v3833_v1 = vcombine.low %v3825_v21, %v3832_v45  ;;  %v3982_v2 = vcombine.low %v10422_v3, %v10448_v12  ;;  %v793_v43 = vsel %vm8076_vm6, %v791_v57, %v792_v60  ;;  %v796_v44 = vsel %vm8076_vm6, %v794_v34, %v795_v46  ;;  %v71_v60 = vld [vmem:[%s12440_s0 + $0x150] sm:$0xff] }
 0x140   :  { %v4076_v62 = vpop.permute.xlu1 %4075  ;;  %v4058_v53 = vpop.permute.xlu0 %4057  ;;  %v3227_v31 = vcombine.low %v10560_v16, %v3226_v29  ;;  %v10636_v3 = vrot.slane %v2457_v8, %v8048_v18  ;;  %v3074_v13 = vcombine.low %v3066_v33, %v10566_v49  ;;  %v3989_v42 = vrot.slane %v7616_v32, %v8048_v18  ;;  %v12714_v34 = vld [vmem:[#allocation8_spill] sm:$0xff]  ;;  %v10685_v29 = vld.sshfl [vmem:[%s12440_s0 + $0xb8] sm:$0x33 pattern:$0x76325410] }
 0x141   :  { %v4317_v0 = vsel %vm4300_vm15, %v4291_v17, %v4076_v62  ;;  %v4308_v27 = vsel %vm4300_vm15, %v4282_v36, %v4058_v53  ;;  %v3996_v15 = vrot.slane %v3982_v2, %v8048_v18  ;;  %v7614_v57 = vcombine.high %v10088_v6, %v10314_v25  ;;  %v12715_v62 = vld [vmem:[#allocation12_spill] sm:$0xff] }
 0x142   :  { %2821 = vrot.lane.b32.xlu1 %v2743_v51, %s7945_s19  ;;  %7823 = vmatmul.mubr.msk.f32.gmra.mxu1 %vm4335_vm1, %v4317_v0  ;;  %v799_v51 = vsel %vm8076_vm6, %v797_v48, %v798_v52  ;;  %v573_v58 = vcombine.high %v71_v60, %v71_v60  ;;  %v10655_v5 = vrot.slane %v71_v60, %v8048_v18  ;;  %v12716_v32 = vrot.slane %v10365_v61, 7 }
 0x143   :  { %2803 = vrot.lane.b32.xlu0 %v2680_v59, %s7945_s19  ;;  %7796 = vmatmul.mubr.msk.f32.gmra.mxu0 %vm4335_vm1, %v4308_v27  ;;  %v1787_v59 = vcombine.low %v793_v43, %v796_v44  ;;  %v1788_v46 = vcombine.low %v799_v51, %v12710_v10  ;;  %v3446_v10 = vcombine.low %v10162_v4, %v10434_v38  ;;  %v1095_v44 = vrot.slane %v10685_v29, 7  ;;  %v12717_v51 = vld [vmem:[#allocation48_spill] sm:$0xff] }
 0x144   :  { %v10625_v37 = vpop.permute.xlu1 %2027  ;;  %v10627_v21 = vpop.permute.xlu0 %2009  ;;  %7798 = vmatprep.mubr.msk.f32.mxu0 %vm7954_vm7, %v12659_v20  ;;  %7825 = vmatprep.mubr.msk.f32.mxu1 %vm7954_vm7, %v12659_v20  ;;  %v4014_v49 = vcombine.low %v10490_v11, %v10636_v3  ;;  %v3997_v56 = vcombine.low %v3989_v42, %v3996_v15  ;;  %v3518_v4 = vrot.slane %v7614_v57, %v8048_v18  ;;  %v925_v2 = vrot.slane %v12716_v32, 2  ;;  %v12721_v32 = vld [vmem:[#allocation38_spill] sm:$0xff] }
 0x145   :  { %v1795_v45 = vrot.slane %v1787_v59, %v8048_v18  ;;  %v1802_v48 = vrot.slane %v1788_v46, %v8048_v18  ;;  %v3453_v38 = vrot.slane %v3446_v10, %v8048_v18  ;;  %v2287_v22 = vcombine.low %v10535_v24, %v10531_v54 }
 0x146   :  { %3935 = vrot.lane.b32.xlu1 %v3850_v35, %s7952_s26  ;;  %v7601_v52 = vcombine.high %v10531_v54, %v12714_v34  ;;  %v10674_v17 = vrot.slane %v573_v58, %v8048_v18  ;;  %v588_v36 = vcombine.high %v10655_v5, %v10655_v5  ;;  %v1956_v53 = vcombine.low %v12715_v62, %v10555_v63  ;;  %v12719_v62 = vld [vmem:[#allocation39_spill] sm:$0xff] }
 0x147   :  { %3917 = vrot.lane.b32.xlu0 %v3833_v1, %s7952_s26  ;;  %v1803_v35 = vcombine.low %v1795_v45, %v1802_v48  ;;  %v10693_v0 = vcombine.high %v10365_v61, %v10365_v61  ;;  %v3519_v1 = vcombine.low %v3518_v4, %v10444_v26  ;;  %v10705_v43 = vcombine.high %v10685_v29, %v10685_v29  ;;  %v12718_v4 = vld [vmem:[#allocation19_spill] sm:$0xff]  ;;  %v12723_v26 = vld [vmem:[#allocation56_spill] sm:$0xff] }
 0x148   :  { %v10646_v7 = vpop.permute.xlu1 %3589  ;;  %v10648_v16 = vpop.permute.xlu0 %3571  ;;  %v10689_v54 = vcombine.high %v10674_v17, %v10674_v17  ;;  %v930_v27 = vrot.slane %v588_v36, 7  ;;  %v933_v33 = vrot.slane %v10674_v17, 7  ;;  %v2295_v59 = vrot.slane %v2287_v22, %v8048_v18 }
 0x149   :  { %v2302_v46 = vrot.slane %v7601_v52, %v8048_v18  ;;  %v1094_v60 = vrot.slane %v1092_v28, 2  ;;  %v1524_v42 = vcombine.low %v588_v36, %v10674_v17  ;;  %v3664_v15 = vcombine.low %v10448_v12, %v10685_v29  ;;  %v10731_v12 = vld.sshfl [vmem:[%s12440_s0 + $0xd8] sm:$0x33 pattern:$0x76325410] }
 0x14a   :  { %3321 = vrot.lane.b32.xlu1 %v3227_v31, %s7951_s25  ;;  %v3454_v31 = vcombine.low %v3453_v38, %v12717_v51  ;;  %v7587_v57 = vrot.slane %v10655_v5, 9  ;;  %v926_v10 = vrot.slane %v10693_v0, 7  ;;  %v932_v58 = vrot.slane %v930_v27, 2  ;;  %v12722_v51 = vld [vmem:[#allocation34_spill] sm:$0xff] }
 0x14b   :  { %3303 = vrot.lane.b32.xlu0 %v3074_v13, %s7951_s25  ;;  %v1508_v13 = vcombine.low %v10365_v61, %v10655_v5  ;;  %v2681_v38 = vcombine.low %v10731_v12, %v12718_v4  ;;  %v1097_v22 = vrot.slane %v1095_v44, 2  ;;  %v1098_v52 = vrot.slane %v10705_v43, 7 }
 0x14c   :  { %v10663_v6 = vpop.permute.xlu1 %2527  ;;  %v10665_v25 = vpop.permute.xlu0 %2509  ;;  %v1268_v28 = vcombine.low %v12722_v51, %v12721_v32  ;;  %v2303_v50 = vcombine.low %v2295_v59, %v2302_v46  ;;  %v10747_v14 = vrot.slane %v1524_v42, %v8048_v18  ;;  %v3671_v24 = vrot.slane %v3664_v15, %v8048_v18  ;;  %v12727_v42 = vld [vmem:[#allocation7_spill] sm:$0xff] }
 0x14d   :  { %v10744_v34 = vrot.slane %v1508_v13, %v8048_v18  ;;  %v12728_v15 = vld [vmem:[#allocation55_spill] sm:$0xff] }
 0x14e   :  { %4083 = vrot.lane.b32.xlu1 %v4014_v49, %s7949_s23  ;;  %v935_v49 = vrot.slane %v933_v33, 2  ;;  %12725 = vst [vmem:[#allocation17_spill] sm:$0xff] %v10747_v14 }
 0x14f   :  { %4065 = vrot.lane.b32.xlu0 %v3997_v56, %s7949_s23  ;;  %v2744_v56 = vcombine.low %v10655_v5, %v588_v36  ;;  %v2456_v36 = vcombine.low %v12723_v26, %v10490_v11  ;;  %12724 = vst [vmem:[#allocation18_spill] sm:$0xff] %v10744_v34  ;;  %v934_v26 = vsel %vm8076_vm6, %v932_v58, %v933_v33  ;;  %v12726_v11 = vrot.slane %v10689_v54, 7  ;;  %v12729_v58 = vld [vmem:[#allocation21_spill] sm:$0xff] }
 0x150   :  { %v10696_v63 = vpop.permute.xlu1 %3749  ;;  %v10698_v8 = vpop.permute.xlu0 %3731 }
 0x151   :  { %v2751_v13 = vrot.slane %v2744_v56, %v8048_v18 }
 0x152   :  { %2035 = vrot.lane.b32.xlu1 %v1956_v53, %s7950_s24  ;;  %v12720_v53 = vld [vmem:[#allocation32_spill] sm:$0xff] }
 0x153   :  { %2017 = vrot.lane.b32.xlu0 %v1803_v35, %s7950_s24  ;;  %v1421_v35 = vcombine.low %v12720_v53, %v12719_v62  ;;  %v927_v62 = vsel %vm8076_vm6, %v925_v2, %v926_v10  ;;  %v931_v53 = vsel %vm8076_vm6, %v7587_v57, %v930_v27  ;;  %v1096_v2 = vsel %vm8076_vm6, %v1094_v60, %v1095_v44  ;;  %v12730_v44 = vld [vmem:[#allocation31_spill] sm:$0xff] }
 0x154   :  { %v10723_v45 = vpop.permute.xlu1 %2815  ;;  %v10725_v48 = vpop.permute.xlu0 %2797  ;;  %v1099_v27 = vsel %vm8076_vm6, %v1097_v22, %v1098_v52  ;;  %v4127_v57 = vsel %vm4118_vm8, %v1268_v28, %v12728_v15  ;;  %v3679_v10 = vcombine.low %v10744_v34, %v10747_v14  ;;  %v1958_v56 = vcombine.low %v927_v62, %v931_v53  ;;  %v12731_v22 = vld [vmem:[#allocation33_spill] sm:$0xff] }
 0x155   :  { %v4136_v33 = vsel %vm4118_vm8, %v1421_v35, %v12727_v42  ;;  %v4153_v52 = vsel %vm4144_vm9, %v4127_v57, %v12731_v22  ;;  %v3834_v28 = vcombine.low %v1096_v2, %v1099_v27  ;;  %v3228_v32 = vcombine.low %v10504_v55, %v927_v62 }
 0x156   :  { %3597 = vrot.lane.b32.xlu1 %v3519_v1, %s7947_s21  ;;  %v10761_v1 = vsel %vm8076_vm6, %v935_v49, %v12726_v11  ;;  %v3672_v49 = vcombine.low %v3671_v24, %v12729_v58  ;;  %v4162_v60 = vsel %vm4144_vm9, %v4136_v33, %v12730_v44  ;;  %v4179_v24 = vsel %vm4170_vm10, %v4153_v52, %v10486_v23  ;;  %v12732_v33 = vld [vmem:[#allocation20_spill] sm:$0xff]  ;;  %v73_v23 = vld [vmem:[%s12440_s0 + $0x160] sm:$0xff] }
 0x157   :  { %3579 = vrot.lane.b32.xlu0 %v3454_v31, %s7947_s21  ;;  %v2688_v31 = vrot.slane %v2681_v38, %v8048_v18  ;;  %v1974_v38 = vcombine.low %v934_v26, %v10761_v1  ;;  %v4188_v51 = vsel %vm4170_vm10, %v4162_v60, %v10484_v47  ;;  %v2752_v42 = vcombine.low %v10636_v3, %v2751_v13 }
 0x158   :  { %v3930_v59 = vpop.permute.xlu1 %3929  ;;  %v3912_v46 = vpop.permute.xlu0 %3911  ;;  %v4205_v55 = vsel %vm4196_vm11, %v4179_v24, %v10577_v19  ;;  %v3229_v2 = vcombine.low %v931_v53, %v934_v26  ;;  %v7605_v47 = vcombine.high %v10365_v61, %v10655_v5  ;;  %v2474_v58 = vcombine.low %v10674_v17, %v10689_v54  ;;  %v12736_v24 = vld [vmem:[#allocation40_spill] sm:$0xff] }
 0x159   :  { %v2689_v15 = vcombine.low %v12732_v33, %v2688_v31  ;;  %v4231_v31 = vsel %vm4222_vm12, %v4205_v55, %v10648_v16  ;;  %v10814_v19 = vrot.slane %v1974_v38, %v8048_v18  ;;  %v3236_v16 = vrot.slane %v3228_v32, %v8048_v18  ;;  %v12737_v33 = vld [vmem:[#allocation42_spill] sm:$0xff] }
 0x15a   :  { %2535 = vrot.lane.b32.xlu1 %v2456_v36, %s7946_s20  ;;  %v4257_v53 = vsel %vm4248_vm13, %v4231_v31, %v10698_v8  ;;  %v3998_v38 = vcombine.low %v10685_v29, %v10705_v43  ;;  %v7611_v17 = vcombine.high %v10731_v12, %v12718_v4  ;;  %v972_v44 = vcombine.high %v73_v23, %v73_v23  ;;  %v12733_v29 = vld [vmem:[#allocation30_spill] sm:$0xff] }
 0x15b   :  { %2517 = vrot.lane.b32.xlu0 %v2303_v50, %s7946_s20  ;;  %v10783_v35 = vpop.f32.mrf.mxu0  ;;  %v4214_v50 = vsel %vm4196_vm11, %v4188_v51, %v10575_v40  ;;  %v10811_v40 = vrot.slane %v1958_v56, %v8048_v18  ;;  %v4283_v27 = vsel %vm4274_vm14, %v4257_v53, %v3912_v46  ;;  %v3243_v56 = vrot.slane %v3229_v2, %v8048_v18  ;;  %v10844_v46 = vld.sshfl [vmem:[%s12440_s0 + $0x158] sm:$0x33 pattern:$0x76325410]  ;;  %v12735_v51 = vld [vmem:[#allocation35_spill] sm:$0xff] }
 0x15c   :  { %v10790_v36 = vpop.permute.xlu1 %3315  ;;  %v10792_v11 = vpop.permute.xlu0 %3297  ;;  %v4240_v13 = vsel %vm4222_vm12, %v4214_v50, %v10646_v7  ;;  %v3841_v7 = vrot.slane %v3834_v28, %v8048_v18  ;;  %v10851_v60 = vcombine.high %v10844_v46, %v10844_v46  ;;  %v939_v22 = vrot.slane %v10844_v46, 7 }
 0x15d   :  { %v7776_v62 = vpop.f32.mrf.mxu0  ;;  %v4266_v5 = vsel %vm4248_vm13, %v4240_v13, %v10696_v63  ;;  %v10828_v63 = vrot.slane %v73_v23, %v8048_v18  ;;  %v10859_v4 = vrot.slane %v7605_v47, %v8048_v18  ;;  %v10862_v28 = vrot.slane %v2474_v58, %v8048_v18 }
 0x15e   :  { %3757 = vrot.lane.b32.xlu1 %v3679_v10, %s7948_s22  ;;  %v4292_v26 = vsel %vm4274_vm14, %v4266_v5, %v3930_v59  ;;  %v3851_v59 = vcombine.low %v10811_v40, %v10814_v19  ;;  %v3842_v43 = vcombine.low %v3841_v7, %v12733_v29  ;;  %v3244_v55 = vcombine.low %v3236_v16, %v3243_v56 }
 0x15f   :  { %3739 = vrot.lane.b32.xlu0 %v3672_v49, %s7948_s22  ;;  %v10866_v32 = vcombine.high %v10828_v63, %v10828_v63  ;;  %v4005_v62 = vrot.slane %v3998_v38, %v8048_v18  ;;  %v10879_v2 = vrot.slane %v7611_v17, %v8048_v18  ;;  %v3520_v47 = vcombine.low %v10365_v61, %v10693_v0  ;;  %v12740_v61 = vld [vmem:[#allocation2_spill] sm:$0xff] }
 0x160   :  { %v4078_v57 = vpop.permute.xlu1 %4077  ;;  %v4060_v10 = vpop.permute.xlu0 %4059  ;;  %v10885_v13 = vrot.slane %v972_v44, %v8048_v18  ;;  %v1525_v31 = vcombine.low %v10689_v54, %v10844_v46  ;;  %v12739_v5 = vrot.slane %v10689_v54, 7  ;;  %v941_v7 = vrot.slane %v939_v22, 2  ;;  %v12741_v54 = vld [vmem:[#allocation24_spill] sm:$0xff] }
 0x161   :  { %v4318_v8 = vsel %vm4300_vm15, %v4292_v26, %v4078_v57  ;;  %v4309_v49 = vsel %vm4300_vm15, %v4283_v27, %v4060_v10  ;;  %v1016_v23 = vrot.slane %v10866_v32, 7  ;;  %v942_v16 = vrot.slane %v10851_v60, 7 }
 0x162   :  { %2823 = vrot.lane.b32.xlu1 %v2752_v42, %s7945_s19  ;;  %7826 = vmatmul.mubr.msk.f32.gmra.mxu1 %vm4335_vm1, %v4318_v8  ;;  %v938_v53 = vrot.slane %v12739_v5, 2  ;;  %v10898_v0 = vsub.s32 0, %v12740_v61  ;;  %v4015_v57 = vcombine.low %v10859_v4, %v10862_v28  ;;  %v1973_v10 = vcombine.low %v10580_v9, %v10811_v40  ;;  %v12742_v9 = vld [vmem:[#allocation49_spill] sm:$0xff] }
 0x163   :  { %2805 = vrot.lane.b32.xlu0 %v2689_v15, %s7945_s19  ;;  %7799 = vmatmul.mubr.msk.f32.gmra.mxu0 %vm4335_vm1, %v4309_v49  ;;  %v12738_v15 = vld [vmem:[#allocation41_spill] sm:$0xff]  ;;  %v7591_v58 = vrot.slane %v10828_v63, 9  ;;  %v4006_v8 = vcombine.low %v4005_v62, %v12741_v54  ;;  %v3680_v56 = vcombine.low %v10828_v63, %v10866_v32  ;;  %v2753_v38 = vcombine.low %v10844_v46, %v10828_v63 }
 0x164   :  { %v10854_v52 = vpop.permute.xlu1 %2029  ;;  %v10856_v12 = vpop.permute.xlu0 %2011  ;;  %7801 = vmatprep.mubr.msk.f32.mxu0 %vm7954_vm7, %v12659_v20  ;;  %7828 = vmatprep.mubr.msk.f32.mxu1 %vm7954_vm7, %v12659_v20  ;;  %v3463_v40 = vcombine.low %v12742_v9, %v10879_v2  ;;  %v1018_v17 = vrot.slane %v1016_v23, 2  ;;  %v1019_v44 = vrot.slane %v10885_v13, 7  ;;  %v10923_v62 = vrot.slane %v3520_v47, %v8048_v18 }
 0x165   :  { %12734 = vst [vmem:[#allocation26_spill] sm:$0xff] %v10856_v12  ;;  %v10926_v5 = vrot.slane %v1525_v31, %v8048_v18  ;;  %v943_v2 = vsel %vm8076_vm6, %v941_v7, %v942_v16  ;;  %v4626_v54 = vcombine.high %v10783_v35, %v10783_v35  ;;  %v1017_v47 = vsel %vm8076_vm6, %v7591_v58, %v1016_v23  ;;  %v12747_v7 = vld [vmem:[#allocation29_spill] sm:$0xff] }
 0x166   :  { %3937 = vrot.lane.b32.xlu1 %v3851_v59, %s7952_s26  ;;  %v4633_v59 = vrot.slane %v10783_v35, %v8048_v18  ;;  %v10949_v35 = vrot.slane %v2753_v38, %v8048_v18  ;;  %v10957_v23 = vsel %vm8076_vm6, %v1018_v17, %v1019_v44  ;;  %v3528_v58 = vcombine.low %v10923_v62, %v10747_v14 }
 0x167   :  { %3919 = vrot.lane.b32.xlu0 %v3842_v43, %s7952_s26  ;;  %v12743_v43 = vcombine.low %v10460_v39, %v10466_v41  ;;  %v3246_v38 = vcombine.low %v943_v2, %v1017_v47  ;;  %v7955_v62 = vmov 1966171168  }
 0x168   :  { %v10893_v26 = vpop.permute.xlu1 %3591  ;;  %v10895_v27 = vpop.permute.xlu0 %3573  ;;  %v10975_v14 = vunpack.c.l.s4 %v7955_v62 }
 0x169   :  { %v4482_v29 = vpop.f32.mrf.mxu0 }
 0x16a   :  { %3323 = vrot.lane.b32.xlu1 %v3244_v55, %s7951_s25  ;;  %v940_v55 = vsel %vm8076_vm6, %v938_v53, %v939_v22  ;;  %v4643_v9 = vcombine.high %v4482_v29, %v4482_v29  ;;  %v10935_v50 = vrot.slane %v4482_v29, %v8048_v18  ;;  %v10944_v22 = vrot.slane %v3680_v56, %v8048_v18  ;;  %v12746_v53 = vld [vmem:[#allocation50_spill] sm:$0xff] }
 0x16b   :  { %3305 = vrot.lane.b32.xlu0 %v12743_v43, %s7951_s25  ;;  %v7779_v31 = vpop.f32.mrf.mxu0  ;;  %v4641_v43 = vcombine.high %v4633_v59, %v4633_v59  ;;  %v3245_v56 = vcombine.low %v10761_v1, %v940_v55  ;;  %v12748_v1 = vld [vmem:[#allocation36_spill] sm:$0xff] }
 0x16c   :  { %v10937_v41 = vpop.permute.xlu1 %2529  ;;  %v10939_v39 = vpop.permute.xlu0 %2511  ;;  %v4657_v29 = vrot.slane %v4643_v9, %v8048_v18  ;;  %v4658_v42 = vcombine.high %v10935_v50, %v10935_v50  ;;  %v1975_v31 = vcombine.low %v940_v55, %v943_v2  ;;  %v10964_v9 = vrot.slane %v4626_v54, %v8048_v18  ;;  %v12749_v55 = vld [vmem:[#allocation28_spill] sm:$0xff] }
 0x16d   :  { %12744 = vst [vmem:[#allocation27_spill] sm:$0xff] %v10937_v41  ;;  %12745 = vst [vmem:[#allocation22_spill] sm:$0xff] %v10939_v39  ;;  %v3688_v39 = vcombine.low %v10926_v5, %v10944_v22  ;;  %v10988_v62 = vrot.slane %v3245_v56, %v8048_v18  ;;  %v10991_v2 = vrot.slane %v3246_v38, %v8048_v18  ;;  %v11006_v56 = vrot.slane %v1019_v44, 2 }
 0x16e   :  { %4085 = vrot.lane.b32.xlu1 %v4015_v57, %s7949_s23  ;;  %v4659_v16 = vcombine.high %v4657_v29, %v4657_v29  ;;  %v5151_v49 = vmax.f32 %v4633_v59, %v4658_v42  ;;  %v5152_v57 = vmax.f32 %v4641_v43, %v4657_v29  ;;  %v3852_v42 = vcombine.low %v1017_v47, %v10957_v23 }
 0x16f   :  { %4067 = vrot.lane.b32.xlu0 %v4006_v8, %s7949_s23  ;;  %v10973_v8 = vld.sshfl [vmem:[%s12440_s0 + $0x168] sm:$0x33 pattern:$0x76325410]  ;;  %v2475_v47 = vcombine.low %v10844_v46, %v10851_v60  ;;  %v11001_v22 = vrot.slane %v1975_v31, %v8048_v18  ;;  %v2762_v60 = vcombine.low %v10866_v32, %v10885_v13  ;;  %v12751_v44 = vcombine.low %v10636_v3, %v10859_v4 }
 0x170   :  { %v10966_v34 = vpop.permute.xlu1 %3751  ;;  %v10968_v17 = vpop.permute.xlu0 %3733  ;;  %v5153_v59 = vmax.f32 %v10964_v9, %v4659_v16  ;;  %v7643_v43 = vrot.slane %v5151_v49, 9  ;;  %v7653_v29 = vrot.slane %v5152_v57, 9  ;;  %v11009_v38 = vrot.slane %v3852_v42, %v8048_v18 }
 0x171   :  { %v11026_v42 = vcombine.high %v10973_v8, %v10973_v8  ;;  %v12753_v32 = vcombine.low %v12738_v15, %v12737_v33  ;;  %v11040_v3 = vrot.slane %v2475_v47, %v8048_v18  ;;  %v12754_v33 = vld [vmem:[#allocation37_spill] sm:$0xff] }
 0x172   :  { %3581 = vrot.lane.b32.xlu1 %v3463_v40, %s7947_s21  ;;  %v5291_v54 = vmax.f32 %v5152_v57, %v7653_v29  ;;  %v7663_v41 = vrot.slane %v5153_v59, 9  ;;  %v7615_v57 = vcombine.high %v10844_v46, %v10828_v63  ;;  %v11017_v29 = vcombine.high %v10885_v13, %v10885_v13  ;;  %v12755_v15 = vld [vmem:[#allocation25_spill] sm:$0xff] }
 0x173   :  { %2037 = vrot.lane.b32.xlu0 %v1973_v10, %s7950_s24  ;;  %v75_v10 = vld [vmem:[%s12440_s0 + $0x170] sm:$0xff]  ;;  %v5241_v31 = vmax.f32 %v5151_v49, %v7643_v43  ;;  %v12752_v63 = vcombine.low %v12736_v24, %v12735_v51  ;;  %v4128_v49 = vsel %vm4118_vm8, %v12753_v32, %v10627_v21  ;;  %v4007_v21 = vcombine.low %v12755_v15, %v12754_v33 }
 0x174   :  { %v10996_v12 = vpop.permute.xlu1 %2817  ;;  %v10998_v40 = vpop.permute.xlu0 %2799  ;;  %v5341_v16 = vmax.f32 %v5153_v59, %v7663_v41  ;;  %v11043_v4 = vrot.slane %v75_v10, %v8048_v18  ;;  %v11054_v59 = vrot.slane %v2762_v60, %v8048_v18  ;;  %v11057_v43 = vrot.slane %v7615_v57, %v8048_v18 }
 0x175   :  { %12750 = vst [vmem:[#allocation13_spill] sm:$0xff] %v10998_v40  ;;  %v5464_v40 = vrot.slane %v5291_v54, %v10898_v0  ;;  %v4137_v46 = vsel %vm4118_vm8, %v12752_v63, %v10625_v37  ;;  %v3261_v54 = vcombine.low %v10988_v62, %v10991_v2  ;;  %v1022_v47 = vrot.slane %v11017_v29, 7 }
 0x176   :  { %2537 = vrot.lane.b32.xlu1 %v12751_v44, %s7946_s20  ;;  %v5524_v41 = vrot.slane %v5341_v16, %v10898_v0  ;;  %v3538_v2 = vcombine.low %v10885_v13, %v11017_v29  ;;  %v12756_v62 = vrot.slane %v10973_v8, 7  ;;  %v4163_v60 = vsel %vm4144_vm9, %v4137_v46, %v10663_v6 }
 0x177   :  { %3599 = vrot.lane.b32.xlu0 %v3528_v58, %s7947_s21  ;;  %v5691_v51 = vsel %vm617_vm0, %v5241_v31, %v5464_v40  ;;  %v3860_v58 = vcombine.low %v11001_v22, %v11009_v38  ;;  %v1028_v38 = vrot.slane %v11026_v42, 7  ;;  %v4154_v57 = vsel %vm4144_vm9, %v4128_v49, %v10665_v25 }
 0x178   :  { %v3932_v24 = vpop.permute.xlu1 %3931  ;;  %v3914_v37 = vpop.permute.xlu0 %3913  ;;  %v11062_v16 = vsel %vm5701_vm2, %v5691_v51, %v5524_v41  ;;  %v1027_v40 = vrot.slane %v12756_v62, 2  ;;  %v11081_v44 = vcombine.high %v11043_v4, %v11043_v4  ;;  %v1058_v63 = vcombine.high %v75_v10, %v75_v10 }
 0x179   :  { %v11073_v31 = vpop.f32.mrf.mxu0  ;;  %v4189_v32 = vsel %vm4170_vm10, %v4163_v60, %v10723_v45  ;;  %v4180_v6 = vsel %vm4170_vm10, %v4154_v57, %v10725_v48  ;;  %v4642_v25 = vcombine.high %v10964_v9, %v10964_v9  ;;  %v1024_v41 = vrot.slane %v1022_v47, 2 }
 0x17a   :  { %3759 = vrot.lane.b32.xlu1 %v3688_v39, %s7948_s22  ;;  %v12757_v39 = vcombine.low %v12747_v7, %v12746_v53  ;;  %v4667_v46 = vrot.slane %v11073_v31, %v8048_v18  ;;  %v4215_v7 = vsel %vm4196_vm11, %v4189_v32, %v10790_v36  ;;  %v4206_v10 = vsel %vm4196_vm11, %v4180_v6, %v10792_v11 }
 0x17b   :  { %v7782_v45 = vpop.f32.mrf.mxu0  ;;  %v7595_v48 = vrot.slane %v11043_v4, 9  ;;  %v4241_v9 = vsel %vm4222_vm12, %v4215_v7, %v10893_v26  ;;  %v4232_v51 = vsel %vm4222_vm12, %v4206_v10, %v10895_v27  ;;  %v12758_v57 = vcombine.low %v12749_v55, %v12748_v1 }
 0x17c   :  { %3741 = vrot.lane.b32.xlu0 %v12757_v39, %s7948_s22  ;;  %v11091_v49 = vpop.permute.xlu1 %3317  ;;  %v11093_v53 = vpop.permute.xlu0 %3299  ;;  %v4675_v62 = vcombine.high %v4667_v46, %v4667_v46  ;;  %v5154_v60 = vmax.f32 %v4642_v25, %v4667_v46  ;;  %v4267_v36 = vsel %vm4248_vm13, %v4241_v9, %v10966_v34  ;;  %v4258_v11 = vsel %vm4248_vm13, %v4232_v51, %v10968_v17 }
 0x17d   :  { %v12759_v26 = vcombine.low %v10862_v28, %v10949_v35  ;;  %v1102_v27 = vrot.slane %v11081_v44, 7  ;;  %v11118_v39 = vrot.slane %v1058_v63, %v8048_v18  ;;  %v4293_v32 = vsel %vm4274_vm14, %v4267_v36, %v3932_v24  ;;  %v11190_v36 = vld [vmem:[%s12442_s3] ss:$0 sm:$0xff] }
 0x17e   :  { %3921 = vrot.lane.b32.xlu1 %v12758_v57, %s7952_s26  ;;  %v4284_v1 = vsel %vm4274_vm14, %v4258_v11, %v3914_v37  ;;  %v5155_v55 = vmax.f32 %v10935_v50, %v4675_v62  ;;  %v7673_v34 = vrot.slane %v5154_v60, 9  ;;  %v4016_v35 = vcombine.low %v11040_v3, %v11054_v59 }
 0x17f   :  { %v3689_v63 = vcombine.low %v10973_v8, %v11043_v4  ;;  %v3537_v50 = vcombine.low %v10926_v5, %v11057_v43  ;;  %v11136_v24 = vsel %vm8076_vm6, %v11006_v56, %v1022_v47  ;;  %v5786_v37 = vunpack.c.0.s8 %v10975_v14 }
 0x180   :  { %2825 = vrot.lane.b32.xlu0 %v12759_v26, %s7945_s19  ;;  %v4080_v6 = vpop.permute.xlu1 %4079  ;;  %v4062_v25 = vpop.permute.xlu0 %4061  ;;  %v5391_v7 = vmax.f32 %v5154_v60, %v7673_v34  ;;  %v7683_v10 = vrot.slane %v5155_v55, 9  ;;  %v12760_v45 = vrot.slane %v10973_v8, 7  ;;  %v11149_v43 = vsel %vm8076_vm6, %v1027_v40, %v1028_v38 }
 0x181   :  { %v4319_v17 = vsel %vm4300_vm15, %v4293_v32, %v4080_v6  ;;  %v4310_v46 = vsel %vm4300_vm15, %v4284_v1, %v4062_v25  ;;  %v1103_v56 = vsel %vm8076_vm6, %v7595_v48, %v1102_v27  ;;  %v11167_v40 = vcombine.high %v11118_v39, %v11118_v39 }
 0x182   :  { %3325 = vrot.lane.b32.xlu1 %v3261_v54, %s7951_s25  ;;  %7829 = vmatmul.mubr.msk.f32.gmra.mxu1 %vm4335_vm1, %v4319_v17  ;;  %v11145_v54 = vsel %vm8076_vm6, %v1024_v41, %v12760_v45  ;;  %v5441_v14 = vmax.f32 %v5155_v55, %v7683_v10  ;;  %v11163_v41 = vld.sshfl [vmem:[%s12440_s0 + $0x178] sm:$0x33 pattern:$0x76325410]  ;;  %v11177_v38 = vrot.slane %v3538_v2, %v8048_v18 }
 0x183   :  { %7802 = vmatmul.mubr.msk.f32.gmra.mxu0 %vm4335_vm1, %v4310_v46  ;;  %7831 = vmatprep.mubr.msk.f32.mxu1 %vm7954_vm7, %v12659_v20  ;;  %v3696_v48 = vrot.slane %v3689_v63, %v8048_v18  ;;  %v2763_v51 = vcombine.low %v11017_v29, %v10973_v8  ;;  %v7617_v62 = vcombine.high %v10973_v8, %v11043_v4  ;;  %v1111_v11 = vrot.slane %v11163_v41, 7 }
 0x184   :  { %3939 = vrot.lane.b32.xlu0 %v3860_v58, %s7952_s26  ;;  %v5584_v58 = vrot.slane %v5391_v7, %v10898_v0  ;;  %v11156_v47 = vpop.permute.xlu1 %2031  ;;  %v11158_v9 = vpop.permute.xlu0 %2013  ;;  %7804 = vmatprep.mubr.msk.f32.mxu0 %vm7954_vm7, %v12659_v20  ;;  %v5644_v60 = vrot.slane %v5441_v14, %v10898_v0  ;;  %v3861_v13 = vcombine.low %v11136_v24, %v11145_v54  ;;  %v1108_v15 = vrot.slane %v11167_v40, 7 }
 0x185   :  { %v3862_v29 = vcombine.low %v11149_v43, %v1103_v56  ;;  %v11197_v2 = vsub.s32 %v5786_v37, %v12740_v61  ;;  %v1990_v4 = vcombine.low %v10814_v19, %v11001_v22  ;;  %v11214_v61 = vld [vmem:[%s12443_s4] ss:$0 sm:$0xff]  ;;  %v2490_v19 = vcombine.low %v10862_v28, %v11040_v3 }
 0x186   :  { %v5713_v57 = vsel %vm5712_vm3, %v11062_v16, %v5584_v58  ;;  %4087 = vrot.lane.b32.xlu1 %v4016_v35, %s7949_s23  ;;  %v11207_v16 = vcombine.high %v11163_v41, %v11163_v41  ;;  %v1105_v22 = vrot.slane %v11118_v39, 7  ;;  %v3697_v1 = vcombine.low %v11177_v38, %v3696_v48 }
 0x187   :  { %v5724_v26 = vsel %vm5723_vm4, %v5713_v57, %v5644_v60  ;;  %v2777_v55 = vrot.slane %v2763_v51, %v8048_v18  ;;  %v3262_v34 = vcombine.low %v10957_v23, %v11136_v24  ;;  %v3869_v6 = vrot.slane %v3861_v13, %v8048_v18 }
 0x188   :  { %4069 = vrot.lane.b32.xlu0 %v4007_v21, %s7949_s23  ;;  %v11216_v32 = vpop.permute.xlu1 %3593  ;;  %v11218_v33 = vpop.permute.xlu0 %3575  ;;  %v5741_v21 = vmul.f32 %v11190_v36, %v5724_v26  ;;  %v3876_v25 = vrot.slane %v3862_v29, %v8048_v18  ;;  %v4024_v28 = vrot.slane %v7617_v62, %v8048_v18  ;;  %v3263_v3 = vcombine.low %v11145_v54, %v11149_v43 }
 0x189   :  { %v11236_v46 = vpop.f32.mrf.mxu0  ;;  %v1104_v23 = vrot.slane %v1102_v27, 2  ;;  %v1113_v35 = vrot.slane %v1111_v11, 2  ;;  %v1114_v63 = vrot.slane %v11207_v16, 7  ;;  %v4660_v7 = vcombine.high %v11073_v31, %v11073_v31 }
 0x18a   :  { %3601 = vrot.lane.b32.xlu1 %v3537_v50, %s7947_s21  ;;  %v5758_v17 = vadd.f32 %v11214_v61, %v5741_v21  ;;  %v4677_v10 = vcombine.high %v11236_v46, %v11236_v46  ;;  %v1107_v37 = vrot.slane %v1105_v22, 2  ;;  %v1110_v45 = vrot.slane %v1108_v15, 2 }
 0x18b   :  { %v7785_v43 = vpop.f32.mrf.mxu0  ;;  %v2778_v27 = vcombine.low %v11054_v59, %v2777_v55  ;;  %v3270_v56 = vrot.slane %v3262_v34, %v8048_v18  ;;  %v3539_v14 = vcombine.low %v10973_v8, %v11026_v42  ;;  %v3877_v58 = vcombine.low %v3869_v6, %v3876_v25 }
 0x18c   :  { %2039 = vrot.lane.b32.xlu0 %v1990_v4, %s7950_s24  ;;  %v11246_v50 = vpop.permute.xlu1 %2531  ;;  %v11248_v24 = vpop.permute.xlu0 %2513  ;;  %v11250_v54 = vmax.f32 %v5758_v17, 0.0  ;;  %v11257_v31 = vrot.slane %v4677_v10, %v8048_v18  ;;  %v3698_v48 = vcombine.low %v11081_v44, %v11118_v39  ;;  %v3699_v51 = vcombine.low %v11167_v40, %v11163_v41  ;;  %v12762_v17 = vld [vmem:[#allocation43_spill] sm:$0xff] }
 0x18d   :  { %v3277_v62 = vrot.slane %v3263_v3, %v8048_v18  ;;  %v1106_v8 = vsel %vm8076_vm6, %v1104_v23, %v1105_v22  ;;  %v1115_v42 = vsel %vm8076_vm6, %v1113_v35, %v1114_v63  ;;  %v11273_v60 = vrot.slane %v4660_v7, %v8048_v18  ;;  %v12761_v3 = vld [vmem:[#allocation4_spill] sm:$0xff]  ;;  %v12763_v35 = vld [vmem:[#allocation6_spill] sm:$0xff] }
 0x18e   :  { %3761 = vrot.lane.b32.xlu1 %v3697_v1, %s7948_s22  ;;  %v5790_v59 = vrot.slane %v11250_v54, %v11197_v2  ;;  %v4693_v44 = vcombine.high %v11257_v31, %v11257_v31  ;;  %v1109_v29 = vsel %vm8076_vm6, %v1107_v37, %v1108_v15  ;;  %v1112_v4 = vsel %vm8076_vm6, %v1110_v45, %v1111_v11 }
 0x18f   :  { %v3553_v22 = vrot.slane %v3539_v14, %v8048_v18  ;;  %v4027_v21 = vcombine.low %v11163_v41, %v11207_v16  ;;  %v3706_v34 = vrot.slane %v3698_v48, %v8048_v18  ;;  %v3713_v6 = vrot.slane %v3699_v51, %v8048_v18  ;;  %v12765_v48 = vld [vmem:[#allocation26_spill] sm:$0xff] }
 0x190   :  { %2539 = vrot.lane.b32.xlu0 %v2490_v19, %s7946_s20  ;;  %v3754_v57 = vpop.permute.xlu1 %3753  ;;  %v3736_v13 = vpop.permute.xlu0 %3735  ;;  %v5791_v26 = vcombine.high %v5790_v59, %v5790_v59  ;;  %v4025_v19 = vcombine.low %v2777_v55, %v4024_v28  ;;  %v11285_v1 = vmax.f32 %v11273_v60, %v4693_v44  ;;  %v4026_v30 = vcombine.low %v11118_v39, %v11167_v40  ;;  %v12764_v39 = vld [vmem:[#allocation44_spill] sm:$0xff] }
 0x191   :  { %v3278_v11 = vcombine.low %v3270_v56, %v3277_v62  ;;  %v3878_v15 = vcombine.low %v1106_v8, %v1109_v29  ;;  %v3879_v55 = vcombine.low %v1112_v4, %v1115_v42  ;;  %v11301_v28 = vrot.slane %v5790_v59, %v11197_v2  ;;  %v12766_v62 = vld [vmem:[#allocation27_spill] sm:$0xff]  ;;  %v12767_v42 = vld [vmem:[#allocation22_spill] sm:$0xff]  ;;  %v12768_v4 = vld [vmem:[#allocation13_spill] sm:$0xff] }
 0x192   :  { %3941 = vrot.lane.b32.xlu1 %v3877_v58, %s7952_s26  ;;  %v11294_v25 = vrot.slane %v5791_v26, %v11197_v2  ;;  %v1455_v23 = vcombine.low %v12762_v17, %v12761_v3  ;;  %v1302_v40 = vcombine.low %v12764_v39, %v12763_v35  ;;  %v3714_v63 = vcombine.low %v3706_v34, %v3713_v6 }
 0x193   :  { %v4034_v7 = vrot.slane %v4026_v30, %v8048_v18  ;;  %v4041_v10 = vrot.slane %v4027_v21, %v8048_v18  ;;  %v3554_v45 = vcombine.low %v11177_v38, %v3553_v22  ;;  %v3886_v43 = vrot.slane %v3878_v15, %v8048_v18 }
 0x194   :  { %2827 = vrot.lane.b32.xlu0 %v2778_v27, %s7945_s19  ;;  %v11296_v41 = vpop.permute.xlu1 %2819  ;;  %v11298_v16 = vpop.permute.xlu0 %2801  ;;  %v6178_v37 = vcombine.low %v11301_v28, %v11294_v25  ;;  %v3893_v27 = vrot.slane %v3879_v55, %v8048_v18  ;;  %v4138_v58 = vsel %vm4118_vm8, %v1455_v23, %v10854_v52  ;;  %v4129_v51 = vsel %vm4118_vm8, %v1302_v40, %v12765_v48 }
 0x195   :  { %v4042_v59 = vcombine.low %v4034_v7, %v4041_v10  ;;  %v4164_v8 = vsel %vm4144_vm9, %v4138_v58, %v12766_v62  ;;  %v4155_v38 = vsel %vm4144_vm9, %v4129_v51, %v12767_v42  ;;  %v7644_v10 = vrot.slane %v11285_v1, 9 }
 0x196   :  { %4089 = vrot.lane.b32.xlu1 %v4025_v19, %s7949_s23  ;;  %v3894_v44 = vcombine.low %v3886_v43, %v3893_v27  ;;  %v4190_v29 = vsel %vm4170_vm10, %v4164_v8, %v10996_v12  ;;  %v4181_v52 = vsel %vm4170_vm10, %v4155_v38, %v12768_v4  ;;  %vm7487_vm6 = vcmask 785408  }
 0x197   :  { %v4216_v22 = vsel %vm4196_vm11, %v4190_v29, %v11091_v49  ;;  %v4207_v21 = vsel %vm4196_vm11, %v4181_v52, %v11093_v53  ;;  %v5242_v62 = vmax.f32 %v11285_v1, %v7644_v10 }
 0x198   :  { %3327 = vrot.lane.b32.xlu0 %v3278_v11, %s7951_s25  ;;  %v3934_v56 = vpop.permute.xlu1 %3933  ;;  %v3916_v14 = vpop.permute.xlu0 %3915  ;;  %v4242_v34 = vsel %vm4222_vm12, %v4216_v22, %v11216_v32  ;;  %v4233_v6 = vsel %vm4222_vm12, %v4207_v21, %v11218_v33  ;;  %v4684_v33 = vrot.slane %v11236_v46, %v8048_v18 }
 0x199   :  { %v4268_v12 = vsel %vm4248_vm13, %v4242_v34, %v3754_v57  ;;  %v4259_v30 = vsel %vm4248_vm13, %v4233_v6, %v3736_v13  ;;  %v4676_v13 = vcombine.high %v11273_v60, %v11273_v60 }
 0x19a   :  { %3763 = vrot.lane.b32.xlu1 %v3714_v63, %s7948_s22  ;;  %v4294_v11 = vsel %vm4274_vm14, %v4268_v12, %v3934_v56  ;;  %v4285_v49 = vsel %vm4274_vm14, %v4259_v30, %v3916_v14  ;;  %v4692_v39 = vcombine.high %v4684_v33, %v4684_v33 }
 0x19c   :  { %3603 = vrot.lane.b32.xlu0 %v3554_v45, %s7947_s21  ;;  %v11330_v26 = vpop.permute.xlu1 %3319  ;;  %v11332_v19 = vpop.permute.xlu0 %3301 }
 0x19e   :  { %4091 = vrot.lane.b32.xlu1 %v4042_v59, %s7949_s23 }
 0x1a0   :  { %3943 = vrot.lane.b32.xlu0 %v3894_v44, %s7952_s26  ;;  %v4082_v15 = vpop.permute.xlu1 %4081  ;;  %v4064_v53 = vpop.permute.xlu0 %4063 }
 0x1a1   :  { %v4320_v55 = vsel %vm4300_vm15, %v4294_v11, %v4082_v15  ;;  %v4311_v32 = vsel %vm4300_vm15, %v4285_v49, %v4064_v53  ;;  %v4497_v57 = vpop.f32.mrf.mxu0 }
 0x1a2   :  { %7805 = vmatmul.mubr.msk.f32.gmra.mxu0 %vm4335_vm1, %v4311_v32  ;;  %7832 = vmatmul.mubr.msk.f32.gmra.mxu1 %vm4335_vm1, %v4320_v55  ;;  %v4694_v3 = vcombine.high %v4497_v57, %v4497_v57  ;;  %v4701_v17 = vrot.slane %v4497_v57, %v8048_v18  ;;  %v12769_v32 = vld [vmem:[#allocation51_spill] sm:$0xff] }
 0x1a3   :  { %7807 = vmatprep.mubr.msk.f32.mxu0 %vm7954_vm7, %v12659_v20  ;;  %7834 = vmatprep.mubr.msk.f32.mxu1 %vm7954_vm7, %v12659_v20  ;;  %v7788_v35 = vpop.f32.mrf.mxu0 }
 0x1a4   :  { %v11361_v23 = vpop.permute.xlu1 %2033  ;;  %v11363_v46 = vpop.permute.xlu0 %2015  ;;  %v4708_v40 = vrot.slane %v4694_v3, %v8048_v18  ;;  %v4709_v63 = vcombine.high %v4701_v17, %v4701_v17  ;;  %v5162_v7 = vmax.f32 %v4676_v13, %v4701_v17  ;;  %v12771_v13 = vld [vmem:[#allocation53_spill] sm:$0xff] }
 0x1a5   :  { %v12772_v3 = vld [vmem:[#allocation5_spill] sm:$0xff] }
 0x1a6   :  { %v4710_v45 = vcombine.high %v4708_v40, %v4708_v40  ;;  %v5163_v43 = vmax.f32 %v4684_v33, %v4709_v63  ;;  %v5164_v27 = vmax.f32 %v4692_v39, %v4708_v40  ;;  %v7654_v56 = vrot.slane %v5162_v7, 9  ;;  %v12770_v33 = vld [vmem:[#allocation3_spill] sm:$0xff] }
 0x1a7   :  { %v1472_v57 = vcombine.low %v12770_v33, %v12769_v32  ;;  %v1319_v17 = vcombine.low %v12772_v3, %v12771_v13  ;;  %v5806_v40 = vcombine.high %v11301_v28, %v11301_v28 }
 0x1a8   :  { %v3596_v60 = vpop.permute.xlu1 %3595  ;;  %v3578_v14 = vpop.permute.xlu0 %3577  ;;  %v5165_v58 = vmax.f32 %v11257_v31, %v4710_v45  ;;  %v5292_v48 = vmax.f32 %v5162_v7, %v7654_v56  ;;  %v7664_v51 = vrot.slane %v5163_v43, 9  ;;  %v7674_v59 = vrot.slane %v5164_v27, 9 }
 0x1a9   :  { %v4139_v10 = vsel %vm4118_vm8, %v1472_v57, %v11156_v47  ;;  %v4130_v45 = vsel %vm4118_vm8, %v1319_v17, %v11158_v9 }
 0x1aa   :  { %v5342_v8 = vmax.f32 %v5163_v43, %v7664_v51  ;;  %v5392_v42 = vmax.f32 %v5164_v27, %v7674_v59  ;;  %v7684_v38 = vrot.slane %v5165_v58, 9  ;;  %v5468_v44 = vrot.slane %v5292_v48, %v10898_v0 }
 0x1ab   :  { %v4165_v43 = vsel %vm4144_vm9, %v4139_v10, %v11246_v50  ;;  %v6294_v59 = vcombine.low %v11294_v25, %v5806_v40 }
 0x1ac   :  { %v11370_v29 = vpop.permute.xlu1 %2533  ;;  %v11372_v4 = vpop.permute.xlu0 %2515  ;;  %v5442_v52 = vmax.f32 %v5165_v58, %v7684_v38  ;;  %v5528_v22 = vrot.slane %v5342_v8, %v10898_v0  ;;  %v5588_v21 = vrot.slane %v5392_v42, %v10898_v0  ;;  %v5692_v31 = vsel %vm617_vm0, %v5242_v62, %v5468_v44 }
 0x1ad   :  { %v4156_v58 = vsel %vm4144_vm9, %v4130_v45, %v11248_v24  ;;  %v4191_v48 = vsel %vm4170_vm10, %v4165_v43, %v11296_v41  ;;  %v5922_v8 = vcombine.high %v11294_v25, %v11294_v25 }
 0x1ae   :  { %v5648_v34 = vrot.slane %v5442_v52, %v10898_v0  ;;  %v5703_v1 = vsel %vm5701_vm2, %v5692_v31, %v5528_v22  ;;  %v4182_v47 = vsel %vm4170_vm10, %v4156_v58, %v11298_v16  ;;  %v4217_v9 = vsel %vm4196_vm11, %v4191_v48, %v11330_v26  ;;  %v12775_v58 = vld [vmem:[#allocation45_spill] sm:$0xff]  ;;  %v12776_v48 = vld [vmem:[#allocation52_spill] sm:$0xff] }
 0x1af   :  { %v5714_v30 = vsel %vm5712_vm3, %v5703_v1, %v5588_v21  ;;  %v4208_v24 = vsel %vm4196_vm11, %v4182_v47, %v11332_v19  ;;  %v4243_v41 = vsel %vm4222_vm12, %v4217_v9, %v3596_v60  ;;  %v6304_v21 = vrot.slane %v6294_v59, %v11197_v2  ;;  %v12777_v9 = vld [vmem:[#allocation54_spill] sm:$0xff] }
 0x1b0   :  { %v3756_v6 = vpop.permute.xlu1 %3755  ;;  %v3738_v12 = vpop.permute.xlu0 %3737  ;;  %v5725_v11 = vsel %vm5723_vm4, %v5714_v30, %v5648_v34  ;;  %v4234_v38 = vsel %vm4222_vm12, %v4208_v24, %v3578_v14  ;;  %v1489_v59 = vcombine.low %v12776_v48, %v12775_v58 }
 0x1b1   :  { %v5742_v49 = vmul.f32 %v11190_v36, %v5725_v11  ;;  %v4269_v16 = vsel %vm4248_vm13, %v4243_v41, %v3756_v6  ;;  %v4260_v44 = vsel %vm4248_vm13, %v4234_v38, %v3738_v12 }
 0x1b2   :  { %v4140_v41 = vsel %vm4118_vm8, %v1489_v59, %v11361_v23 }
 0x1b3   :  { %v5759_v53 = vadd.f32 %v11214_v61, %v5742_v49  ;;  %v11453_v49 = vrot.slane %v6178_v37, %v11197_v2  ;;  %v12774_v37 = vld [vmem:[#allocation46_spill] sm:$0xff]  ;;  %v4166_v38 = vsel %vm4144_vm9, %v4140_v41, %v11370_v29  ;;  %v12781_v41 = vld [vmem:[#allocation23_spill] sm:$0xff] }
 0x1b4   :  { %v11382_v15 = vpop.permute.xlu1 %2821 }
 0x1b5   :  { %v11385_v55 = vpop.permute.xlu0 %2803  ;;  %v11391_v35 = vmax.f32 %v5759_v53, 0.0 }
 0x1b7   :  { %v5813_v63 = vrot.slane %v11391_v35, %v11197_v2 }
 0x1b8   :  { %v3936_v39 = vpop.permute.xlu1 %3935 }
 0x1b9   :  { %v3918_v7 = vpop.permute.xlu0 %3917  ;;  %v5814_v27 = vcombine.high %v5813_v63, %v5813_v63  ;;  %v11404_v56 = vrot.slane %v5813_v63, %v11197_v2  ;;  %v4295_v52 = vsel %vm4274_vm14, %v4269_v16, %v3936_v39  ;;  %v12773_v63 = vld [vmem:[#allocation47_spill] sm:$0xff] }
 0x1ba   :  { %v4286_v60 = vsel %vm4274_vm14, %v4260_v44, %v3918_v7  ;;  %v1321_v7 = vcombine.low %v12774_v37, %v12773_v63  ;;  %v12778_v37 = vld [vmem:[#allocation16_spill] sm:$0xff] }
 0x1bb   :  { %v11416_v50 = vrot.slane %v5814_v27, %v11197_v2  ;;  %v6179_v42 = vcombine.low %v5806_v40, %v11404_v56 }
 0x1bc   :  { %v3322_v51 = vpop.permute.xlu1 %3321  ;;  %v1335_v43 = vrot.slane %v1321_v7, %v8048_v18  ;;  %v12779_v7 = vld [vmem:[#allocation9_spill] sm:$0xff] }
 0x1bd   :  { %v3304_v62 = vpop.permute.xlu0 %3303  ;;  %v6295_v26 = vcombine.low %v5922_v8, %v11416_v50  ;;  %v6538_v19 = vcombine.low %v11404_v56, %v11416_v50  ;;  %v11436_v1 = vrot.slane %v6179_v42, %v11197_v2 }
 0x1be   :  { %v1336_v8 = vcombine.low %v12777_v9, %v1335_v43  ;;  %v12780_v43 = vld [vmem:[#allocation8_spill] sm:$0xff] }
 0x1bf   :  { %v6311_v14 = vrot.slane %v6295_v26, %v11197_v2  ;;  %v6210_v57 = vcombine.low %v11453_v49, %v11436_v1  ;;  %v4192_v26 = vsel %vm4170_vm10, %v4166_v38, %v11382_v15 }
 0x1c0   :  { %v4084_v22 = vpop.permute.xlu1 %4083  ;;  %v4131_v16 = vsel %vm4118_vm8, %v1336_v8, %v11363_v46 }
 0x1c1   :  { %v4321_v31 = vsel %vm4300_vm15, %v4295_v52, %v4084_v22  ;;  %v4066_v34 = vpop.permute.xlu0 %4065  ;;  %v11440_v12 = vpop.f32.mrf.mxu0  ;;  %v11447_v11 = vcombine.low %v6304_v21, %v6311_v14  ;;  %v4157_v52 = vsel %vm4144_vm9, %v4131_v16, %v11372_v4  ;;  %v4218_v22 = vsel %vm4196_vm11, %v4192_v26, %v3322_v51 }
 0x1c2   :  { %v4312_v6 = vsel %vm4300_vm15, %v4286_v60, %v4066_v34  ;;  %7835 = vmatmul.mubr.msk.f32.gmra.mxu1 %vm4335_vm1, %v4321_v31  ;;  %v11443_v30 = vpop.f32.mrf.mxu1  ;;  %v4183_v21 = vsel %vm4170_vm10, %v4157_v52, %v11385_v55 }
 0x1c3   :  { %7808 = vmatmul.mubr.msk.f32.gmra.mxu0 %vm4335_vm1, %v4312_v6  ;;  %7837 = vmatprep.mubr.msk.f32.mxu1 %vm7954_vm7, %v12659_v20  ;;  %v7791_v32 = vpop.f32.mrf.mxu0  ;;  %v4209_v29 = vsel %vm4196_vm11, %v4183_v21, %v3304_v62  ;;  %v4718_v21 = vrot.slane %v11440_v12, %v8048_v18 }
 0x1c4   :  { %v11455_v53 = vpop.permute.xlu1 %2035  ;;  %7810 = vmatprep.mubr.msk.f32.mxu0 %vm7954_vm7, %v12659_v20  ;;  %v7818_v33 = vpop.f32.mrf.mxu1 }
 0x1c5   :  { %v11461_v13 = vpop.permute.xlu0 %2017 }
 0x1c8   :  { %v3598_v3 = vpop.permute.xlu1 %3597 }
 0x1c9   :  { %v3580_v17 = vpop.permute.xlu0 %3579  ;;  %v4244_v23 = vsel %vm4222_vm12, %v4218_v22, %v3598_v3 }
 0x1ca   :  { %v4235_v46 = vsel %vm4222_vm12, %v4209_v29, %v3580_v17 }
 0x1cc   :  { %v2536_v39 = vpop.permute.xlu1 %2535 }
 0x1cd   :  { %v11463_v40 = vpop.permute.xlu0 %2517 }
 0x1d0   :  { %v3758_v10 = vpop.permute.xlu1 %3757 }
 0x1d1   :  { %v3740_v45 = vpop.permute.xlu0 %3739  ;;  %v4270_v31 = vsel %vm4248_vm13, %v4244_v23, %v3758_v10  ;;  %v1337_v10 = vcombine.low %v12779_v7, %v12778_v37 }
 0x1d2   :  { %v4261_v14 = vsel %vm4248_vm13, %v4235_v46, %v3740_v45  ;;  %v7941_v45 = vld.sshfl [vmem:[%s12440_s0 + $0xc8] sm:$0x33 pattern:$0x76325410] }
 0x1d3   :  { %v1338_v58 = vcombine.low %v7941_v45, %v12780_v43  ;;  %v1345_v9 = vrot.slane %v1337_v10, %v8048_v18 }
 0x1d4   :  { %v2824_v27 = vpop.permute.xlu1 %2823 }
 0x1d5   :  { %v2806_v47 = vpop.permute.xlu0 %2805  ;;  %v1352_v8 = vrot.slane %v1338_v58, %v8048_v18 }
 0x1d7   :  { %v1353_v52 = vcombine.low %v1345_v9, %v1352_v8 }
 0x1d8   :  { %v3938_v24 = vpop.permute.xlu1 %3937 }
 0x1d9   :  { %v3920_v42 = vpop.permute.xlu0 %3919  ;;  %v4296_v15 = vsel %vm4274_vm14, %v4270_v31, %v3938_v24 }
 0x1da   :  { %v4287_v51 = vsel %vm4274_vm14, %v4261_v14, %v3920_v42  ;;  %v12782_v42 = vld [vmem:[#allocation10_spill] sm:$0xff] }
 0x1db   :  { %v1506_v38 = vcombine.low %v12782_v42, %v12781_v41  ;;  %v12783_v41 = vld [vmem:[#allocation18_spill] sm:$0xff]  ;;  %v12784_v42 = vld [vmem:[#allocation11_spill] sm:$0xff] }
 0x1dc   :  { %v3324_v44 = vpop.permute.xlu1 %3323 }
 0x1dd   :  { %v3306_v60 = vpop.permute.xlu0 %3305  ;;  %v4141_v23 = vsel %vm4118_vm8, %v1506_v38, %v11455_v53  ;;  %v1523_v38 = vcombine.low %v12784_v42, %v12783_v41 }
 0x1de   :  { %v4167_v46 = vsel %vm4144_vm9, %v4141_v23, %v2536_v39 }
 0x1df   :  { %v4193_v14 = vsel %vm4170_vm10, %v4167_v46, %v2824_v27 }
 0x1e0   :  { %v4086_v34 = vpop.permute.xlu1 %4085 }
 0x1e1   :  { %v4322_v4 = vsel %vm4300_vm15, %v4296_v15, %v4086_v34  ;;  %v4068_v6 = vpop.permute.xlu0 %4067  ;;  %v4711_v15 = vcombine.high %v11440_v12, %v11440_v12  ;;  %v4132_v34 = vsel %vm4118_vm8, %v1353_v52, %v11461_v13 }
 0x1e2   :  { %7838 = vmatmul.mubr.msk.f32.gmra.mxu1 %vm4335_vm1, %v4322_v4  ;;  %v4313_v55 = vsel %vm4300_vm15, %v4287_v51, %v4068_v6  ;;  %v4158_v51 = vsel %vm4144_vm9, %v4132_v34, %v11463_v40  ;;  %v4219_v6 = vsel %vm4196_vm11, %v4193_v14, %v3324_v44  ;;  %v12785_v34 = vld [vmem:[#allocation17_spill] sm:$0xff] }
 0x1e3   :  { %v4507_v32 = vpop.f32.mrf.mxu0  ;;  %v11494_v62 = vpop.f32.mrf.mxu1  ;;  %7840 = vmatprep.mubr.msk.f32.mxu1 %vm7954_vm7, %v12659_v20  ;;  %7811 = vmatmul.mubr.msk.f32.gmra.mxu0 %vm4335_vm1, %v4313_v55  ;;  %v4726_v55 = vcombine.high %v4718_v21, %v4718_v21  ;;  %v4184_v39 = vsel %vm4170_vm10, %v4158_v51, %v2806_v47  ;;  %v4725_v37 = vrot.slane %v4711_v15, %v8048_v18 }
 0x1e4   :  { %v3582_v33 = vpop.permute.xlu1 %3581  ;;  %7813 = vmatprep.mubr.msk.f32.mxu0 %vm7954_vm7, %v12659_v20  ;;  %v4728_v16 = vcombine.high %v4507_v32, %v4507_v32  ;;  %v11528_v53 = vrot.slane %v4507_v32, %v8048_v18  ;;  %v4210_v13 = vsel %vm4196_vm11, %v4184_v39, %v3306_v60 }
 0x1e5   :  { %v7794_v3 = vpop.f32.mrf.mxu0  ;;  %v7821_v17 = vpop.f32.mrf.mxu1  ;;  %v4236_v40 = vsel %vm4222_vm12, %v4210_v13, %v3582_v33  ;;  %v4727_v51 = vcombine.high %v4725_v37, %v4725_v37 }
 0x1e6   :  { %v2038_v63 = vpop.permute.xlu0 %2037  ;;  %v4742_v29 = vrot.slane %v4728_v16, %v8048_v18  ;;  %v4743_v10 = vcombine.high %v11528_v53, %v11528_v53 }
 0x1e7   :  { %v4142_v15 = vsel %vm4118_vm8, %v1523_v38, %v2038_v63 }
 0x1e8   :  { %v11507_v48 = vpop.permute.xlu1 %2537  ;;  %v4744_v3 = vcombine.high %v4742_v29, %v4742_v29  ;;  %v5172_v7 = vmax.f32 %v4726_v55, %v4742_v29  ;;  %v5171_v8 = vmax.f32 %v4718_v21, %v4743_v10  ;;  %v1540_v21 = vcombine.low %v12785_v34, %v10926_v5 }
 0x1e9   :  { %v4168_v39 = vsel %vm4144_vm9, %v4142_v15, %v11507_v48 }
 0x1ea   :  { %v3600_v59 = vpop.permute.xlu0 %3599  ;;  %v5173_v43 = vmax.f32 %v4725_v37, %v4744_v3  ;;  %v7655_v33 = vrot.slane %v5172_v7, 9  ;;  %v7645_v29 = vrot.slane %v5171_v8, 9 }
 0x1eb   :  { %v4245_v12 = vsel %vm4222_vm12, %v4219_v6, %v3600_v59 }
 0x1ec   :  { %v3760_v24 = vpop.permute.xlu1 %3759  ;;  %v5293_v52 = vmax.f32 %v5172_v7, %v7655_v33  ;;  %v5243_v7 = vmax.f32 %v5171_v8, %v7645_v29 }
 0x1ed   :  { %v4271_v27 = vsel %vm4248_vm13, %v4245_v12, %v3760_v24  ;;  %v7665_v24 = vrot.slane %v5173_v43, 9 }
 0x1ee   :  { %v3742_v26 = vpop.permute.xlu0 %3741  ;;  %v5472_v63 = vrot.slane %v5293_v52, %v10898_v0 }
 0x1ef   :  { %v4262_v47 = vsel %vm4248_vm13, %v4236_v40, %v3742_v26  ;;  %v4881_v26 = vcombine.high %v11494_v62, %v11494_v62  ;;  %v5343_v46 = vmax.f32 %v5173_v43, %v7665_v24 }
 0x1f0   :  { %v3922_v22 = vpop.permute.xlu1 %3921 }
 0x1f1   :  { %v4288_v60 = vsel %vm4274_vm14, %v4262_v47, %v3922_v22  ;;  %v4888_v22 = vrot.slane %v11494_v62, %v8048_v18  ;;  %v11557_v55 = vrot.slane %v4881_v26, %v8048_v18  ;;  %v5532_v10 = vrot.slane %v5343_v46, %v10898_v0 }
 0x1f2   :  { %v2826_v31 = vpop.permute.xlu0 %2825 }
 0x1f3   :  { %v4194_v5 = vsel %vm4170_vm10, %v4168_v39, %v2826_v31 }
 0x1f4   :  { %v3326_v4 = vpop.permute.xlu1 %3325 }
 0x1f5   :  { %v4220_v40 = vsel %vm4196_vm11, %v4194_v5, %v3326_v4  ;;  %v5693_v4 = vsel %vm617_vm0, %v5243_v7, %v5472_v63 }
 0x1f6   :  { %v3940_v17 = vpop.permute.xlu0 %3939 }
 0x1f7   :  { %v4297_v44 = vsel %vm4274_vm14, %v4271_v27, %v3940_v17  ;;  %v4896_v17 = vcombine.high %v4888_v22, %v4888_v22 }
 0x1f8   :  { %v4088_v32 = vpop.permute.xlu1 %4087 }
 0x1f9   :  { %v4323_v45 = vsel %vm4300_vm15, %v4297_v44, %v4088_v32 }
 0x1fa   :  { %v4070_v58 = vpop.permute.xlu0 %4069  ;;  %7841 = vmatmul.mubr.msk.f32.gmra.mxu1 %vm4335_vm1, %v4323_v45 }
 0x1fb   :  { %v4314_v59 = vsel %vm4300_vm15, %v4288_v60, %v4070_v58  ;;  %7843 = vmatprep.mubr.msk.f32.mxu1 %vm7954_vm7, %v12659_v20 }
 0x1fc   :  { %7814 = vmatmul.mubr.msk.f32.gmra.mxu0 %vm4335_vm1, %v4314_v59  ;;  %v3602_v9 = vpop.permute.xlu1 %3601 }
 0x1fd   :  { %v4246_v47 = vsel %vm4222_vm12, %v4220_v40, %v3602_v9 }
 0x1fe   :  { %v2040_v16 = vpop.permute.xlu0 %2039 }
 0x200   :  { %v3762_v23 = vpop.permute.xlu1 %3761 }
 0x201   :  { %v4272_v60 = vsel %vm4248_vm13, %v4246_v47, %v3762_v23 }
 0x202   :  { %v2540_v14 = vpop.permute.xlu0 %2539  ;;  %v4557_v6 = vpop.f32.mrf.mxu1 }
 0x203   :  { %v11561_v3 = vpop.f32.mrf.mxu0  ;;  %v4898_v62 = vcombine.high %v4557_v6, %v4557_v6  ;;  %v11564_v12 = vrot.slane %v4557_v6, %v8048_v18 }
 0x204   :  { %v4752_v13 = vrot.slane %v11561_v3, %v8048_v18  ;;  %v3942_v27 = vpop.permute.xlu1 %3941  ;;  %v7824_v37 = vpop.f32.mrf.mxu1 }
 0x205   :  { %v4912_v48 = vrot.slane %v4898_v62, %v8048_v18  ;;  %v4913_v44 = vcombine.high %v11564_v12, %v11564_v12  ;;  %v7797_v32 = vpop.f32.mrf.mxu0  ;;  %v4298_v41 = vsel %vm4274_vm14, %v4272_v60, %v3942_v27  ;;  %v5704_v62 = vsel %vm5701_vm2, %v5693_v4, %v5532_v10 }
 0x206   :  { %v4760_v45 = vcombine.high %v4752_v13, %v4752_v13  ;;  %v5174_v31 = vmax.f32 %v4727_v51, %v4752_v13  ;;  %v2828_v43 = vpop.permute.xlu0 %2827  ;;  %v5943_v32 = vcombine.high %v11391_v35, %v11391_v35  ;;  %v5829_v60 = vcombine.high %v11404_v56, %v11404_v56 }
 0x207   :  { %v4914_v58 = vcombine.high %v4912_v48, %v4912_v48  ;;  %v5166_v59 = vmax.f32 %v4888_v22, %v4913_v44  ;;  %v5167_v33 = vmax.f32 %v4896_v17, %v4912_v48  ;;  %v5928_v22 = vcombine.high %v11250_v54, %v11250_v54 }
 0x208   :  { %v5175_v8 = vmax.f32 %v11528_v53, %v4760_v45  ;;  %v7675_v24 = vrot.slane %v5174_v31, 9  ;;  %v4090_v42 = vpop.permute.xlu1 %4089  ;;  %v4143_v53 = vsel %vm4118_vm8, %v1540_v21, %v2040_v16  ;;  %v5950_v4 = vrot.slane %v5943_v32, %v11197_v2 }
 0x209   :  { %v5168_v38 = vmax.f32 %v11557_v55, %v4914_v58  ;;  %v7649_v26 = vrot.slane %v5166_v59, 9  ;;  %v7659_v9 = vrot.slane %v5167_v33, 9  ;;  %v4324_v52 = vsel %vm4300_vm15, %v4298_v41, %v4090_v42 }
 0x20a   :  { %v5393_v29 = vmax.f32 %v5174_v31, %v7675_v24  ;;  %v7685_v46 = vrot.slane %v5175_v8, 9  ;;  %v3328_v23 = vpop.permute.xlu0 %3327  ;;  %7844 = vmatmul.mubr.msk.f32.gmra.mxu1 %vm4335_vm1, %v4324_v52  ;;  %v4169_v51 = vsel %vm4144_vm9, %v4143_v53, %v2540_v14  ;;  %v5935_v44 = vrot.slane %v5928_v22, %v11197_v2 }
 0x20b   :  { %v5297_v15 = vmax.f32 %v5167_v33, %v7659_v9  ;;  %v7669_v34 = vrot.slane %v5168_v38, 9  ;;  %7846 = vmatprep.mubr.msk.f32.mxu1 %vm7954_vm7, %v12659_v20  ;;  %v5247_v17 = vmax.f32 %v5166_v59, %v7649_v26  ;;  %v4195_v54 = vsel %vm4170_vm10, %v4169_v51, %v2828_v43 }
 0x20c   :  { %v5443_v6 = vmax.f32 %v5175_v8, %v7685_v46  ;;  %v5592_v39 = vrot.slane %v5393_v29, %v10898_v0  ;;  %v3764_v63 = vpop.permute.xlu1 %3763  ;;  %v4221_v27 = vsel %vm4196_vm11, %v4195_v54, %v3328_v23  ;;  %v5942_v35 = vrot.slane %v5935_v44, %v11197_v2 }
 0x20d   :  { %v5347_v5 = vmax.f32 %v5168_v38, %v7669_v34  ;;  %v5488_v13 = vrot.slane %v5297_v15, %v10898_v0  ;;  %v5923_v24 = vcombine.high %v11416_v50, %v11416_v50  ;;  %v11625_v38 = vrot.slane %v5950_v4, %v11197_v2 }
 0x20e   :  { %v5652_v16 = vrot.slane %v5443_v6, %v10898_v0  ;;  %v5715_v21 = vsel %vm5712_vm3, %v5704_v62, %v5592_v39  ;;  %v3604_v37 = vpop.permute.xlu0 %3603  ;;  %v6417_v41 = vcombine.low %v5942_v35, %v5829_v60  ;;  %v7698_v26 = vcombine.high %v11301_v28, %v11294_v25 }
 0x20f   :  { %v5548_v14 = vrot.slane %v5347_v5, %v10898_v0  ;;  %v5697_v7 = vsel %vm617_vm0, %v5247_v17, %v5488_v13  ;;  %v4247_v40 = vsel %vm4222_vm12, %v4221_v27, %v3604_v37  ;;  %v7695_v9 = vcombine.high %v11404_v56, %v11416_v50 }
 0x210   :  { %v5726_v48 = vsel %vm5723_vm4, %v5715_v21, %v5652_v16  ;;  %v4092_v47 = vpop.permute.xlu1 %4091  ;;  %v4273_v31 = vsel %vm4248_vm13, %v4247_v40, %v3764_v63  ;;  %v6418_v46 = vcombine.low %v5923_v24, %v11625_v38  ;;  %v6433_v23 = vrot.slane %v6417_v41, %v11197_v2 }
 0x211   :  { %v5743_v10 = vmul.f32 %v11190_v36, %v5726_v48  ;;  %v11605_v45 = vsel %vm5701_vm2, %v5697_v7, %v5548_v14  ;;  %v6180_v22 = vcombine.low %v11416_v50, %v5829_v60  ;;  %v6426_v25 = vrot.slane %v7698_v26, %v11197_v2 }
 0x212   :  { %v3944_v43 = vpop.permute.xlu0 %3943  ;;  %v11642_v28 = vrot.slane %v7695_v9, %v11197_v2  ;;  %v11648_v51 = vrot.slane %v6538_v19, %v11197_v2  ;;  %v6440_v17 = vrot.slane %v6418_v46, %v11197_v2  ;;  %v4897_v32 = vcombine.high %v11557_v55, %v11557_v55 }
 0x213   :  { %v5760_v58 = vadd.f32 %v11214_v61, %v5743_v10  ;;  %v4299_v59 = vsel %vm4274_vm14, %v4273_v31, %v3944_v43  ;;  %v6448_v5 = vcombine.low %v6426_v25, %v6433_v23  ;;  %v11659_v13 = vrot.slane %v6180_v22, %v11197_v2 }
 0x214   :  { %v4325_v33 = vsel %vm4300_vm15, %v4299_v59, %v4092_v47  ;;  %v11695_v55 = vrot.slane %v6210_v57, %v11197_v2 }
 0x215   :  { %v11615_v8 = vmax.f32 %v5760_v58, 0.0  ;;  %7847 = vmatmul.mubr.msk.f32.gmra.mxu1 %vm4335_vm1, %v4325_v33  ;;  %v6456_v40 = vrot.slane %v6448_v5, %v11197_v2 }
 0x216   :  { %7867 = vmatprep.mubr.msk.f32.mxu1 %vm7954_vm7, %v12659_v20 }
 0x217   :  { %v5836_v42 = vrot.slane %v11615_v8, %v11197_v2 }
 0x219   :  { %v5837_v52 = vcombine.high %v5836_v42, %v5836_v42  ;;  %v5844_v29 = vrot.slane %v5836_v42, %v11197_v2 }
 0x21b   :  { %v11636_v53 = vrot.slane %v5837_v52, %v11197_v2  ;;  %v11638_v15 = vcombine.high %v5844_v29, %v5844_v29  ;;  %v6539_v34 = vcombine.low %v5829_v60, %v5844_v29  ;;  %v6334_v60 = vrot.slane %v11447_v11, %v11197_v2 }
 0x21d   :  { %v7699_v6 = vcombine.high %v5844_v29, %v11636_v53  ;;  %v6297_v39 = vcombine.low %v11636_v53, %v11638_v15  ;;  %v6644_v62 = vcombine.low %v5923_v24, %v11636_v53  ;;  %v11655_v63 = vrot.slane %v6539_v34, %v11197_v2 }
 0x21e   :  { %v6181_v56 = vcombine.low %v5844_v29, %v11636_v53 }
 0x21f   :  { %v11663_v50 = vrot.slane %v7699_v6, %v11197_v2  ;;  %v11666_v19 = vrot.slane %v6297_v39, %v11197_v2  ;;  %v11669_v54 = vrot.slane %v6644_v62, %v11197_v2  ;;  %v6562_v16 = vcombine.low %v11648_v51, %v11655_v63 }
 0x220   :  { %v11674_v21 = vrot.slane %v6181_v56, %v11197_v2 }
 0x221   :  { %v6449_v27 = vcombine.low %v6440_v17, %v11663_v50  ;;  %v6327_v37 = vcombine.low %v11642_v28, %v11666_v19  ;;  %v6660_v14 = vcombine.low %v11659_v13, %v11669_v54 }
 0x222   :  { %v4562_v7 = vpop.f32.mrf.mxu1  ;;  %v6211_v48 = vcombine.low %v11659_v13, %v11674_v21 }
 0x223   :  { %v4517_v44 = vpop.f32.mrf.mxu0  ;;  %v4922_v10 = vrot.slane %v4562_v7, %v8048_v18  ;;  %v6463_v47 = vrot.slane %v6449_v27, %v11197_v2  ;;  %v6341_v31 = vrot.slane %v6327_v37, %v11197_v2 }
 0x224   :  { %v7827_v43 = vpop.f32.mrf.mxu1  ;;  %v11698_v24 = vrot.slane %v6211_v48, %v11197_v2  ;;  %v4762_v34 = vcombine.high %v4517_v44, %v4517_v44  ;;  %v4769_v56 = vrot.slane %v4517_v44, %v8048_v18 }
 0x225   :  { %v4930_v58 = vcombine.high %v4922_v10, %v4922_v10  ;;  %v5169_v59 = vmax.f32 %v4897_v32, %v4922_v10  ;;  %v7800_v33 = vpop.f32.mrf.mxu0  ;;  %v6464_v35 = vcombine.low %v6456_v40, %v6463_v47  ;;  %v6342_v4 = vcombine.low %v6334_v60, %v6341_v31 }
 0x226   :  { %12786 = vst [vmem:[#allocation14_spill] sm:$0xff] %v11698_v24  ;;  %v4915_v40 = vcombine.high %v4562_v7, %v4562_v7 }
 0x227   :  { %v5170_v41 = vmax.f32 %v11564_v12, %v4930_v58  ;;  %v7679_v42 = vrot.slane %v5169_v59, 9  ;;  %6529 = vrot.lane.b32.xlu1 %v6464_v35, %s7946_s20  ;;  %6407 = vrot.lane.b32.xlu0 %v6342_v4, %s7950_s24  ;;  %v4777_v58 = vcombine.high %v4769_v56, %v4769_v56 }
 0x228   :  { %v11739_v7 = vrot.slane %v4915_v40, %v8048_v18 }
 0x229   :  { %v5397_v26 = vmax.f32 %v5169_v59, %v7679_v42  ;;  %v7689_v9 = vrot.slane %v5170_v41, 9 }
 0x22b   :  { %v5447_v52 = vmax.f32 %v5170_v41, %v7689_v9  ;;  %v5608_v1 = vrot.slane %v5397_v26, %v10898_v0 }
 0x22d   :  { %v5668_v49 = vrot.slane %v5447_v52, %v10898_v0  ;;  %v5719_v57 = vsel %vm5712_vm3, %v11605_v45, %v5608_v1  ;;  %v4776_v45 = vrot.slane %v4762_v34, %v8048_v18 }
 0x22f   :  { %v5730_v12 = vsel %vm5723_vm4, %v5719_v57, %v5668_v49  ;;  %v4778_v17 = vcombine.high %v4776_v45, %v4776_v45 }
 0x230   :  { %v5747_v29 = vmul.f32 %v11190_v36, %v5730_v12  ;;  %v4745_v36 = vcombine.high %v11561_v3, %v11561_v3 }
 0x232   :  { %v5764_v46 = vadd.f32 %v11214_v61, %v5747_v29  ;;  %v4759_v5 = vrot.slane %v4745_v36, %v8048_v18 }
 0x234   :  { %v11712_v23 = vmax.f32 %v5764_v46, 0.0  ;;  %v5181_v37 = vmax.f32 %v4759_v5, %v4778_v17  ;;  %v4761_v10 = vcombine.high %v4759_v5, %v4759_v5 }
 0x236   :  { %v5882_v22 = vrot.slane %v11712_v23, %v11197_v2  ;;  %v7646_v35 = vrot.slane %v5181_v37, 9 }
 0x238   :  { %v5883_v25 = vcombine.high %v5882_v22, %v5882_v22  ;;  %v11717_v6 = vrot.slane %v5882_v22, %v11197_v2  ;;  %v5244_v29 = vmax.f32 %v5181_v37, %v7646_v35 }
 0x23a   :  { %v11720_v39 = vrot.slane %v5883_v25, %v11197_v2 }
 0x23c   :  { %v6229_v62 = vcombine.low %v11717_v6, %v11720_v39 }
 0x242   :  { %v11729_v27 = vpop.f32.mrf.mxu1 }
 0x243   :  { %v4522_v48 = vpop.f32.mrf.mxu0  ;;  %v4932_v32 = vcombine.high %v11729_v27, %v11729_v27  ;;  %v4939_v51 = vrot.slane %v11729_v27, %v8048_v18 }
 0x244   :  { %v4779_v47 = vcombine.high %v4522_v48, %v4522_v48  ;;  %v4786_v3 = vrot.slane %v4522_v48, %v8048_v18  ;;  %v7830_v31 = vpop.f32.mrf.mxu1 }
 0x245   :  { %v11735_v43 = vrot.slane %v4932_v32, %v8048_v18  ;;  %v7803_v60 = vpop.f32.mrf.mxu0  ;;  %v5958_v32 = vcombine.high %v11615_v8, %v11615_v8  ;;  %v6734_v31 = vcombine.low %v11625_v38, %v11638_v15  ;;  %v11769_v8 = vcombine.high %v11636_v53, %v11636_v53 }
 0x246   :  { %v4793_v44 = vrot.slane %v4779_v47, %v8048_v18  ;;  %v4794_v59 = vcombine.high %v4786_v3, %v4786_v3  ;;  %v5182_v33 = vmax.f32 %v4761_v10, %v4786_v3  ;;  %v11759_v10 = vld [vmem:[%s12442_s3] ss:$0 sm:$0xff] }
 0x247   :  { %v4948_v4 = vcombine.high %v11735_v43, %v11735_v43  ;;  %v5965_v60 = vrot.slane %v5958_v32, %v11197_v2  ;;  %v6743_v35 = vrot.slane %v6734_v31, %v11197_v2 }
 0x248   :  { %v4795_v41 = vcombine.high %v4793_v44, %v4793_v44  ;;  %v5183_v42 = vmax.f32 %v4769_v56, %v4794_v59  ;;  %v5184_v26 = vmax.f32 %v4777_v58, %v4793_v44  ;;  %v7656_v9 = vrot.slane %v5182_v33, 9 }
 0x249   :  { %v11744_v52 = vmax.f32 %v11739_v7, %v4948_v4  ;;  %v11776_v38 = vrot.slane %v5965_v60, %v11197_v2 }
 0x24a   :  { %v5185_v1 = vmax.f32 %v4776_v45, %v4795_v41  ;;  %v5294_v49 = vmax.f32 %v5182_v33, %v7656_v9  ;;  %v7666_v57 = vrot.slane %v5183_v42, 9  ;;  %v7676_v12 = vrot.slane %v5184_v26, 9 }
 0x24b   :  { %v5988_v33 = vcombine.high %v11712_v23, %v11712_v23  ;;  %v6735_v53 = vcombine.low %v11769_v8, %v11776_v38  ;;  %v6570_v9 = vrot.slane %v6562_v16, %v11197_v2 }
 0x24c   :  { %v5344_v46 = vmax.f32 %v5183_v42, %v7666_v57  ;;  %v5394_v22 = vmax.f32 %v5184_v26, %v7676_v12  ;;  %v7686_v34 = vrot.slane %v5185_v1, 9  ;;  %v5476_v25 = vrot.slane %v5294_v49, %v10898_v0 }
 0x24d   :  { %v11794_v49 = vcombine.high %v11717_v6, %v11717_v6  ;;  %v5995_v57 = vrot.slane %v5988_v33, %v11197_v2  ;;  %v5926_v33 = vcombine.high %v11720_v39, %v11720_v39 }
 0x24e   :  { %v5444_v36 = vmax.f32 %v5185_v1, %v7686_v34  ;;  %v5536_v17 = vrot.slane %v5344_v46, %v10898_v0  ;;  %v5596_v5 = vrot.slane %v5394_v22, %v10898_v0  ;;  %v5694_v56 = vsel %vm617_vm0, %v5244_v29, %v5476_v25 }
 0x24f   :  { %v6758_v1 = vcombine.low %v11642_v28, %v6743_v35  ;;  %v7650_v35 = vrot.slane %v11744_v52, 9 }
 0x250   :  { %v5656_v40 = vrot.slane %v5444_v36, %v10898_v0  ;;  %v5705_v45 = vsel %vm5701_vm2, %v5694_v56, %v5536_v17  ;;  %v6668_v56 = vrot.slane %v6660_v14, %v11197_v2 }
 0x251   :  { %v5716_v48 = vsel %vm5712_vm3, %v5705_v45, %v5596_v5  ;;  %v6766_v45 = vrot.slane %v6758_v1, %v11197_v2 }
 0x252   :  { %v5727_v37 = vsel %vm5723_vm4, %v5716_v48, %v5656_v40  ;;  %v6750_v40 = vrot.slane %v6735_v53, %v11197_v2 }
 0x253   :  { %v5744_v47 = vmul.f32 %v11759_v10, %v5727_v37  ;;  %v4931_v37 = vcombine.high %v11739_v7, %v11739_v7 }
 0x255   :  { %v5761_v3 = vadd.f32 %v11214_v61, %v5744_v47 }
 0x257   :  { %v5771_v58 = vmax.f32 %v5761_v3, 0.0  ;;  %v11838_v3 = vrot.slane %v5995_v57, %v11197_v2 }
 0x259   :  { %v6026_v44 = vrot.slane %v5771_v58, %v11197_v2  ;;  %v6068_v59 = vcombine.high %v5771_v58, %v5771_v58  ;;  %v6345_v58 = vcombine.low %v11720_v39, %v11794_v49 }
 0x25b   :  { %v6027_v4 = vcombine.high %v6026_v44, %v6026_v44  ;;  %v6034_v61 = vrot.slane %v6026_v44, %v11197_v2  ;;  %v6075_v41 = vrot.slane %v6068_v59, %v11197_v2  ;;  %v4947_v44 = vcombine.high %v4939_v51, %v4939_v51 }
 0x25d   :  { %v11780_v42 = vrot.slane %v6027_v4, %v11197_v2  ;;  %v11782_v26 = vcombine.high %v6034_v61, %v6034_v61  ;;  %v6840_v23 = vcombine.low %v11638_v15, %v6034_v61  ;;  %v11811_v63 = vrot.slane %v6075_v41, %v11197_v2 }
 0x25f   :  { %v6645_v12 = vcombine.low %v11780_v42, %v11782_v26  ;;  %v6540_v29 = vcombine.low %v6034_v61, %v11780_v42  ;;  %v7702_v46 = vcombine.high %v6034_v61, %v11780_v42  ;;  %v11802_v22 = vrot.slane %v6840_v23, %v11197_v2 }
 0x260   :  { %v11808_v28 = vcombine.high %v11780_v42, %v11780_v42  ;;  %v6579_v16 = vcombine.low %v11782_v26, %v11717_v6 }
 0x261   :  { %v11816_v34 = vrot.slane %v6645_v12, %v11197_v2  ;;  %v6561_v25 = vrot.slane %v6540_v29, %v11197_v2  ;;  %v11820_v36 = vrot.slane %v7702_v46, %v11197_v2  ;;  %v6856_v27 = vcombine.low %v11674_v21, %v11802_v22 }
 0x262   :  { %v11824_v17 = vpop.f32.mrf.mxu0  ;;  %v4572_v5 = vpop.f32.mrf.mxu1  ;;  %v7029_v48 = vcombine.low %v11808_v28, %v11811_v63  ;;  %v11853_v57 = vrot.slane %v6579_v16, %v11197_v2  ;;  %v6776_v16 = vcombine.low %v5926_v33, %v11838_v3 }
 0x263   :  { %v4949_v32 = vcombine.high %v4572_v5, %v4572_v5  ;;  %v4956_v47 = vrot.slane %v4572_v5, %v8048_v18  ;;  %v6661_v13 = vcombine.low %v11663_v50, %v11816_v34  ;;  %v6563_v54 = vcombine.low %v11666_v19, %v6561_v25 }
 0x264   :  { %v7806_v31 = vpop.f32.mrf.mxu0  ;;  %v7833_v60 = vpop.f32.mrf.mxu1  ;;  %v6759_v14 = vcombine.low %v6750_v40, %v11820_v36 }
 0x265   :  { %v4963_v7 = vrot.slane %v4949_v32, %v8048_v18  ;;  %v4964_v59 = vcombine.high %v4956_v47, %v4956_v47  ;;  %v5177_v4 = vmax.f32 %v4931_v37, %v4956_v47  ;;  %v6675_v61 = vrot.slane %v6661_v13, %v11197_v2 }
 0x266   :  { %v6577_v41 = vrot.slane %v6563_v54, %v11197_v2  ;;  %v6773_v25 = vrot.slane %v6759_v14, %v11197_v2  ;;  %v7700_v37 = vcombine.high %v11717_v6, %v11720_v39  ;;  %v6677_v14 = vcombine.low %v11808_v28, %v11720_v39  ;;  %v7158_v6 = vld [vmem:[%s12444_s5 + $0x40] sm:$0xff]  ;;  %v7157_v39 = vld [vmem:[%s12444_s5 + $0x38] sm:$0xff] }
 0x267   :  { %v4965_v53 = vcombine.high %v4963_v7, %v4963_v7  ;;  %v5178_v23 = vmax.f32 %v4939_v51, %v4964_v59  ;;  %v5179_v1 = vmax.f32 %v4947_v44, %v4963_v7  ;;  %v7660_v12 = vrot.slane %v5177_v4, 9  ;;  %7850 = vmatpush3.msra.mxu1 %v7158_v6 }
 0x268   :  { %v6676_v29 = vcombine.low %v6668_v56, %v6675_v61  ;;  %v6578_v46 = vcombine.low %v6570_v9, %v6577_v41  ;;  %v11862_v51 = vrot.slane %v6345_v58, %v11197_v2  ;;  %v5248_v9 = vmax.f32 %v11744_v52, %v7650_v35  ;;  %7851 = vmatprep.subr.mxu1 %v12659_v20 }
 0x269   :  { %v5180_v5 = vmax.f32 %v11735_v43, %v4965_v53  ;;  %v7670_v40 = vrot.slane %v5178_v23, 9  ;;  %v7680_v32 = vrot.slane %v5179_v1, 9  ;;  %v5298_v47 = vmax.f32 %v5177_v4, %v7660_v12  ;;  %7852 = vmatpush3.msra.mxu1 %v7157_v39 }
 0x26a   :  { %6725 = vrot.lane.b32.xlu1 %v6676_v29, %s7951_s25  ;;  %6635 = vrot.lane.b32.xlu0 %v6578_v46, %s7945_s19  ;;  %v6774_v13 = vcombine.low %v6766_v45, %v6773_v25  ;;  %v6775_v52 = vcombine.low %v11811_v63, %v11794_v49  ;;  %v11878_v45 = vrot.slane %v7700_v37, %v11197_v2  ;;  %v11901_v25 = vld [vmem:[%s12443_s4] ss:$0 sm:$0xff] }
 0x26b   :  { %v5348_v56 = vmax.f32 %v5178_v23, %v7670_v40  ;;  %v5398_v31 = vmax.f32 %v5179_v1, %v7680_v32  ;;  %v7690_v43 = vrot.slane %v5180_v5, 9  ;;  %v5492_v60 = vrot.slane %v5298_v47, %v10898_v0  ;;  %7853 = vmatprep.subr.mxu1 %v12659_v20 }
 0x26c   :  { %v11881_v35 = vrot.slane %v6677_v14, %v11197_v2  ;;  %v11886_v41 = vrot.slane %v6775_v52, %v11197_v2  ;;  %v11889_v53 = vrot.slane %v6776_v16, %v11197_v2  ;;  %v7155_v52 = vld [vmem:[%s12444_s5 + $0x28] sm:$0xff] }
 0x26d   :  { %v5448_v44 = vmax.f32 %v5180_v5, %v7690_v43  ;;  %v5552_v58 = vrot.slane %v5348_v56, %v10898_v0  ;;  %v5612_v7 = vrot.slane %v5398_v31, %v10898_v0  ;;  %v5698_v59 = vsel %vm617_vm0, %v5248_v9, %v5492_v60 }
 0x26e   :  { %6831 = vrot.lane.b32.xlu1 %v6774_v13, %s7947_s21  ;;  %v11921_v31 = vrot.slane %v6229_v62, %v11197_v2  ;;  %v7156_v62 = vld [vmem:[%s12444_s5 + $0x30] sm:$0xff] }
 0x26f   :  { %v5672_v4 = vrot.slane %v5448_v44, %v10898_v0  ;;  %v5709_v61 = vsel %vm5701_vm2, %v5698_v59, %v5552_v58  ;;  %7854 = vmatpush3.msra.mxu1 %v7156_v62  ;;  %v4803_v59 = vrot.slane %v11824_v17, %v8048_v18 }
 0x270   :  { %v5720_v23 = vsel %vm5712_vm3, %v5709_v61, %v5612_v7  ;;  %7855 = vmatprep.subr.mxu1 %v12659_v20  ;;  %v4796_v61 = vcombine.high %v11824_v17, %v11824_v17 }
 0x271   :  { %v5731_v12 = vsel %vm5723_vm4, %v5720_v23, %v5672_v4  ;;  %7856 = vmatpush3.msra.mxu1 %v7155_v52  ;;  %v4811_v23 = vcombine.high %v4803_v59, %v4803_v59 }
 0x272   :  { %v5748_v46 = vmul.f32 %v11759_v10, %v5731_v12  ;;  %7857 = vmatprep.subr.mxu1 %v12659_v20 }
 0x274   :  { %v5765_v5 = vadd.f32 %v11901_v25, %v5748_v46 }
 0x276   :  { %v11904_v40 = vmax.f32 %v5765_v5, 0.0 }
 0x278   :  { %v5905_v32 = vrot.slane %v11904_v40, %v11197_v2 }
 0x27a   :  { %v5906_v37 = vcombine.high %v5905_v32, %v5905_v32  ;;  %v11909_v47 = vrot.slane %v5905_v32, %v11197_v2  ;;  %v4810_v32 = vrot.slane %v4796_v61, %v8048_v18 }
 0x27c   :  { %v11912_v16 = vrot.slane %v5906_v37, %v11197_v2  ;;  %v6230_v9 = vcombine.low %v11794_v49, %v11909_v47  ;;  %v4812_v11 = vcombine.high %v4810_v32, %v4810_v32 }
 0x27e   :  { %v6346_v56 = vcombine.low %v5926_v33, %v11912_v16  ;;  %v11924_v43 = vrot.slane %v6230_v9, %v11197_v2 }
 0x280   :  { %v11927_v60 = vrot.slane %v6346_v56, %v11197_v2 }
 0x282   :  { %v11931_v14 = vpop.f32.mrf.mxu1 }
 0x283   :  { %v4532_v33 = vpop.f32.mrf.mxu0 }
 0x284   :  { %v7836_v44 = vpop.f32.mrf.mxu1  ;;  %v4813_v7 = vcombine.high %v4532_v33, %v4532_v33  ;;  %v4820_v12 = vrot.slane %v4532_v33, %v8048_v18 }
 0x285   :  { %v7809_v58 = vpop.f32.mrf.mxu0 }
 0x286   :  { %v4827_v4 = vrot.slane %v4813_v7, %v8048_v18  ;;  %v4828_v37 = vcombine.high %v4820_v12, %v4820_v12 }
 0x288   :  { %v4829_v46 = vcombine.high %v4827_v4, %v4827_v4  ;;  %v5192_v5 = vmax.f32 %v4811_v23, %v4827_v4  ;;  %v5191_v44 = vmax.f32 %v4803_v59, %v4828_v37 }
 0x28a   :  { %v5193_v9 = vmax.f32 %v4810_v32, %v4829_v46  ;;  %v7657_v56 = vrot.slane %v5192_v5, 9  ;;  %v7647_v52 = vrot.slane %v5191_v44, 9  ;;  %v4966_v32 = vcombine.high %v11931_v14, %v11931_v14 }
 0x28c   :  { %v7667_v58 = vrot.slane %v5193_v9, 9  ;;  %v5295_v39 = vmax.f32 %v5192_v5, %v7657_v56  ;;  %v5245_v46 = vmax.f32 %v5191_v44, %v7647_v52  ;;  %v4973_v56 = vrot.slane %v11931_v14, %v8048_v18 }
 0x28d   :  { %v4980_v52 = vrot.slane %v4966_v32, %v8048_v18  ;;  %v7028_v32 = vcombine.low %v11776_v38, %v11782_v26 }
 0x28e   :  { %v5345_v29 = vmax.f32 %v5193_v9, %v7667_v58  ;;  %v5480_v4 = vrot.slane %v5295_v39, %v10898_v0 }
 0x290   :  { %v5540_v5 = vrot.slane %v5345_v29, %v10898_v0  ;;  %v5695_v9 = vsel %vm617_vm0, %v5245_v46, %v5480_v4 }
 0x2a2   :  { %v4582_v6 = vpop.f32.mrf.mxu1 }
 0x2a3   :  { %v4537_v62 = vpop.f32.mrf.mxu0  ;;  %v4983_v13 = vcombine.high %v4582_v6, %v4582_v6 }
 0x2a4   :  { %v7839_v7 = vpop.f32.mrf.mxu1  ;;  %v4837_v17 = vrot.slane %v4537_v62, %v8048_v18  ;;  %v4830_v49 = vcombine.high %v4537_v62, %v4537_v62  ;;  %v4981_v62 = vcombine.high %v4973_v56, %v4973_v56 }
 0x2a5   :  { %v7812_v33 = vpop.f32.mrf.mxu0  ;;  %v4997_v37 = vrot.slane %v4983_v13, %v8048_v18  ;;  %v5706_v7 = vsel %vm5701_vm2, %v5695_v9, %v5540_v5 }
 0x2a6   :  { %v4845_v23 = vcombine.high %v4837_v17, %v4837_v17  ;;  %v5194_v61 = vmax.f32 %v4812_v11, %v4837_v17  ;;  %v11968_v11 = vrot.slane %v4582_v6, %v8048_v18 }
 0x2a7   :  { %v4999_v29 = vcombine.high %v4997_v37, %v4997_v37  ;;  %v5187_v33 = vmax.f32 %v4981_v62, %v4997_v37  ;;  %v12000_v62 = vrot.slane %v7028_v32, %v11197_v2 }
 0x2a8   :  { %v5195_v1 = vmax.f32 %v4820_v12, %v4845_v23  ;;  %v7677_v59 = vrot.slane %v5194_v61, 9  ;;  %v11971_v12 = vrot.slane %v4830_v49, %v8048_v18  ;;  %v4998_v6 = vcombine.high %v11968_v11, %v11968_v11 }
 0x2a9   :  { %v5188_v23 = vmax.f32 %v4980_v52, %v4999_v29 }
 0x2aa   :  { %v5395_v58 = vmax.f32 %v5194_v61, %v7677_v59  ;;  %v7687_v39 = vrot.slane %v5195_v1, 9  ;;  %v4846_v49 = vcombine.high %v11971_v12, %v11971_v12  ;;  %v4871_v61 = vrot.slane %v11443_v30, %v8048_v18 }
 0x2ab   :  { %v6938_v59 = vcombine.low %v11769_v8, %v11780_v42  ;;  %v5186_v5 = vmax.f32 %v4973_v56, %v4998_v6  ;;  %v12010_v6 = vrot.slane %v6856_v27, %v11197_v2  ;;  %v7154_v27 = vld [vmem:[%s12444_s5 + $0x20] sm:$0xff] }
 0x2ac   :  { %v5445_v44 = vmax.f32 %v5195_v1, %v7687_v39  ;;  %v5600_v13 = vrot.slane %v5395_v58, %v10898_v0  ;;  %v4864_v1 = vcombine.high %v11443_v30, %v11443_v30  ;;  %v5157_v9 = vmax.f32 %v4846_v49, %v4871_v61  ;;  %7858 = vmatpush3.msra.mxu1 %v7154_v27 }
 0x2ad   :  { %v7661_v58 = vrot.slane %v5187_v33, 9  ;;  %v11997_v30 = vrot.slane %v6938_v59, %v11197_v2  ;;  %v7651_v29 = vrot.slane %v5186_v5, 9  ;;  %v7153_v59 = vld [vmem:[%s12444_s5 + $0x18] sm:$0xff]  ;;  %7859 = vmatprep.subr.mxu1 %v12659_v20 }
 0x2ae   :  { %v5660_v14 = vrot.slane %v5445_v44, %v10898_v0  ;;  %v5717_v17 = vsel %vm5712_vm3, %v5706_v7, %v5600_v13  ;;  %v4878_v39 = vrot.slane %v4864_v1, %v8048_v18  ;;  %v7671_v44 = vrot.slane %v5188_v23, 9  ;;  %7860 = vmatpush3.msra.mxu1 %v7153_v59 }
 0x2af   :  { %v7658_v42 = vrot.slane %v5157_v9, 9  ;;  %v5299_v56 = vmax.f32 %v5187_v33, %v7661_v58  ;;  %v4879_v7 = vcombine.high %v4871_v61, %v4871_v61  ;;  %v12021_v33 = vrot.slane %v7029_v48, %v11197_v2  ;;  %7861 = vmatprep.subr.mxu1 %v12659_v20 }
 0x2b0   :  { %v5728_v4 = vsel %vm5723_vm4, %v5717_v17, %v5660_v14  ;;  %v4880_v14 = vcombine.high %v4878_v39, %v4878_v39  ;;  %v12004_v17 = vmax.f32 %v5188_v23, %v7671_v44  ;;  %v5249_v23 = vmax.f32 %v5186_v5, %v7651_v29 }
 0x2b1   :  { %v5745_v46 = vmul.f32 %v11759_v10, %v5728_v4  ;;  %v4982_v61 = vcombine.high %v4980_v52, %v4980_v52  ;;  %v12033_v32 = vmax.f32 %v5157_v9, %v7658_v42  ;;  %v5496_v28 = vrot.slane %v5299_v56, %v10898_v0 }
 0x2b3   :  { %v5762_v37 = vadd.f32 %v11901_v25, %v5745_v46 }
 0x2b5   :  { %v11994_v13 = vmax.f32 %v5762_v37, 0.0  ;;  %v5556_v37 = vrot.slane %v12004_v17, %v10898_v0 }
 0x2b7   :  { %v6106_v26 = vrot.slane %v11994_v13, %v11197_v2 }
 0x2b9   :  { %v6107_v49 = vcombine.high %v6106_v26, %v6106_v26  ;;  %v6114_v4 = vrot.slane %v6106_v26, %v11197_v2 }
 0x2ba   :  { %v12012_v1 = vpop.f32.mrf.mxu1 }
 0x2bb   :  { %v5007_v21 = vrot.slane %v12012_v1, %v8048_v18  ;;  %v12037_v52 = vrot.slane %v6107_v49, %v11197_v2  ;;  %v12039_v5 = vcombine.high %v6114_v4, %v6114_v4 }
 0x2bc   :  { %v4542_v63 = vpop.f32.mrf.mxu0  ;;  %v7842_v48 = vpop.f32.mrf.mxu1 }
 0x2bd   :  { %v4847_v58 = vcombine.high %v4542_v63, %v4542_v63  ;;  %v4854_v44 = vrot.slane %v4542_v63, %v8048_v18  ;;  %v5015_v29 = vcombine.high %v5007_v21, %v5007_v21  ;;  %v5189_v9 = vmax.f32 %v4982_v61, %v5007_v21  ;;  %v7152_v61 = vld [vmem:[%s12444_s5 + $0x10] sm:$0xff]  ;;  %v7151_v21 = vld [vmem:[%s12444_s5 + $0x8] sm:$0xff] }
 0x2be   :  { %v7815_v42 = vpop.f32.mrf.mxu0  ;;  %v6841_v26 = vcombine.low %v6114_v4, %v12037_v52  ;;  %v6939_v56 = vcombine.low %v12037_v52, %v12039_v5  ;;  %v7704_v49 = vcombine.high %v6114_v4, %v12037_v52  ;;  %v5699_v63 = vsel %vm617_vm0, %v5249_v23, %v5496_v28  ;;  %7862 = vmatpush3.msra.mxu1 %v7152_v61 }
 0x2bf   :  { %v4861_v27 = vrot.slane %v4847_v58, %v8048_v18  ;;  %v4862_v48 = vcombine.high %v4854_v44, %v4854_v44  ;;  %v5158_v17 = vmax.f32 %v4854_v44, %v4879_v7  ;;  %v5190_v54 = vmax.f32 %v11968_v11, %v5015_v29  ;;  %7863 = vmatprep.subr.mxu1 %v12659_v20 }
 0x2c0   :  { %v7681_v4 = vrot.slane %v5189_v9, 9  ;;  %v6855_v59 = vrot.slane %v6841_v26, %v11197_v2  ;;  %v6953_v58 = vrot.slane %v6939_v56, %v11197_v2  ;;  %7864 = vmatpush3.msra.mxu1 %v7151_v21  ;;  %v7051_v56 = vrot.slane %v7704_v49, %v11197_v2 }
 0x2c1   :  { %v4863_v7 = vcombine.high %v4861_v27, %v4861_v27  ;;  %v5159_v11 = vmax.f32 %v4862_v48, %v4878_v39  ;;  %v5160_v44 = vmax.f32 %v4861_v27, %v4880_v14  ;;  %v7668_v29 = vrot.slane %v5158_v17, 9  ;;  %7865 = vmatprep.subr.mxu1 %v12659_v20  ;;  %v7150_v39 = vld [vmem:[%s12444_s5] sm:$0xff] }
 0x2c2   :  { %v5399_v42 = vmax.f32 %v5189_v9, %v7681_v4  ;;  %v7691_v22 = vrot.slane %v5190_v54, 9  ;;  %v6857_v46 = vcombine.low %v11816_v34, %v6855_v59  ;;  %v6955_v24 = vcombine.low %v11820_v36, %v6953_v58  ;;  %7866 = vmatpush3.msra.mxu1 %v7150_v39 }
 0x2c3   :  { %v5156_v23 = vmax.f32 %v11971_v12, %v4863_v7  ;;  %v7678_v28 = vrot.slane %v5159_v11, 9  ;;  %v7688_v26 = vrot.slane %v5160_v44, 9  ;;  %v5346_v14 = vmax.f32 %v5158_v17, %v7668_v29 }
 0x2c4   :  { %v5449_v9 = vmax.f32 %v5190_v54, %v7691_v22  ;;  %v5616_v27 = vrot.slane %v5399_v42, %v10898_v0  ;;  %v6871_v34 = vrot.slane %v6857_v46, %v11197_v2  ;;  %v5710_v12 = vsel %vm5701_vm2, %v5699_v63, %v5556_v37 }
 0x2c5   :  { %v7648_v36 = vrot.slane %v5156_v23, 9  ;;  %v5396_v48 = vmax.f32 %v5159_v11, %v7678_v28  ;;  %v6969_v61 = vrot.slane %v6955_v24, %v11197_v2  ;;  %v5446_v49 = vmax.f32 %v5160_v44, %v7688_v26 }
 0x2c6   :  { %v5676_v21 = vrot.slane %v5449_v9, %v10898_v0  ;;  %v5721_v4 = vsel %vm5712_vm3, %v5710_v12, %v5616_v27  ;;  %v6872_v59 = vcombine.low %v12010_v6, %v6871_v34  ;;  %v5484_v54 = vrot.slane %v12033_v32, %v10898_v0 }
 0x2c7   :  { %v5246_v22 = vmax.f32 %v5156_v23, %v7648_v36  ;;  %v12787_v46 = vcombine.low %v11666_v19, %v11997_v30  ;;  %v7053_v37 = vcombine.low %v12021_v33, %v7051_v56  ;;  %v5544_v24 = vrot.slane %v5346_v14, %v10898_v0 }
 0x2c8   :  { %v5732_v63 = vsel %vm5723_vm4, %v5721_v4, %v5676_v21  ;;  %6929 = vrot.lane.b32.xlu1 %v6872_v59, %s7948_s22  ;;  %v12788_v6 = vcombine.low %v11663_v50, %v12000_v62  ;;  %v6003_v32 = vcombine.high %v11904_v40, %v11904_v40  ;;  %v5604_v7 = vrot.slane %v5396_v48, %v10898_v0 }
 0x2c9   :  { %v6962_v17 = vrot.slane %v12787_v46, %v11197_v2  ;;  %v5696_v19 = vsel %vm617_vm0, %v5246_v22, %v5484_v54  ;;  %v5749_v30 = vmul.f32 %v11759_v10, %v5732_v63  ;;  %v7067_v33 = vrot.slane %v7053_v37, %v11197_v2 }
 0x2ca   :  { %v7060_v58 = vrot.slane %v12788_v6, %v11197_v2  ;;  %v5664_v11 = vrot.slane %v5446_v49, %v10898_v0  ;;  %v5707_v44 = vsel %vm5701_vm2, %v5696_v19, %v5544_v24  ;;  %v4592_v42 = vpop.f32.mrf.mxu1  ;;  %v12101_v50 = vcombine.high %v11909_v47, %v11909_v47 }
 0x2cb   :  { %v6970_v29 = vcombine.low %v6962_v17, %v6969_v61  ;;  %v5718_v40 = vsel %vm5712_vm3, %v5707_v44, %v5604_v7  ;;  %v5000_v62 = vcombine.high %v12012_v1, %v12012_v1  ;;  %v5766_v23 = vadd.f32 %v11901_v25, %v5749_v30 }
 0x2cc   :  { %v5017_v28 = vcombine.high %v4592_v42, %v4592_v42  ;;  %v5729_v26 = vsel %vm5723_vm4, %v5718_v40, %v5664_v11  ;;  %v7845_v56 = vpop.f32.mrf.mxu1  ;;  %v7068_v39 = vcombine.low %v7060_v58, %v7067_v33  ;;  %v6010_v14 = vrot.slane %v6003_v32, %v11197_v2 }
 0x2cd   :  { %7019 = vrot.lane.b32.xlu1 %v6970_v29, %s7952_s26  ;;  %v5746_v9 = vmul.f32 %v11759_v10, %v5729_v26  ;;  %v12111_v27 = vmax.f32 %v5766_v23, 0.0  ;;  %v6580_v1 = vcombine.low %v11909_v47, %v11912_v16  ;;  %v12789_v36 = vcombine.low %v11853_v57, %v11862_v51 }
 0x2ce   :  { %v5031_v34 = vrot.slane %v5017_v28, %v8048_v18  ;;  %v6276_v12 = vcombine.low %v11912_v16, %v12101_v50  ;;  %v6468_v61 = vcombine.low %v11838_v3, %v12101_v50  ;;  %v5014_v21 = vrot.slane %v5000_v62, %v8048_v18 }
 0x2cf   :  { %v12120_v48 = vrot.slane %v12789_v36, %v11197_v2  ;;  %v5763_v49 = vadd.f32 %v11901_v25, %v5746_v9  ;;  %v6049_v4 = vrot.slane %v12111_v27, %v11197_v2  ;;  %v5024_v54 = vrot.slane %v4592_v42, %v8048_v18 }
 0x2d0   :  { %v5033_v59 = vcombine.high %v5031_v34, %v5031_v34  ;;  %v12134_v57 = vcombine.high %v11912_v16, %v11912_v16  ;;  %v12790_v3 = vcombine.low %v11881_v35, %v11878_v45  ;;  %v12143_v46 = vrot.slane %v6010_v14, %v11197_v2 }
 0x2d1   :  { %7117 = vrot.lane.b32.xlu1 %v7068_v39, %s7949_s23  ;;  %v5773_v17 = vmax.f32 %v5763_v49, 0.0  ;;  %v6050_v37 = vcombine.high %v6049_v4, %v6049_v4  ;;  %v12146_v24 = vrot.slane %v6049_v4, %v11197_v2  ;;  %v6595_v6 = vrot.slane %v6580_v1, %v11197_v2 }
 0x2d2   :  { %v12140_v22 = vrot.slane %v12790_v3, %v11197_v2  ;;  %v5196_v63 = vmax.f32 %v5014_v21, %v5033_v59  ;;  %v12150_v58 = vrot.slane %v6276_v12, %v11197_v2  ;;  %v12153_v32 = vrot.slane %v6468_v61, %v11197_v2 }
 0x2d3   :  { %v7697_v35 = vcombine.high %v11909_v47, %v11912_v16  ;;  %v5859_v7 = vrot.slane %v5773_v17, %v11197_v2  ;;  %v5973_v19 = vcombine.high %v5773_v17, %v5773_v17  ;;  %v12159_v30 = vrot.slane %v6050_v37, %v11197_v2 }
 0x2d4   :  { %v7652_v33 = vrot.slane %v5196_v63, 9  ;;  %v5032_v11 = vcombine.high %v5024_v54, %v5024_v54  ;;  %v5016_v44 = vcombine.high %v5014_v21, %v5014_v21  ;;  %v6581_v29 = vcombine.low %v12101_v50, %v12146_v24 }
 0x2d5   :  { %v12791_v42 = vcombine.low %v11862_v51, %v11927_v60  ;;  %v5860_v62 = vcombine.high %v5859_v7, %v5859_v7  ;;  %v4597_v23 = vpop.f32.mrf.mxu1  ;;  %v6678_v28 = vcombine.low %v12134_v57, %v12159_v30  ;;  %v12172_v26 = vrot.slane %v5859_v7, %v11197_v2 }
 0x2d6   :  { %v12176_v56 = vcombine.high %v12146_v24, %v12146_v24  ;;  %v5250_v39 = vmax.f32 %v5196_v63, %v7652_v33  ;;  %v5034_v14 = vcombine.high %v4597_v23, %v4597_v23  ;;  %v5041_v9 = vrot.slane %v4597_v23, %v8048_v18 }
 0x2d7   :  { %v12167_v40 = vrot.slane %v12791_v42, %v11197_v2  ;;  %v6602_v51 = vrot.slane %v6581_v29, %v11197_v2  ;;  %v7848_v60 = vpop.f32.mrf.mxu1  ;;  %v6692_v1 = vrot.slane %v6678_v28, %v11197_v2  ;;  %v12182_v36 = vrot.slane %v5860_v62, %v11197_v2 }
 0x2d8   :  { %v12186_v12 = vcombine.high %v12172_v26, %v12172_v26  ;;  %v5980_v61 = vrot.slane %v5973_v19, %v11197_v2  ;;  %v5048_v49 = vrot.slane %v5034_v14, %v8048_v18  ;;  %v5049_v21 = vcombine.high %v5041_v9, %v5041_v9 }
 0x2d9   :  { %v5197_v4 = vmax.f32 %v5016_v44, %v5041_v9  ;;  %v6604_v59 = vcombine.low %v6595_v6, %v6602_v51  ;;  %v6694_v3 = vcombine.low %v12150_v58, %v6692_v1  ;;  %v6343_v17 = vcombine.low %v11769_v8, %v12182_v36 }
 0x2da   :  { %v7696_v37 = vcombine.high %v12172_v26, %v12182_v36  ;;  %v6777_v63 = vcombine.low %v12143_v46, %v12176_v56  ;;  %v5050_v7 = vcombine.high %v5048_v49, %v5048_v49  ;;  %v5198_v33 = vmax.f32 %v5024_v54, %v5049_v21 }
 0x2db   :  { %v5199_v29 = vmax.f32 %v5032_v11, %v5048_v49  ;;  %v7662_v19 = vrot.slane %v5197_v4, 9  ;;  %v6618_v18 = vrot.slane %v6604_v59, %v11197_v2  ;;  %v6708_v44 = vrot.slane %v6694_v3, %v11197_v2 }
 0x2dc   :  { %v6353_v6 = vrot.slane %v6343_v17, %v11197_v2  ;;  %v6360_v42 = vrot.slane %v7696_v37, %v11197_v2  ;;  %v5200_v62 = vmax.f32 %v5031_v34, %v5050_v7  ;;  %v7672_v23 = vrot.slane %v5198_v33, 9 }
 0x2dd   :  { %v5300_v8 = vmax.f32 %v5197_v4, %v7662_v19  ;;  %v7682_v28 = vrot.slane %v5199_v29, 9  ;;  %v6619_v14 = vcombine.low %v12120_v48, %v6618_v18  ;;  %v6709_v9 = vcombine.low %v12140_v22, %v6708_v44 }
 0x2de   :  { %v6375_v51 = vcombine.low %v6353_v6, %v6360_v42  ;;  %v5925_v54 = vcombine.high %v12182_v36, %v12182_v36  ;;  %v5350_v11 = vmax.f32 %v5198_v33, %v7672_v23  ;;  %v7692_v1 = vrot.slane %v5200_v62, 9 }
 0x2df   :  { %v5400_v60 = vmax.f32 %v5199_v29, %v7682_v28  ;;  %v5500_v49 = vrot.slane %v5300_v8, %v10898_v0  ;;  %v6148_v21 = vcombine.high %v11994_v13, %v11994_v13  ;;  %6637 = vrot.lane.b32.xlu0 %v6619_v14, %s7945_s19  ;;  %v5987_v48 = vrot.slane %v5980_v61, %v11197_v2 }
 0x2e0   :  { %v6383_v34 = vrot.slane %v6375_v51, %v11197_v2  ;;  %v6465_v22 = vcombine.low %v11776_v38, %v12186_v12  ;;  %v5450_v4 = vmax.f32 %v5200_v62, %v7692_v1  ;;  %v5560_v59 = vrot.slane %v5350_v11, %v10898_v0 }
 0x2e1   :  { %v5620_v3 = vrot.slane %v5400_v60, %v10898_v0  ;;  %v5700_v17 = vsel %vm617_vm0, %v5250_v39, %v5500_v49  ;;  %v6466_v7 = vcombine.low %v5925_v54, %v5987_v48  ;;  %v12218_v13 = vrot.slane %v7697_v35, %v11197_v2 }
 0x2e2   :  { %v6391_v37 = vcombine.low %v6383_v34, %v12167_v40  ;;  %v5680_v33 = vrot.slane %v5450_v4, %v10898_v0  ;;  %v5711_v61 = vsel %vm5701_vm2, %v5700_v17, %v5560_v59  ;;  %v6498_v38 = vcombine.low %v11878_v45, %v12153_v32 }
 0x2e3   :  { %v6798_v29 = vrot.slane %v6777_v63, %v11197_v2  ;;  %v5722_v19 = vsel %vm5712_vm3, %v5711_v61, %v5620_v3  ;;  %6727 = vrot.lane.b32.xlu0 %v6709_v9, %s7951_s25  ;;  %v6475_v39 = vrot.slane %v6465_v22, %v11197_v2  ;;  %v6482_v40 = vrot.slane %v6466_v7, %v11197_v2 }
 0x2e4   :  { %v6155_v35 = vrot.slane %v6148_v21, %v11197_v2  ;;  %v5733_v18 = vsel %vm5723_vm4, %v5722_v19, %v5680_v33  ;;  %v12792_v45 = vcombine.low %v11886_v41, %v11889_v53  ;;  %v6146_v63 = vcombine.high %v12037_v52, %v12037_v52 }
 0x2e5   :  { %v6800_v44 = vcombine.low %v12218_v13, %v6798_v29  ;;  %v5750_v6 = vmul.f32 %v11759_v10, %v5733_v18  ;;  %v6497_v42 = vcombine.low %v6475_v39, %v6482_v40  ;;  %v6083_v62 = vcombine.high %v12111_v27, %v12111_v27 }
 0x2e6   :  { %v6807_v32 = vrot.slane %v12792_v45, %v11197_v2  ;;  %v6227_v23 = vcombine.low %v11638_v15, %v12172_v26  ;;  %v6228_v10 = vcombine.low %v12182_v36, %v12186_v12  ;;  %v6512_v53 = vrot.slane %v6498_v38, %v11197_v2 }
 0x2e7   :  { %v6814_v8 = vrot.slane %v6800_v44, %v11197_v2  ;;  %v5767_v28 = vadd.f32 %v11901_v25, %v5750_v6  ;;  %6409 = vrot.lane.b32.xlu0 %v6391_v37, %s7950_s24  ;;  %v6505_v41 = vrot.slane %v6497_v42, %v11197_v2  ;;  %v6162_v52 = vrot.slane %v6155_v35, %v11197_v2 }
 0x2e8   :  { %v6873_v27 = vcombine.low %v12039_v5, %v11909_v47  ;;  %v6237_v9 = vrot.slane %v6227_v23, %v11197_v2  ;;  %v6244_v15 = vrot.slane %v6228_v10, %v11197_v2  ;;  %v6971_v25 = vcombine.low %v6146_v63, %v11912_v16 }
 0x2e9   :  { %v6815_v14 = vcombine.low %v6807_v32, %v6814_v8  ;;  %v5777_v26 = vmax.f32 %v5767_v28, 0.0  ;;  %v6513_v36 = vcombine.low %v6505_v41, %v6512_v53  ;;  %v6090_v12 = vrot.slane %v6083_v62, %v11197_v2 }
 0x2ea   :  { %v6259_v51 = vcombine.low %v6237_v9, %v6244_v15  ;;  %v6514_v11 = vcombine.low %v12134_v57, %v12143_v46  ;;  %v6882_v47 = vrot.slane %v6873_v27, %v11197_v2  ;;  %v7069_v5 = vcombine.low %v6162_v52, %v12101_v50 }
 0x2eb   :  { %v6129_v54 = vrot.slane %v5777_v26, %v11197_v2  ;;  %6531 = vrot.lane.b32.xlu0 %v6513_v36, %s7946_s20  ;;  %v12793_v16 = vcombine.low %v11921_v31, %v11924_v43  ;;  %v6874_v34 = vcombine.low %v12146_v24, %v12159_v30  ;;  %v6979_v57 = vrot.slane %v6971_v25, %v11197_v2 }
 0x2ec   :  { %v12264_v60 = vrot.slane %v6259_v51, %v11197_v2  ;;  %v6067_v50 = vcombine.high %v12159_v30, %v12159_v30  ;;  %v6620_v46 = vcombine.low %v12159_v30, %v12176_v56  ;;  %v6097_v48 = vrot.slane %v6090_v12, %v11197_v2 }
 0x2ed   :  { %v12270_v1 = vrot.slane %v12793_v16, %v11197_v2  ;;  %v6130_v49 = vcombine.high %v6129_v54, %v6129_v54  ;;  %v6137_v21 = vrot.slane %v6129_v54, %v11197_v2  ;;  %v7701_v59 = vcombine.high %v12146_v24, %v12159_v30 }
 0x2ee   :  { %v6897_v3 = vcombine.low %v6882_v47, %v12150_v58  ;;  %v7077_v17 = vrot.slane %v7069_v5, %v11197_v2  ;;  %v6889_v37 = vrot.slane %v6874_v34, %v11197_v2  ;;  %v6627_v38 = vrot.slane %v6620_v46, %v11197_v2  ;;  %v6408_v34 = vpop.permute.xlu0 %6407 }
 0x2ef   :  { %v6275_v31 = vcombine.low %v12264_v60, %v12270_v1  ;;  %6833 = vrot.lane.b32.xlu0 %v6815_v14, %s7947_s21  ;;  %v6875_v43 = vcombine.low %v12176_v56, %v6137_v21  ;;  %v6144_v22 = vrot.slane %v6130_v49, %v11197_v2  ;;  %v6145_v4 = vcombine.high %v6137_v21, %v6137_v21  ;;  %v6530_v49 = vpop.permute.xlu1 %6529 }
 0x2f0   :  { %v6987_v56 = vcombine.low %v6979_v57, %v12218_v13  ;;  %v6521_v29 = vrot.slane %v6514_v11, %v11197_v2  ;;  %v6717_v24 = vrot.slane %v7701_v59, %v11197_v2  ;;  %v6905_v40 = vrot.slane %v6897_v3, %v11197_v2 }
 0x2f1   :  { %v6896_v7 = vrot.slane %v6875_v43, %v11197_v2  ;;  %v6972_v33 = vcombine.low %v6067_v50, %v6144_v22  ;;  %v7070_v61 = vcombine.low %v6097_v48, %v6145_v4  ;;  %v6163_v23 = vcombine.high %v5777_v26, %v5777_v26 }
 0x2f2   :  { %v7085_v44 = vcombine.low %v7077_v17, %v6521_v29  ;;  %v6995_v45 = vrot.slane %v6987_v56, %v11197_v2  ;;  %v6406_v28 = vrot.slane %v12218_v13, %v11197_v2  ;;  %v6816_v41 = vcombine.low %v6067_v50, %v6097_v48  ;;  %v12794_v50 = vld [vmem:[#allocation14_spill] sm:$0xff]  ;;  %v6636_v43 = vpop.permute.xlu0 %6635 }
 0x2f3   :  { %v6898_v19 = vcombine.low %v6889_v37, %v6896_v7  ;;  %v6986_v39 = vrot.slane %v6972_v33, %v11197_v2  ;;  %v7084_v30 = vrot.slane %v7070_v61, %v11197_v2  ;;  %v6170_v53 = vrot.slane %v6163_v23, %v11197_v2 }
 0x2f4   :  { %v7093_v8 = vrot.slane %v7085_v44, %v11197_v2  ;;  %v6528_v52 = vrot.slane %v6521_v29, %v11197_v2  ;;  %v6914_v14 = vcombine.low %v6144_v22, %v6145_v4  ;;  %v6147_v27 = vcombine.high %v6144_v22, %v6144_v22 }
 0x2f5   :  { %v6912_v35 = vrot.slane %v6898_v19, %v11197_v2  ;;  %v6988_v18 = vcombine.low %v6627_v38, %v6986_v39  ;;  %v7086_v6 = vcombine.low %v6717_v24, %v7084_v30  ;;  %v6634_v9 = vrot.slane %v6627_v38, %v11197_v2 }
 0x2f6   :  { %v6823_v15 = vrot.slane %v6816_v41, %v11197_v2  ;;  %v7703_v26 = vcombine.high %v6137_v21, %v6144_v22  ;;  %v6177_v36 = vrot.slane %v6170_v53, %v11197_v2  ;;  %v6724_v13 = vrot.slane %v6717_v24, %v11197_v2  ;;  %v6726_v21 = vpop.permute.xlu1 %6725 }
 0x2f7   :  { %v6913_v42 = vcombine.low %v6905_v40, %v6912_v35  ;;  %v7002_v32 = vrot.slane %v6988_v18, %v11197_v2  ;;  %v7100_v63 = vrot.slane %v7086_v6, %v11197_v2  ;;  %v6921_v25 = vrot.slane %v6914_v14, %v11197_v2 }
 0x2f8   :  { %v7102_v12 = vcombine.low %v6147_v27, %v6177_v36  ;;  %v6830_v51 = vrot.slane %v6823_v15, %v11197_v2  ;;  %v7011_v54 = vrot.slane %v7703_v26, %v11197_v2  ;;  %v12795_v46 = vcombine.low %v11695_v55, %v12794_v50 }
 0x2f9   :  { %6931 = vrot.lane.b32.xlu1 %v6913_v42, %s7948_s22  ;;  %v7003_v62 = vcombine.low %v6995_v45, %v7002_v32  ;;  %v7101_v10 = vcombine.low %v7093_v8, %v7100_v63  ;;  %v6928_v11 = vrot.slane %v6921_v25, %v11197_v2  ;;  %v6290_v1 = vrot.slane %v12150_v58, %v11197_v2 }
 0x2fa   :  { %v7109_v47 = vrot.slane %v7102_v12, %v11197_v2  ;;  %v7018_v5 = vrot.slane %v7011_v54, %v11197_v2  ;;  %v6832_v57 = vpop.permute.xlu1 %6831  ;;  %v7126_v48 = vsel %vm4118_vm8, %v12795_v46, %v6408_v34  ;;  %vm7483_vm0 = vcmask 654336  }
 0x2fb   :  { %7021 = vrot.lane.b32.xlu0 %v7003_v62, %s7952_s26  ;;  %v7129_v4 = vsel %vm4144_vm9, %v7126_v48, %v6530_v49 }
 0x2fc   :  { %v7116_v16 = vrot.slane %v7109_v47, %v11197_v2  ;;  %v7132_v59 = vsel %vm4170_vm10, %v7129_v4, %v6636_v43  ;;  %v7708_v47 = vld [vmem:[%s12445_s6] ss:$0 sm:$0xff]  ;;  %s7956_s6 = smov 80  }
 0x2fd   :  { %7119 = vrot.lane.b32.xlu1 %v7101_v10, %s7949_s23  ;;  %v7135_v17 = vsel %vm4196_vm11, %v7132_v59, %v6726_v21  ;;  %v7709_v21 = vld [vmem:[%s12446_s7] ss:$0 sm:$0xff]  ;;  %v7359_v50 = vrot.slane %v7708_v47, %v11197_v2  ;;  %s7957_s7 = smov 72  }
 0x2fe   :  { %v7138_v37 = vsel %vm4222_vm12, %v7135_v17, %v6832_v57  ;;  %v7391_v59 = vrot.slane %v7709_v21, %v11197_v2 }
 0x2ff   :  { %6411 = vrot.lane.b32.xlu0 %v6406_v28, %s7950_s24 }
 0x301   :  { %6533 = vrot.lane.b32.xlu1 %v6528_v52, %s7946_s20 }
 0x303   :  { %6639 = vrot.lane.b32.xlu0 %v6634_v9, %s7945_s19 }
 0x305   :  { %6729 = vrot.lane.b32.xlu1 %v6724_v13, %s7951_s25 }
 0x307   :  { %6835 = vrot.lane.b32.xlu0 %v6830_v51, %s7947_s21 }
 0x309   :  { %6933 = vrot.lane.b32.xlu1 %v6928_v11, %s7948_s22 }
 0x30b   :  { %7023 = vrot.lane.b32.xlu0 %v7018_v5, %s7952_s26 }
 0x30d   :  { %7121 = vrot.lane.b32.xlu1 %v7116_v16, %s7949_s23 }
 0x33a   :  { %v6930_v22 = vpop.permute.xlu1 %6929 }
 0x33b   :  { %v7141_v7 = vsel %vm4248_vm13, %v7138_v37, %v6930_v22 }
 0x33f   :  { %v7020_v3 = vpop.permute.xlu1 %7019 }
 0x340   :  { %v7144_v33 = vsel %vm4274_vm14, %v7141_v7, %v7020_v3  ;;  %v7360_v3 = vcombine.high %v7359_v50, %v7359_v50 }
 0x343   :  { %v7118_v61 = vpop.permute.xlu1 %7117 }
 0x344   :  { %v7147_v55 = vsel %vm4300_vm15, %v7144_v33, %v7118_v61  ;;  %v7367_v61 = vrot.slane %v7359_v50, %v11197_v2 }
 0x345   :  { %7868 = vmatmul.mubr.msk.f32.vlgmr.msra.gmra.mxu1 %vm4335_vm1, %v7147_v55 }
 0x346   :  { %7870 = vmatprep.mubr.msk.f32.mxu1 %vm7954_vm7, %v12659_v20 }
 0x351   :  { %v6638_v38 = vpop.permute.xlu0 %6637 }
 0x355   :  { %v6728_v56 = vpop.permute.xlu0 %6727 }
 0x359   :  { %v6410_v29 = vpop.permute.xlu0 %6409 }
 0x35a   :  { %v7127_v39 = vsel %vm4118_vm8, %v6275_v31, %v6410_v29  ;;  %v7392_v29 = vcombine.high %v7391_v59, %v7391_v59 }
 0x35d   :  { %v6532_v19 = vpop.permute.xlu0 %6531 }
 0x35e   :  { %v7130_v24 = vsel %vm4144_vm9, %v7127_v39, %v6532_v19 }
 0x35f   :  { %v7133_v30 = vsel %vm4170_vm10, %v7130_v24, %v6638_v38  ;;  %v7374_v24 = vrot.slane %v7360_v3, %v11197_v2  ;;  %v7530_v3 = vld [vmem:[%s12447_s1 + $0x10] sm:$0xff] }
 0x360   :  { %v7136_v40 = vsel %vm4196_vm11, %v7133_v30, %v6728_v56 }
 0x361   :  { %v6834_v35 = vpop.permute.xlu0 %6833 }
 0x362   :  { %v7139_v18 = vsel %vm4222_vm12, %v7136_v40, %v6834_v35  ;;  %v7399_v40 = vrot.slane %v7391_v59, %v11197_v2 }
 0x36b   :  { %v6932_v44 = vpop.permute.xlu1 %6931 }
 0x36c   :  { %v7142_v6 = vsel %vm4248_vm13, %v7139_v18, %v6932_v44  ;;  %v7406_v18 = vrot.slane %v7392_v29, %v11197_v2 }
 0x36d   :  { %v7022_v42 = vpop.permute.xlu0 %7021 }
 0x36e   :  { %v7145_v45 = vsel %vm4274_vm14, %v7142_v6, %v7022_v42 }
 0x36f   :  { %v7120_v32 = vpop.permute.xlu1 %7119 }
 0x370   :  { %v7148_v60 = vsel %vm4300_vm15, %v7145_v45, %v7120_v32 }
 0x371   :  { %7871 = vmatmul.mubr.msk.f32.gmra.mxu1 %vm4335_vm1, %v7148_v60  ;;  %v6412_v31 = vpop.permute.xlu0 %6411 }
 0x372   :  { %v7128_v63 = vsel %vm4118_vm8, %v6290_v1, %v6412_v31  ;;  %7873 = vmatprep.mubr.msk.f32.mxu1 %vm7954_vm7, %v12659_v20  ;;  %vm7489_vm7 = vcmask 850944  }
 0x373   :  { %v6534_v62 = vpop.permute.xlu1 %6533 }
 0x374   :  { %v7131_v8 = vsel %vm4144_vm9, %v7128_v63, %v6534_v62 }
 0x375   :  { %v6640_v23 = vpop.permute.xlu0 %6639 }
 0x376   :  { %v7134_v10 = vsel %vm4170_vm10, %v7131_v8, %v6640_v23 }
 0x377   :  { %v6730_v28 = vpop.permute.xlu1 %6729 }
 0x378   :  { %v7137_v41 = vsel %vm4196_vm11, %v7134_v10, %v6730_v28 }
 0x379   :  { %v6836_v53 = vpop.permute.xlu0 %6835 }
 0x37a   :  { %v7140_v58 = vsel %vm4222_vm12, %v7137_v41, %v6836_v53 }
 0x37b   :  { %v6934_v52 = vpop.permute.xlu1 %6933 }
 0x37c   :  { %v7143_v14 = vsel %vm4248_vm13, %v7140_v58, %v6934_v52 }
 0x37d   :  { %v7024_v27 = vpop.permute.xlu0 %7023 }
 0x37e   :  { %v7146_v9 = vsel %vm4274_vm14, %v7143_v14, %v7024_v27 }
 0x37f   :  { %v7122_v15 = vpop.permute.xlu1 %7121 }
 0x380   :  { %v7149_v20 = vsel %vm4300_vm15, %v7146_v9, %v7122_v15 }
 0x381   :  { %7874 = vmatmul.mubr.msk.f32.gmra.mxu1 %vm4335_vm1, %v7149_v20 }
 0x405   :  { %v7234_v26 = vpop.f32.mrf.mxu1 }
 0x406   :  { %v7256_v13 = vrot.slane %v7234_v26, %v11197_v2  ;;  %v7249_v12 = vcombine.high %v7234_v26, %v7234_v26 }
 0x407   :  { %v7869_v36 = vpop.f32.mrf.mxu1 }
 0x408   :  { %v7264_v25 = vcombine.high %v7256_v13, %v7256_v13  ;;  %v7263_v54 = vrot.slane %v7249_v12, %v11197_v2  ;;  %v7271_v16 = vrot.slane %v7256_v13, %v11197_v2 }
 0x40a   :  { %v7285_v51 = vrot.slane %v7264_v25, %v11197_v2  ;;  %v7278_v49 = vrot.slane %v7263_v54, %v11197_v2 }
 0x40c   :  { %v7286_v11 = vcombine.high %v7285_v51, %v7285_v51  ;;  %v7342_v17 = vmax.f32 %v7285_v51, %v7278_v49 }
 0x40e   :  { %v7341_v48 = vmax.f32 %v7271_v16, %v7286_v11 }
 0x410   :  { %v7345_v55 = vmax.f32 %v7341_v48, %v7342_v17  ;;  %v7531_v17 = vld [vmem:[%s12447_s1 + $0x18] sm:$0x1] }
 0x412   :  { %v7377_v30 = vmul.f32 %v7367_v61, %v7345_v55 }
 0x414   :  { %v7409_v6 = vadd.f32 %v7399_v40, %v7377_v30 }
 0x431   :  { %v7239_v5 = vpop.f32.mrf.mxu1 }
 0x432   :  { %v7287_v34 = vcombine.high %v7239_v5, %v7239_v5  ;;  %v7294_v57 = vrot.slane %v7239_v5, %v11197_v2 }
 0x433   :  { %v7872_v46 = vpop.f32.mrf.mxu1 }
 0x434   :  { %v7301_v43 = vrot.slane %v7287_v34, %v11197_v2  ;;  %v7302_v22 = vcombine.high %v7294_v57, %v7294_v57  ;;  %v7310_v4 = vrot.slane %v7294_v57, %v11197_v2 }
 0x436   :  { %v7303_v37 = vcombine.high %v7301_v43, %v7301_v43  ;;  %v7317_v7 = vrot.slane %v7301_v43, %v11197_v2  ;;  %v7324_v33 = vrot.slane %v7302_v22, %v11197_v2  ;;  %v7332_v56 = vcombine.high %v7310_v4, %v7310_v4  ;;  %v7528_v43 = vld [vmem:[%s12447_s1] sm:$0xff]  ;;  %v7529_v22 = vld [vmem:[%s12447_s1 + $0x8] sm:$0x1] }
 0x438   :  { %v7331_v38 = vrot.slane %v7303_v37, %v11197_v2  ;;  %v7343_v19 = vmax.f32 %v7324_v33, %v7317_v7 }
 0x43a   :  { %v7344_v39 = vmax.f32 %v7332_v56, %v7331_v38 }
 0x43c   :  { %v7346_v35 = vmax.f32 %v7343_v19, %v7344_v39 }
 0x43e   :  { %v7378_v44 = vmul.f32 %v7374_v24, %v7346_v35 }
 0x440   :  { %v7410_v42 = vadd.f32 %v7406_v18, %v7378_v44 }
 0x441   :  { %v7244_v45 = vpop.f32.mrf.mxu1 }
 0x442   :  { %v7413_v32 = vcombine.low %v7409_v6, %v7410_v42 }
 0x443   :  { %v7875_v60 = vpop.f32.mrf.mxu1 }
 0x444   :  { %v7420_v1 = vrot.slane %v7413_v32, %v11197_v2 }
 0x446   :  { %v7427_v31 = vrot.slane %v7420_v1, %v11197_v2 }
 0x448   :  { %7432 = vrot.lane.b32.xlu1 %v7427_v31, %s7946_s20  ;;  %7429 = vrot.lane.b32.xlu0 %v7427_v31, %s7950_s24  ;;  %s7959_s20 = smov 88   ;;  %s7960_s24 = smov 112  }
 0x44c   :  { %7438 = vrot.lane.b32.xlu1 %v7427_v31, %s7951_s25  ;;  %7435 = vrot.lane.b32.xlu0 %v7427_v31, %s7945_s19  ;;  %s7961_s25 = smov 104   ;;  %s7962_s19 = smov 120  }
 0x450   :  { %7444 = vrot.lane.b32.xlu1 %v7427_v31, %s7948_s22  ;;  %7441 = vrot.lane.b32.xlu0 %v7427_v31, %s7947_s21 }
 0x454   :  { %7450 = vrot.lane.b32.xlu1 %v7427_v31, %s7949_s23  ;;  %7447 = vrot.lane.b32.xlu0 %v7427_v31, %s7952_s26 }
 0x458   :  { %7456 = vrot.lane.b32.xlu1 %v7427_v31, %s7956_s6  ;;  %7453 = vrot.lane.b32.xlu0 %v7427_v31, %s7957_s7 }
 0x45c   :  { %7462 = vrot.lane.b32.xlu1 %v7427_v31, %s7958_s28  ;;  %7459 = vrot.lane.b32.xlu0 %v7427_v31, %s7959_s20 }
 0x460   :  { %7468 = vrot.lane.b32.xlu1 %v7427_v31, %s7960_s24  ;;  %7465 = vrot.lane.b32.xlu0 %v7427_v31, %s7961_s25 }
 0x464   :  { %7471 = vrot.lane.b32.xlu0 %v7427_v31, %s7962_s19 }
 0x4ba   :  { %v7433_v63 = vpop.permute.xlu1 %7432  ;;  %v7430_v62 = vpop.permute.xlu0 %7429 }
 0x4bb   :  { %v7474_v8 = vsel %vm4118_vm8, %v7427_v31, %v7430_v62  ;;  %vm7491_vm8 = vcmask 916480  }
 0x4bc   :  { %v7475_v10 = vsel %vm4144_vm9, %v7474_v8, %v7433_v63  ;;  %vm7493_vm9 = vcmask 982016  }
 0x4be   :  { %v7439_v23 = vpop.permute.xlu1 %7438  ;;  %v7436_v28 = vpop.permute.xlu0 %7435 }
 0x4bf   :  { %v7476_v41 = vsel %vm4170_vm10, %v7475_v10, %v7436_v28 }
 0x4c0   :  { %v7477_v58 = vsel %vm4196_vm11, %v7476_v41, %v7439_v23 }
 0x4c2   :  { %v7445_v53 = vpop.permute.xlu1 %7444  ;;  %v7442_v52 = vpop.permute.xlu0 %7441 }
 0x4c3   :  { %v7478_v14 = vsel %vm4222_vm12, %v7477_v58, %v7442_v52 }
 0x4c4   :  { %v7479_v9 = vsel %vm4248_vm13, %v7478_v14, %v7445_v53 }
 0x4c6   :  { %v7451_v27 = vpop.permute.xlu1 %7450  ;;  %v7448_v15 = vpop.permute.xlu0 %7447 }
 0x4c7   :  { %v7480_v20 = vsel %vm4274_vm14, %v7479_v9, %v7448_v15 }
 0x4c8   :  { %v7481_v36 = vsel %vm4300_vm15, %v7480_v20, %v7451_v27 }
 0x4ca   :  { %v7457_v26 = vpop.permute.xlu1 %7456  ;;  %v7454_v13 = vpop.permute.xlu0 %7453 }
 0x4cb   :  { %v7482_v25 = vsel %vm4335_vm1, %v7481_v36, %v7454_v13 }
 0x4cc   :  { %v7484_v51 = vsel %vm7483_vm0, %v7482_v25, %v7457_v26 }
 0x4ce   :  { %v7463_v12 = vpop.permute.xlu1 %7462  ;;  %v7460_v54 = vpop.permute.xlu0 %7459 }
 0x4cf   :  { %v7486_v11 = vsel %vm7485_vm5, %v7484_v51, %v7460_v54 }
 0x4d0   :  { %v7488_v47 = vsel %vm7487_vm6, %v7486_v11, %v7463_v12 }
 0x4d2   :  { %v7466_v5 = vpop.permute.xlu0 %7465  ;;  %v7469_v16 = vpop.permute.xlu1 %7468 }
 0x4d3   :  { %v7490_v49 = vsel %vm7489_vm7, %v7488_v47, %v7466_v5 }
 0x4d4   :  { %v7492_v21 = vsel %vm7491_vm8, %v7490_v49, %v7469_v16 }
 0x4d6   :  { %v7472_v34 = vpop.permute.xlu0 %7471 }
 0x4d7   :  { %v7494_v57 = vsel %vm7493_vm9, %v7492_v21, %v7472_v34 }
 0x4d8   :  { %v7502_v50 = vrot.slane %v7494_v57, %v11197_v2 }
 0x4da   :  { %v7503_v46 = vcombine.high %v7502_v50, %v7502_v50  ;;  %v7510_v48 = vrot.slane %v7502_v50, %v11197_v2 }
 0x4dc   :  { %v7517_v4 = vrot.slane %v7503_v46, %v11197_v2  ;;  %v7521_v59 = vrot.slane %v7510_v48, %v10898_v0 }
 0x4de   :  { %v7525_v37 = vrot.slane %v7517_v4, %v10898_v0  ;;  %v7532_v7 = vadd.f32 %v7528_v43, %v7521_v59  ;;  %v7533_v33 = vadd.f32 %v7529_v22, %v7521_v59 }
 0x4e0   :  { %v7534_v61 = vadd.f32 %v7530_v3, %v7525_v37  ;;  %v7535_v55 = vadd.f32 %v7531_v17, %v7525_v37  ;;  %v7536_v38 = vmax.f32 %v7532_v7, 0.0  ;;  %v7537_v56 = vmax.f32 %v7533_v33, 0.0 }
 0x4e2   :  { %v7538_v29 = vmax.f32 %v7534_v61, 0.0  ;;  %v7539_v2 = vmax.f32 %v7535_v55, 0.0  ;;  %7540 = vst [vmem:[%s12448_s8] sm:$0xff] %v7536_v38  ;;  %7541 = vst [vmem:[%s12448_s8 + $0x8] sm:$0x1] %v7537_v56 }
 0x4e4   :  { %7542 = vst [vmem:[%s12448_s8 + $0x10] sm:$0xff] %v7538_v29  ;;  %7543 = vst [vmem:[%s12448_s8 + $0x18] sm:$0x1] %v7539_v2 }

</bundles_post_ra>
